<compile_context>
chip_gen: v7x
topology: tpu7x:2x2x1
jax: 0.10.0
libtpu: 0.0.40
codegen_flags: <defaults>
</compile_context>

<pallas_src>
import math

import jax
import jax.numpy as jnp
from jax.experimental import pallas as pl
from jax.experimental.pallas import tpu as pltpu


# ----------------------------------------------------------------------------
# Fused Pallas kernel: all layers, all timesteps, one invocation (grid = ())
# ----------------------------------------------------------------------------
def _make_fused_kernel(num_layers, T, H):
    """Ref order:
      xg0 (T,B,4H)      : layer-0 input projection, bias folded, i/f/o bands pre-scaled
      h0, c0 (B,H)      : shared initial hidden/cell state (same for every layer)
      ctx_flat (B*S,H)  : encoder context, flattened, bf16
      mb (B,B*S)        : additive bias (0 on own-block valid positions, -1e30 elsewhere)
      layer 0           : w_hh0 (H,4H) bf16, ctxwT0 (H,B*S) bf16, wout0 (2H,H) bf16
      layers >= 1       : w_xh (2H,4H) bf16, b (1,4H) f32, ctxwT (H,B*S) bf16, wout (2H,H) bf16
      outputs           : out (T,B,H) time-major, hT (L,B,H), cT (L,B,H)
    """

    def kernel(*refs):
        xg0_ref, h0_ref, c0_ref, ctxf_ref, mb_ref = refs[:5]
        idx = 5
        layers = [(refs[idx], None, refs[idx + 1], refs[idx + 2])]
        idx += 3
        for _ in range(1, num_layers):
            layers.append((refs[idx], refs[idx + 1], refs[idx + 2], refs[idx + 3]))
            idx += 4
        out_ref, hT_ref, cT_ref = refs[idx], refs[idx + 1], refs[idx + 2]

        def lstm_attend(gates, c_prev, ctxwT_ref, wout_ref):
            # gates arrive with i/f/o pre-activations pre-scaled by 0.5, so a single
            # tanh pass over the full (B,4H) vreg yields every nonlinearity:
            #   sigmoid(x) = 0.5*tanh(x/2) + 0.5 ; g band is unscaled -> tanh(x).
            t_all = jnp.tanh(gates)                       # one EUP pass
            sg = 0.5 * t_all + 0.5                        # VPU fma
            i_g = sg[:, 0:H]
            f_g = sg[:, H:2 * H]
            o_g = sg[:, 3 * H:4 * H]
            g_g = t_all[:, 2 * H:3 * H]
            c_new = f_g * c_prev + i_g * g_g              # fp32 recurrence
            hy = o_g * jnp.tanh(c_new)

            # --- bilinear attention, both contractions on the MXU ---
            # scores in a scattered (B, B*S) layout; mb keeps only row b's own block
            # [b*S,(b+1)*S) minus padded source positions (-1e30 elsewhere -> exp==0).
            scores = jnp.dot(hy.astype(jnp.bfloat16), ctxwT_ref[...],
                             preferred_element_type=jnp.float32) + mb_ref[...]
            scores = scores - jnp.max(scores, axis=-1, keepdims=True)
            e = jnp.exp(scores)
            # deferred normalization: the weighted-sum matmul does not wait on the
            # softmax denominator / approx reciprocal (EUP).
            w_un = jnp.dot(e.astype(jnp.bfloat16), ctxf_ref[...],
                           preferred_element_type=jnp.float32)          # (B, H)
            inv = pl.reciprocal(jnp.sum(e, axis=-1, keepdims=True), approx=True)
            weighted = w_un * inv
            # h_tilde = tanh([weighted ; hy] @ W_out^T)  (single merged matmul, K=2H)
            cat = jnp.concatenate([weighted, hy], axis=-1).astype(jnp.bfloat16)
            h_tilde = jnp.tanh(jnp.dot(cat, wout_ref[...],
                                       preferred_element_type=jnp.float32))
            return h_tilde, c_new

        # Every layer starts from the SAME initial (h0, c0), as in the PyTorch module.
        h = [h0_ref[...]] * num_layers
        c = [c0_ref[...]] * num_layers

        # T is tiny -> static unroll; weights/ctx/mask are re-read from VMEM at each
        # use site so regalloc keeps live ranges short across the unrolled body.
        # TODO(synk): switch to lax.fori_loop(..., unroll=True) if T grows beyond ~8.
        for t in range(T):
            w_hh0_ref, _, ctxwT0_ref, wout0_ref = layers[0]
            gates0 = xg0_ref[t] + jnp.dot(h[0].astype(jnp.bfloat16), w_hh0_ref[...],
                                          preferred_element_type=jnp.float32)
            h[0], c[0] = lstm_attend(gates0, c[0], ctxwT0_ref, wout0_ref)
            layer_in = h[0]
            for l in range(1, num_layers):
                w_xh_ref, b_ref, ctxwT_ref, wout_ref = layers[l]
                xin = jnp.concatenate([layer_in, h[l]], axis=-1).astype(jnp.bfloat16)
                gates = jnp.dot(xin, w_xh_ref[...],
                                preferred_element_type=jnp.float32) + b_ref[...]
                h[l], c[l] = lstm_attend(gates, c[l], ctxwT_ref, wout_ref)
                layer_in = h[l]
                # TODO(synk): inter-layer nn.Dropout is stochastic (training mode);
                # implemented as identity (eval / p = 0).
            out_ref[t] = layer_in                 # top-layer output, time-major

        # Final states written exactly once, after the recurrence.
        for l in range(num_layers):
            hT_ref[l] = h[l]
            cT_ref[l] = c[l]

    return kernel


# ----------------------------------------------------------------------------
# Wrapper: parameter prep (scaling / concat / bf16 / hoisted projections) + call
# ----------------------------------------------------------------------------
def stacked_attention_lstm(x, h0, c0, ctx, srcmask, params_list):
    """x: (B,T,E) batch-first. Returns (output (B,T,H), (h_final (L,B,H), c_final (L,B,H)))."""
    B, T, E = x.shape
    H = h0.shape[1]
    S = ctx.shape[1]
    L = len(params_list)
    f32, bf16 = jnp.float32, jnp.bfloat16

    # 0.5-scale on i/f/o gate pre-activations -> single-tanh gate nonlinearities.
    gate_scale = jnp.concatenate([jnp.full((2 * H,), 0.5, f32),
                                  jnp.ones((H,), f32),
                                  jnp.full((H,), 0.5, f32)])

    # Scattered (B, B*S) additive attention bias: 0 on own-batch valid source
    # positions, -1e30 on padded positions and on other batches' blocks.
    blk = (jnp.arange(B * S) // S)[None, :] == jnp.arange(B)[:, None]      # (B, B*S)
    src_rep = jnp.tile(srcmask, (1, B))                                    # (B, B*S)
    mb_scatter = jnp.where(blk & ~src_rep, 0.0, -1e30).astype(f32)

    ctx_flat = ctx.reshape(B * S, H).astype(bf16)                          # shared

    # Layer-0 input projection for ALL timesteps hoisted out of the recurrence
    # (one big fp32 matmul; bias folded; gate-scaled; emitted time-major).
    w_ih0, w_hh0, b0, w_in0, w_out0 = params_list[0]
    xg0 = ((jnp.einsum("bte,eg->tbg", x, w_ih0) + b0) * gate_scale).astype(f32)

    def attn_precomp(w_in_t, w_out_t):
        # scores(hy)[b,s] = hy[b] . (ctx[b,s] @ w_in_t^T)  -> hoist the time-invariant
        # in-projection: ctxwT[k, b*S+s] = sum_h ctx[b,s,h] * w_in_t[k,h]
        ctxw_T = jnp.einsum("bsh,kh->kbs", ctx, w_in_t).reshape(H, B * S)
        return ctxw_T.astype(bf16), w_out_t.astype(bf16)

    ctxw0_T, wout0 = attn_precomp(w_in0, w_out0)
    flat_in = [xg0, h0, c0, ctx_flat, mb_scatter,
               (w_hh0 * gate_scale).astype(bf16), ctxw0_T, wout0]
    for (w_ih, w_hh, b, w_in, w_out) in params_list[1:]:
        w_xh = (jnp.concatenate([w_ih, w_hh], axis=0) * gate_scale).astype(bf16)  # (2H,4H)
        ctxw_T, wout = attn_precomp(w_in, w_out)
        flat_in += [w_xh, (b * gate_scale).astype(f32), ctxw_T, wout]

    vmem = pl.BlockSpec(memory_space=pltpu.MemorySpace.VMEM)
    out_tm, hT, cT = pl.pallas_call(
        _make_fused_kernel(L, T, H),
        out_shape=(
            jax.ShapeDtypeStruct((T, B, H), f32),   # time-major top-layer sequence
            jax.ShapeDtypeStruct((L, B, H), f32),   # final hidden per layer
            jax.ShapeDtypeStruct((L, B, H), f32),   # final cell per layer
        ),
        in_specs=[vmem] * len(flat_in),
        out_specs=(vmem, vmem, vmem),
    )(*flat_in)

    output = jnp.transpose(out_tm, (1, 0, 2))   # (B, T, H); fused into the single jit
    return output, (hT, cT)


# ----------------------------------------------------------------------------
# Deterministic parameter init (shapes from nn.LSTMCell + BilinearAttention)
# ----------------------------------------------------------------------------
def init_layer_params(key, input_dim, hidden_dim):
    ks = jax.random.split(key, 6)
    bound = 1.0 / math.sqrt(hidden_dim)
    u = lambda k, shape: jax.random.uniform(k, shape, jnp.float32, -bound, bound)
    w_ih = u(ks[0], (4 * hidden_dim, input_dim))       # LSTMCell.weight_ih
    w_hh = u(ks[1], (4 * hidden_dim, hidden_dim))      # LSTMCell.weight_hh
    b_ih = u(ks[2], (4 * hidden_dim,))
    b_hh = u(ks[3], (4 * hidden_dim,))
    w_in = u(ks[4], (hidden_dim, hidden_dim))          # attention in_projection
    w_out = u(ks[5], (hidden_dim, 2 * hidden_dim))     # attention out_projection
    # Pre-transpose for x @ W form; fold the two biases.
    return (w_ih.T, w_hh.T, (b_ih + b_hh)[None, :], w_in.T, w_out.T)


# ----------------------------------------------------------------------------
# Pure-JAX reference.  matmul_dtype=bf16 emulates the kernel's MXU-operand casts
# ("matched precision"); matmul_dtype=f32 is the exact PyTorch-fp32 semantics.
# ----------------------------------------------------------------------------
def reference_forward(x, h0, c0, ctx, srcmask, params_list, matmul_dtype=jnp.float32):
    H = h0.shape[1]

    def mm(a, b):
        return jnp.dot(a.astype(matmul_dtype), b.astype(matmul_dtype),
                       preferred_element_type=jnp.float32)

    def emu(a):  # emulate rounding an MXU operand
        return a.astype(matmul_dtype).astype(jnp.float32)

    def layer_ref(x_btd, params):
        w_ih, w_hh, b, w_in, w_out = params
        B, T, _ = x_btd.shape
        h, c = h0, c0
        outs = []
        for t in range(T):
            xt = x_btd[:, t, :]
            gates = mm(xt, w_ih) + mm(h, w_hh) + b
            i = jax.nn.sigmoid(gates[:, :H])
            f = jax.nn.sigmoid(gates[:, H:2 * H])
            g = jnp.tanh(gates[:, 2 * H:3 * H])
            o = jax.nn.sigmoid(gates[:, 3 * H:])
            c = f * c + i * g
            hy = o * jnp.tanh(c)
            proj = mm(hy, w_in)
            scores = jnp.einsum("bsh,bh->bs", emu(ctx), proj)
            scores = jnp.where(srcmask, -1e30, scores)
            probs = jax.nn.softmax(scores, axis=-1)
            weighted = jnp.einsum("bs,bsh->bh", emu(probs), emu(ctx))
            h_tilde = jnp.tanh(mm(jnp.concatenate([weighted, hy], axis=1), w_out))
            h = h_tilde
            outs.append(h_tilde)
        return jnp.stack(outs, axis=1), h, c

    inp = x
    hs, cs = [], []
    for params in params_list:
        out, hT, cT = layer_ref(inp, params)
        inp = out
        hs.append(hT)
        cs.append(cT)
    return inp, jnp.stack(hs), jnp.stack(cs)


if __name__ == "__main__":
    # config: emb_dim=32, tgt_hidden_dim=32, tgt_layers=2, attention=True, dropout=0.0
    B, T, S = 8, 8, 16
    E, H, L = 32, 32, 2

    key = jax.random.PRNGKey(0)
    k_x, k_h, k_c, k_ctx, k_p = jax.random.split(key, 5)
    x = jax.random.normal(k_x, (B, T, E), jnp.float32)
    h0 = jax.random.normal(k_h, (B, H), jnp.float32)
    c0 = jax.random.normal(k_c, (B, H), jnp.float32)
    ctx = jax.random.normal(k_ctx, (B, S, H), jnp.float32)
    srcmask = jnp.broadcast_to(jnp.arange(S) >= (S - 4), (B, S))  # True == padded/masked

    pkeys = jax.random.split(k_p, L)
    params_list = [init_layer_params(pkeys[0], E, H),
                   init_layer_params(pkeys[1], H, H)]

    forward = jax.jit(stacked_attention_lstm)
    output, (h_final, c_final) = forward(x, h0, c0, ctx, srcmask, params_list)
    jax.block_until_ready((output, h_final, c_final))

    assert output.shape == (B, T, H)
    assert h_final.shape == (L, B, H) and c_final.shape == (L, B, H)

    # 1) Matched-precision reference (bf16 MXU operands like the kernel, different
    #    factorization): validates the algebraic rewrites (hoisted ctx@W_in, scattered
    #    softmax, merged matmuls, tanh-only gates, approx reciprocal).  Tolerance
    #    absorbs bf16 rounding-pattern differences amplified over the T*L recurrence.
    ref_out, ref_h, ref_c = reference_forward(
        x, h0, c0, ctx, srcmask, params_list, matmul_dtype=jnp.bfloat16)
    assert jnp.allclose(output, ref_out, atol=5e-2, rtol=5e-2)
    assert jnp.allclose(h_final, ref_h, atol=5e-2, rtol=5e-2)
    assert jnp.allclose(c_final, ref_c, atol=5e-2, rtol=5e-2)

    # 2) Full-fp32 reference (PyTorch semantics): coarse bound on total bf16 drift.
    ref_out32, ref_h32, ref_c32 = reference_forward(
        x, h0, c0, ctx, srcmask, params_list, matmul_dtype=jnp.float32)
    assert jnp.allclose(output, ref_out32, atol=2e-1, rtol=2e-1)
    assert jnp.allclose(h_final, ref_h32, atol=2e-1, rtol=2e-1)
    assert jnp.allclose(c_final, ref_c32, atol=2e-1, rtol=2e-1)

    print("KERNEL_OK")
</pallas_src>

<mosaic_0001>
module attributes {stable_mosaic.version = 11 : i64} {
  func.func @kernel(%arg0: memref<8x8x128xf32, #tpu.memory_space<vmem>>, %arg1: memref<8x32xf32, #tpu.memory_space<vmem>>, %arg2: memref<8x32xf32, #tpu.memory_space<vmem>>, %arg3: memref<128x32xbf16, #tpu.memory_space<vmem>>, %arg4: memref<8x128xf32, #tpu.memory_space<vmem>>, %arg5: memref<32x128xbf16, #tpu.memory_space<vmem>>, %arg6: memref<32x128xbf16, #tpu.memory_space<vmem>>, %arg7: memref<64x32xbf16, #tpu.memory_space<vmem>>, %arg8: memref<64x128xbf16, #tpu.memory_space<vmem>>, %arg9: memref<1x128xf32, #tpu.memory_space<vmem>>, %arg10: memref<32x128xbf16, #tpu.memory_space<vmem>>, %arg11: memref<64x32xbf16, #tpu.memory_space<vmem>>, %arg12: memref<8x8x32xf32, #tpu.memory_space<vmem>>, %arg13: memref<2x8x32xf32, #tpu.memory_space<vmem>>, %arg14: memref<2x8x32xf32, #tpu.memory_space<vmem>>) attributes {dimension_semantics = [], scalar_prefetch = 0 : i64, scratch_operands = 0 : i64, tpu.core_type = #tpu.core_type<tc>} {
    %c0 = arith.constant 0 : index
    %c0_0 = arith.constant 0 : index
    %0 = vector.load %arg1[%c0, %c0_0] : memref<8x32xf32, #tpu.memory_space<vmem>>, vector<8x32xf32>
    %c0_1 = arith.constant 0 : index
    %c0_2 = arith.constant 0 : index
    %1 = vector.load %arg2[%c0_1, %c0_2] : memref<8x32xf32, #tpu.memory_space<vmem>>, vector<8x32xf32>
    %c0_3 = arith.constant 0 : index
    %c0_4 = arith.constant 0 : index
    %c0_5 = arith.constant 0 : index
    %2 = vector.load %arg0[%c0_3, %c0_4, %c0_5] : memref<8x8x128xf32, #tpu.memory_space<vmem>>, vector<1x8x128xf32>
    %3 = vector.shape_cast %2 : vector<1x8x128xf32> to vector<8x128xf32>
    %4 = arith.truncf %0 : vector<8x32xf32> to vector<8x32xbf16>
    %c0_6 = arith.constant 0 : index
    %c0_7 = arith.constant 0 : index
    %5 = vector.load %arg5[%c0_6, %c0_7] : memref<32x128xbf16, #tpu.memory_space<vmem>>, vector<32x128xbf16>
    %cst = arith.constant dense<0.000000e+00> : vector<8x128xf32>
    %6 = tpu.matmul %4, %5, %cst {dimension_numbers = #tpu.dot_dimension_numbers<[1], [0], [0], [1], [0, 0, 1, 1], [], []>} : vector<8x32xbf16>, vector<32x128xbf16>, vector<8x128xf32> -> vector<8x128xf32>
    %7 = arith.addf %3, %6 : vector<8x128xf32>
    %8 = math.tanh %7 : vector<8x128xf32>
    %cst_8 = arith.constant 5.000000e-01 : f32
    %9 = vector.broadcast %cst_8 : f32 to vector<8x128xf32>
    %10 = arith.mulf %9, %8 : vector<8x128xf32>
    %cst_9 = arith.constant 5.000000e-01 : f32
    %11 = vector.broadcast %cst_9 : f32 to vector<8x128xf32>
    %12 = arith.addf %10, %11 : vector<8x128xf32>
    %13 = vector.extract_strided_slice %12 {offsets = [0, 0], sizes = [8, 32], strides = [1, 1]} : vector<8x128xf32> to vector<8x32xf32>
    %14 = vector.extract_strided_slice %12 {offsets = [0, 32], sizes = [8, 32], strides = [1, 1]} : vector<8x128xf32> to vector<8x32xf32>
    %15 = vector.extract_strided_slice %12 {offsets = [0, 96], sizes = [8, 32], strides = [1, 1]} : vector<8x128xf32> to vector<8x32xf32>
    %16 = vector.extract_strided_slice %8 {offsets = [0, 64], sizes = [8, 32], strides = [1, 1]} : vector<8x128xf32> to vector<8x32xf32>
    %17 = arith.mulf %14, %1 : vector<8x32xf32>
    %18 = arith.mulf %13, %16 : vector<8x32xf32>
    %19 = arith.addf %17, %18 : vector<8x32xf32>
    %20 = math.tanh %19 : vector<8x32xf32>
    %21 = arith.mulf %15, %20 : vector<8x32xf32>
    %22 = arith.truncf %21 : vector<8x32xf32> to vector<8x32xbf16>
    %c0_10 = arith.constant 0 : index
    %c0_11 = arith.constant 0 : index
    %23 = vector.load %arg6[%c0_10, %c0_11] : memref<32x128xbf16, #tpu.memory_space<vmem>>, vector<32x128xbf16>
    %cst_12 = arith.constant dense<0.000000e+00> : vector<8x128xf32>
    %24 = tpu.matmul %22, %23, %cst_12 {dimension_numbers = #tpu.dot_dimension_numbers<[1], [0], [0], [1], [0, 0, 1, 1], [], []>} : vector<8x32xbf16>, vector<32x128xbf16>, vector<8x128xf32> -> vector<8x128xf32>
    %c0_13 = arith.constant 0 : index
    %c0_14 = arith.constant 0 : index
    %25 = vector.load %arg4[%c0_13, %c0_14] : memref<8x128xf32, #tpu.memory_space<vmem>>, vector<8x128xf32>
    %26 = arith.addf %24, %25 : vector<8x128xf32>
    %cst_15 = arith.constant dense<0xFF800000> : vector<8xf32>
    %27 = vector.multi_reduction <maximumf>, %26, %cst_15 [1] : vector<8x128xf32> to vector<8xf32>
    %28 = vector.shape_cast %27 : vector<8xf32> to vector<8x1xf32>
    %29 = vector.broadcast %28 : vector<8x1xf32> to vector<8x128xf32>
    %30 = arith.subf %26, %29 : vector<8x128xf32>
    %31 = math.exp %30 : vector<8x128xf32>
    %32 = arith.truncf %31 : vector<8x128xf32> to vector<8x128xbf16>
    %c0_16 = arith.constant 0 : index
    %c0_17 = arith.constant 0 : index
    %33 = vector.load %arg3[%c0_16, %c0_17] : memref<128x32xbf16, #tpu.memory_space<vmem>>, vector<128x32xbf16>
    %cst_18 = arith.constant dense<0.000000e+00> : vector<8x32xf32>
    %34 = tpu.matmul %32, %33, %cst_18 {dimension_numbers = #tpu.dot_dimension_numbers<[1], [0], [0], [1], [0, 0, 1, 1], [], []>} : vector<8x128xbf16>, vector<128x32xbf16>, vector<8x32xf32> -> vector<8x32xf32>
    %cst_19 = arith.constant dense<0.000000e+00> : vector<8xf32>
    %35 = vector.multi_reduction <add>, %31, %cst_19 [1] : vector<8x128xf32> to vector<8xf32>
    %36 = vector.shape_cast %35 : vector<8xf32> to vector<8x1xf32>
    %37 = tpu.reciprocal %36 {approx = true} : vector<8x1xf32> -> vector<8x1xf32>
    %38 = vector.broadcast %37 : vector<8x1xf32> to vector<8x32xf32>
    %39 = arith.mulf %34, %38 : vector<8x32xf32>
    %40 = tpu.concatenate %39, %21 in 1 : vector<8x32xf32>, vector<8x32xf32> -> vector<8x64xf32>
    %41 = arith.truncf %40 : vector<8x64xf32> to vector<8x64xbf16>
    %c0_20 = arith.constant 0 : index
    %c0_21 = arith.constant 0 : index
    %42 = vector.load %arg7[%c0_20, %c0_21] : memref<64x32xbf16, #tpu.memory_space<vmem>>, vector<64x32xbf16>
    %cst_22 = arith.constant dense<0.000000e+00> : vector<8x32xf32>
    %43 = tpu.matmul %41, %42, %cst_22 {dimension_numbers = #tpu.dot_dimension_numbers<[1], [0], [0], [1], [0, 0, 1, 1], [], []>} : vector<8x64xbf16>, vector<64x32xbf16>, vector<8x32xf32> -> vector<8x32xf32>
    %44 = math.tanh %43 : vector<8x32xf32>
    %45 = tpu.concatenate %44, %0 in 1 : vector<8x32xf32>, vector<8x32xf32> -> vector<8x64xf32>
    %46 = arith.truncf %45 : vector<8x64xf32> to vector<8x64xbf16>
    %c0_23 = arith.constant 0 : index
    %c0_24 = arith.constant 0 : index
    %47 = vector.load %arg8[%c0_23, %c0_24] : memref<64x128xbf16, #tpu.memory_space<vmem>>, vector<64x128xbf16>
    %cst_25 = arith.constant dense<0.000000e+00> : vector<8x128xf32>
    %48 = tpu.matmul %46, %47, %cst_25 {dimension_numbers = #tpu.dot_dimension_numbers<[1], [0], [0], [1], [0, 0, 1, 1], [], []>} : vector<8x64xbf16>, vector<64x128xbf16>, vector<8x128xf32> -> vector<8x128xf32>
    %c0_26 = arith.constant 0 : index
    %c0_27 = arith.constant 0 : index
    %49 = vector.load %arg9[%c0_26, %c0_27] : memref<1x128xf32, #tpu.memory_space<vmem>>, vector<1x128xf32>
    %50 = vector.broadcast %49 : vector<1x128xf32> to vector<8x128xf32>
    %51 = arith.addf %48, %50 : vector<8x128xf32>
    %52 = math.tanh %51 : vector<8x128xf32>
    %cst_28 = arith.constant 5.000000e-01 : f32
    %53 = vector.broadcast %cst_28 : f32 to vector<8x128xf32>
    %54 = arith.mulf %53, %52 : vector<8x128xf32>
    %cst_29 = arith.constant 5.000000e-01 : f32
    %55 = vector.broadcast %cst_29 : f32 to vector<8x128xf32>
    %56 = arith.addf %54, %55 : vector<8x128xf32>
    %57 = vector.extract_strided_slice %56 {offsets = [0, 0], sizes = [8, 32], strides = [1, 1]} : vector<8x128xf32> to vector<8x32xf32>
    %58 = vector.extract_strided_slice %56 {offsets = [0, 32], sizes = [8, 32], strides = [1, 1]} : vector<8x128xf32> to vector<8x32xf32>
    %59 = vector.extract_strided_slice %56 {offsets = [0, 96], sizes = [8, 32], strides = [1, 1]} : vector<8x128xf32> to vector<8x32xf32>
    %60 = vector.extract_strided_slice %52 {offsets = [0, 64], sizes = [8, 32], strides = [1, 1]} : vector<8x128xf32> to vector<8x32xf32>
    %61 = arith.mulf %58, %1 : vector<8x32xf32>
    %62 = arith.mulf %57, %60 : vector<8x32xf32>
    %63 = arith.addf %61, %62 : vector<8x32xf32>
    %64 = math.tanh %63 : vector<8x32xf32>
    %65 = arith.mulf %59, %64 : vector<8x32xf32>
    %66 = arith.truncf %65 : vector<8x32xf32> to vector<8x32xbf16>
    %c0_30 = arith.constant 0 : index
    %c0_31 = arith.constant 0 : index
    %67 = vector.load %arg10[%c0_30, %c0_31] : memref<32x128xbf16, #tpu.memory_space<vmem>>, vector<32x128xbf16>
    %cst_32 = arith.constant dense<0.000000e+00> : vector<8x128xf32>
    %68 = tpu.matmul %66, %67, %cst_32 {dimension_numbers = #tpu.dot_dimension_numbers<[1], [0], [0], [1], [0, 0, 1, 1], [], []>} : vector<8x32xbf16>, vector<32x128xbf16>, vector<8x128xf32> -> vector<8x128xf32>
    %c0_33 = arith.constant 0 : index
    %c0_34 = arith.constant 0 : index
    %69 = vector.load %arg4[%c0_33, %c0_34] : memref<8x128xf32, #tpu.memory_space<vmem>>, vector<8x128xf32>
    %70 = arith.addf %68, %69 : vector<8x128xf32>
    %cst_35 = arith.constant dense<0xFF800000> : vector<8xf32>
    %71 = vector.multi_reduction <maximumf>, %70, %cst_35 [1] : vector<8x128xf32> to vector<8xf32>
    %72 = vector.shape_cast %71 : vector<8xf32> to vector<8x1xf32>
    %73 = vector.broadcast %72 : vector<8x1xf32> to vector<8x128xf32>
    %74 = arith.subf %70, %73 : vector<8x128xf32>
    %75 = math.exp %74 : vector<8x128xf32>
    %76 = arith.truncf %75 : vector<8x128xf32> to vector<8x128xbf16>
    %c0_36 = arith.constant 0 : index
    %c0_37 = arith.constant 0 : index
    %77 = vector.load %arg3[%c0_36, %c0_37] : memref<128x32xbf16, #tpu.memory_space<vmem>>, vector<128x32xbf16>
    %cst_38 = arith.constant dense<0.000000e+00> : vector<8x32xf32>
    %78 = tpu.matmul %76, %77, %cst_38 {dimension_numbers = #tpu.dot_dimension_numbers<[1], [0], [0], [1], [0, 0, 1, 1], [], []>} : vector<8x128xbf16>, vector<128x32xbf16>, vector<8x32xf32> -> vector<8x32xf32>
    %cst_39 = arith.constant dense<0.000000e+00> : vector<8xf32>
    %79 = vector.multi_reduction <add>, %75, %cst_39 [1] : vector<8x128xf32> to vector<8xf32>
    %80 = vector.shape_cast %79 : vector<8xf32> to vector<8x1xf32>
    %81 = tpu.reciprocal %80 {approx = true} : vector<8x1xf32> -> vector<8x1xf32>
    %82 = vector.broadcast %81 : vector<8x1xf32> to vector<8x32xf32>
    %83 = arith.mulf %78, %82 : vector<8x32xf32>
    %84 = tpu.concatenate %83, %65 in 1 : vector<8x32xf32>, vector<8x32xf32> -> vector<8x64xf32>
    %85 = arith.truncf %84 : vector<8x64xf32> to vector<8x64xbf16>
    %c0_40 = arith.constant 0 : index
    %c0_41 = arith.constant 0 : index
    %86 = vector.load %arg11[%c0_40, %c0_41] : memref<64x32xbf16, #tpu.memory_space<vmem>>, vector<64x32xbf16>
    %cst_42 = arith.constant dense<0.000000e+00> : vector<8x32xf32>
    %87 = tpu.matmul %85, %86, %cst_42 {dimension_numbers = #tpu.dot_dimension_numbers<[1], [0], [0], [1], [0, 0, 1, 1], [], []>} : vector<8x64xbf16>, vector<64x32xbf16>, vector<8x32xf32> -> vector<8x32xf32>
    %88 = math.tanh %87 : vector<8x32xf32>
    %c0_43 = arith.constant 0 : index
    %c0_44 = arith.constant 0 : index
    %c0_45 = arith.constant 0 : index
    %89 = vector.load %arg12[%c0_43, %c0_44, %c0_45] : memref<8x8x32xf32, #tpu.memory_space<vmem>>, vector<1x8x32xf32>
    %90 = vector.shape_cast %89 : vector<1x8x32xf32> to vector<8x32xf32>
    %91 = vector.shape_cast %88 : vector<8x32xf32> to vector<1x8x32xf32>
    tpu.vector_store %arg12[%c0_43, %c0_44, %c0_45], %91 {strides = array<i32>} : memref<8x8x32xf32, #tpu.memory_space<vmem>>, vector<1x8x32xf32>,
    %c1 = arith.constant 1 : index
    %c0_46 = arith.constant 0 : index
    %c0_47 = arith.constant 0 : index
    %92 = vector.load %arg0[%c1, %c0_46, %c0_47] : memref<8x8x128xf32, #tpu.memory_space<vmem>>, vector<1x8x128xf32>
    %93 = vector.shape_cast %92 : vector<1x8x128xf32> to vector<8x128xf32>
    %94 = arith.truncf %44 : vector<8x32xf32> to vector<8x32xbf16>
    %c0_48 = arith.constant 0 : index
    %c0_49 = arith.constant 0 : index
    %95 = vector.load %arg5[%c0_48, %c0_49] : memref<32x128xbf16, #tpu.memory_space<vmem>>, vector<32x128xbf16>
    %cst_50 = arith.constant dense<0.000000e+00> : vector<8x128xf32>
    %96 = tpu.matmul %94, %95, %cst_50 {dimension_numbers = #tpu.dot_dimension_numbers<[1], [0], [0], [1], [0, 0, 1, 1], [], []>} : vector<8x32xbf16>, vector<32x128xbf16>, vector<8x128xf32> -> vector<8x128xf32>
    %97 = arith.addf %93, %96 : vector<8x128xf32>
    %98 = math.tanh %97 : vector<8x128xf32>
    %cst_51 = arith.constant 5.000000e-01 : f32
    %99 = vector.broadcast %cst_51 : f32 to vector<8x128xf32>
    %100 = arith.mulf %99, %98 : vector<8x128xf32>
    %cst_52 = arith.constant 5.000000e-01 : f32
    %101 = vector.broadcast %cst_52 : f32 to vector<8x128xf32>
    %102 = arith.addf %100, %101 : vector<8x128xf32>
    %103 = vector.extract_strided_slice %102 {offsets = [0, 0], sizes = [8, 32], strides = [1, 1]} : vector<8x128xf32> to vector<8x32xf32>
    %104 = vector.extract_strided_slice %102 {offsets = [0, 32], sizes = [8, 32], strides = [1, 1]} : vector<8x128xf32> to vector<8x32xf32>
    %105 = vector.extract_strided_slice %102 {offsets = [0, 96], sizes = [8, 32], strides = [1, 1]} : vector<8x128xf32> to vector<8x32xf32>
    %106 = vector.extract_strided_slice %98 {offsets = [0, 64], sizes = [8, 32], strides = [1, 1]} : vector<8x128xf32> to vector<8x32xf32>
    %107 = arith.mulf %104, %19 : vector<8x32xf32>
    %108 = arith.mulf %103, %106 : vector<8x32xf32>
    %109 = arith.addf %107, %108 : vector<8x32xf32>
    %110 = math.tanh %109 : vector<8x32xf32>
    %111 = arith.mulf %105, %110 : vector<8x32xf32>
    %112 = arith.truncf %111 : vector<8x32xf32> to vector<8x32xbf16>
    %c0_53 = arith.constant 0 : index
    %c0_54 = arith.constant 0 : index
    %113 = vector.load %arg6[%c0_53, %c0_54] : memref<32x128xbf16, #tpu.memory_space<vmem>>, vector<32x128xbf16>
    %cst_55 = arith.constant dense<0.000000e+00> : vector<8x128xf32>
    %114 = tpu.matmul %112, %113, %cst_55 {dimension_numbers = #tpu.dot_dimension_numbers<[1], [0], [0], [1], [0, 0, 1, 1], [], []>} : vector<8x32xbf16>, vector<32x128xbf16>, vector<8x128xf32> -> vector<8x128xf32>
    %c0_56 = arith.constant 0 : index
    %c0_57 = arith.constant 0 : index
    %115 = vector.load %arg4[%c0_56, %c0_57] : memref<8x128xf32, #tpu.memory_space<vmem>>, vector<8x128xf32>
    %116 = arith.addf %114, %115 : vector<8x128xf32>
    %cst_58 = arith.constant dense<0xFF800000> : vector<8xf32>
    %117 = vector.multi_reduction <maximumf>, %116, %cst_58 [1] : vector<8x128xf32> to vector<8xf32>
    %118 = vector.shape_cast %117 : vector<8xf32> to vector<8x1xf32>
    %119 = vector.broadcast %118 : vector<8x1xf32> to vector<8x128xf32>
    %120 = arith.subf %116, %119 : vector<8x128xf32>
    %121 = math.exp %120 : vector<8x128xf32>
    %122 = arith.truncf %121 : vector<8x128xf32> to vector<8x128xbf16>
    %c0_59 = arith.constant 0 : index
    %c0_60 = arith.constant 0 : index
    %123 = vector.load %arg3[%c0_59, %c0_60] : memref<128x32xbf16, #tpu.memory_space<vmem>>, vector<128x32xbf16>
    %cst_61 = arith.constant dense<0.000000e+00> : vector<8x32xf32>
    %124 = tpu.matmul %122, %123, %cst_61 {dimension_numbers = #tpu.dot_dimension_numbers<[1], [0], [0], [1], [0, 0, 1, 1], [], []>} : vector<8x128xbf16>, vector<128x32xbf16>, vector<8x32xf32> -> vector<8x32xf32>
    %cst_62 = arith.constant dense<0.000000e+00> : vector<8xf32>
    %125 = vector.multi_reduction <add>, %121, %cst_62 [1] : vector<8x128xf32> to vector<8xf32>
    %126 = vector.shape_cast %125 : vector<8xf32> to vector<8x1xf32>
    %127 = tpu.reciprocal %126 {approx = true} : vector<8x1xf32> -> vector<8x1xf32>
    %128 = vector.broadcast %127 : vector<8x1xf32> to vector<8x32xf32>
    %129 = arith.mulf %124, %128 : vector<8x32xf32>
    %130 = tpu.concatenate %129, %111 in 1 : vector<8x32xf32>, vector<8x32xf32> -> vector<8x64xf32>
    %131 = arith.truncf %130 : vector<8x64xf32> to vector<8x64xbf16>
    %c0_63 = arith.constant 0 : index
    %c0_64 = arith.constant 0 : index
    %132 = vector.load %arg7[%c0_63, %c0_64] : memref<64x32xbf16, #tpu.memory_space<vmem>>, vector<64x32xbf16>
    %cst_65 = arith.constant dense<0.000000e+00> : vector<8x32xf32>
    %133 = tpu.matmul %131, %132, %cst_65 {dimension_numbers = #tpu.dot_dimension_numbers<[1], [0], [0], [1], [0, 0, 1, 1], [], []>} : vector<8x64xbf16>, vector<64x32xbf16>, vector<8x32xf32> -> vector<8x32xf32>
    %134 = math.tanh %133 : vector<8x32xf32>
    %135 = tpu.concatenate %134, %88 in 1 : vector<8x32xf32>, vector<8x32xf32> -> vector<8x64xf32>
    %136 = arith.truncf %135 : vector<8x64xf32> to vector<8x64xbf16>
    %c0_66 = arith.constant 0 : index
    %c0_67 = arith.constant 0 : index
    %137 = vector.load %arg8[%c0_66, %c0_67] : memref<64x128xbf16, #tpu.memory_space<vmem>>, vector<64x128xbf16>
    %cst_68 = arith.constant dense<0.000000e+00> : vector<8x128xf32>
    %138 = tpu.matmul %136, %137, %cst_68 {dimension_numbers = #tpu.dot_dimension_numbers<[1], [0], [0], [1], [0, 0, 1, 1], [], []>} : vector<8x64xbf16>, vector<64x128xbf16>, vector<8x128xf32> -> vector<8x128xf32>
    %c0_69 = arith.constant 0 : index
    %c0_70 = arith.constant 0 : index
    %139 = vector.load %arg9[%c0_69, %c0_70] : memref<1x128xf32, #tpu.memory_space<vmem>>, vector<1x128xf32>
    %140 = vector.broadcast %139 : vector<1x128xf32> to vector<8x128xf32>
    %141 = arith.addf %138, %140 : vector<8x128xf32>
    %142 = math.tanh %141 : vector<8x128xf32>
    %cst_71 = arith.constant 5.000000e-01 : f32
    %143 = vector.broadcast %cst_71 : f32 to vector<8x128xf32>
    %144 = arith.mulf %143, %142 : vector<8x128xf32>
    %cst_72 = arith.constant 5.000000e-01 : f32
    %145 = vector.broadcast %cst_72 : f32 to vector<8x128xf32>
    %146 = arith.addf %144, %145 : vector<8x128xf32>
    %147 = vector.extract_strided_slice %146 {offsets = [0, 0], sizes = [8, 32], strides = [1, 1]} : vector<8x128xf32> to vector<8x32xf32>
    %148 = vector.extract_strided_slice %146 {offsets = [0, 32], sizes = [8, 32], strides = [1, 1]} : vector<8x128xf32> to vector<8x32xf32>
    %149 = vector.extract_strided_slice %146 {offsets = [0, 96], sizes = [8, 32], strides = [1, 1]} : vector<8x128xf32> to vector<8x32xf32>
    %150 = vector.extract_strided_slice %142 {offsets = [0, 64], sizes = [8, 32], strides = [1, 1]} : vector<8x128xf32> to vector<8x32xf32>
    %151 = arith.mulf %148, %63 : vector<8x32xf32>
    %152 = arith.mulf %147, %150 : vector<8x32xf32>
    %153 = arith.addf %151, %152 : vector<8x32xf32>
    %154 = math.tanh %153 : vector<8x32xf32>
    %155 = arith.mulf %149, %154 : vector<8x32xf32>
    %156 = arith.truncf %155 : vector<8x32xf32> to vector<8x32xbf16>
    %c0_73 = arith.constant 0 : index
    %c0_74 = arith.constant 0 : index
    %157 = vector.load %arg10[%c0_73, %c0_74] : memref<32x128xbf16, #tpu.memory_space<vmem>>, vector<32x128xbf16>
    %cst_75 = arith.constant dense<0.000000e+00> : vector<8x128xf32>
    %158 = tpu.matmul %156, %157, %cst_75 {dimension_numbers = #tpu.dot_dimension_numbers<[1], [0], [0], [1], [0, 0, 1, 1], [], []>} : vector<8x32xbf16>, vector<32x128xbf16>, vector<8x128xf32> -> vector<8x128xf32>
    %c0_76 = arith.constant 0 : index
    %c0_77 = arith.constant 0 : index
    %159 = vector.load %arg4[%c0_76, %c0_77] : memref<8x128xf32, #tpu.memory_space<vmem>>, vector<8x128xf32>
    %160 = arith.addf %158, %159 : vector<8x128xf32>
    %cst_78 = arith.constant dense<0xFF800000> : vector<8xf32>
    %161 = vector.multi_reduction <maximumf>, %160, %cst_78 [1] : vector<8x128xf32> to vector<8xf32>
    %162 = vector.shape_cast %161 : vector<8xf32> to vector<8x1xf32>
    %163 = vector.broadcast %162 : vector<8x1xf32> to vector<8x128xf32>
    %164 = arith.subf %160, %163 : vector<8x128xf32>
    %165 = math.exp %164 : vector<8x128xf32>
    %166 = arith.truncf %165 : vector<8x128xf32> to vector<8x128xbf16>
    %c0_79 = arith.constant 0 : index
    %c0_80 = arith.constant 0 : index
    %167 = vector.load %arg3[%c0_79, %c0_80] : memref<128x32xbf16, #tpu.memory_space<vmem>>, vector<128x32xbf16>
    %cst_81 = arith.constant dense<0.000000e+00> : vector<8x32xf32>
    %168 = tpu.matmul %166, %167, %cst_81 {dimension_numbers = #tpu.dot_dimension_numbers<[1], [0], [0], [1], [0, 0, 1, 1], [], []>} : vector<8x128xbf16>, vector<128x32xbf16>, vector<8x32xf32> -> vector<8x32xf32>
    %cst_82 = arith.constant dense<0.000000e+00> : vector<8xf32>
    %169 = vector.multi_reduction <add>, %165, %cst_82 [1] : vector<8x128xf32> to vector<8xf32>
    %170 = vector.shape_cast %169 : vector<8xf32> to vector<8x1xf32>
    %171 = tpu.reciprocal %170 {approx = true} : vector<8x1xf32> -> vector<8x1xf32>
    %172 = vector.broadcast %171 : vector<8x1xf32> to vector<8x32xf32>
    %173 = arith.mulf %168, %172 : vector<8x32xf32>
    %174 = tpu.concatenate %173, %155 in 1 : vector<8x32xf32>, vector<8x32xf32> -> vector<8x64xf32>
    %175 = arith.truncf %174 : vector<8x64xf32> to vector<8x64xbf16>
    %c0_83 = arith.constant 0 : index
    %c0_84 = arith.constant 0 : index
    %176 = vector.load %arg11[%c0_83, %c0_84] : memref<64x32xbf16, #tpu.memory_space<vmem>>, vector<64x32xbf16>
    %cst_85 = arith.constant dense<0.000000e+00> : vector<8x32xf32>
    %177 = tpu.matmul %175, %176, %cst_85 {dimension_numbers = #tpu.dot_dimension_numbers<[1], [0], [0], [1], [0, 0, 1, 1], [], []>} : vector<8x64xbf16>, vector<64x32xbf16>, vector<8x32xf32> -> vector<8x32xf32>
    %178 = math.tanh %177 : vector<8x32xf32>
    %c1_86 = arith.constant 1 : index
    %c0_87 = arith.constant 0 : index
    %c0_88 = arith.constant 0 : index
    %179 = vector.load %arg12[%c1_86, %c0_87, %c0_88] : memref<8x8x32xf32, #tpu.memory_space<vmem>>, vector<1x8x32xf32>
    %180 = vector.shape_cast %179 : vector<1x8x32xf32> to vector<8x32xf32>
    %181 = vector.shape_cast %178 : vector<8x32xf32> to vector<1x8x32xf32>
    tpu.vector_store %arg12[%c1_86, %c0_87, %c0_88], %181 {strides = array<i32>} : memref<8x8x32xf32, #tpu.memory_space<vmem>>, vector<1x8x32xf32>,
    %c2 = arith.constant 2 : index
    %c0_89 = arith.constant 0 : index
    %c0_90 = arith.constant 0 : index
    %182 = vector.load %arg0[%c2, %c0_89, %c0_90] : memref<8x8x128xf32, #tpu.memory_space<vmem>>, vector<1x8x128xf32>
    %183 = vector.shape_cast %182 : vector<1x8x128xf32> to vector<8x128xf32>
    %184 = arith.truncf %134 : vector<8x32xf32> to vector<8x32xbf16>
    %c0_91 = arith.constant 0 : index
    %c0_92 = arith.constant 0 : index
    %185 = vector.load %arg5[%c0_91, %c0_92] : memref<32x128xbf16, #tpu.memory_space<vmem>>, vector<32x128xbf16>
    %cst_93 = arith.constant dense<0.000000e+00> : vector<8x128xf32>
    %186 = tpu.matmul %184, %185, %cst_93 {dimension_numbers = #tpu.dot_dimension_numbers<[1], [0], [0], [1], [0, 0, 1, 1], [], []>} : vector<8x32xbf16>, vector<32x128xbf16>, vector<8x128xf32> -> vector<8x128xf32>
    %187 = arith.addf %183, %186 : vector<8x128xf32>
    %188 = math.tanh %187 : vector<8x128xf32>
    %cst_94 = arith.constant 5.000000e-01 : f32
    %189 = vector.broadcast %cst_94 : f32 to vector<8x128xf32>
    %190 = arith.mulf %189, %188 : vector<8x128xf32>
    %cst_95 = arith.constant 5.000000e-01 : f32
    %191 = vector.broadcast %cst_95 : f32 to vector<8x128xf32>
    %192 = arith.addf %190, %191 : vector<8x128xf32>
    %193 = vector.extract_strided_slice %192 {offsets = [0, 0], sizes = [8, 32], strides = [1, 1]} : vector<8x128xf32> to vector<8x32xf32>
    %194 = vector.extract_strided_slice %192 {offsets = [0, 32], sizes = [8, 32], strides = [1, 1]} : vector<8x128xf32> to vector<8x32xf32>
    %195 = vector.extract_strided_slice %192 {offsets = [0, 96], sizes = [8, 32], strides = [1, 1]} : vector<8x128xf32> to vector<8x32xf32>
    %196 = vector.extract_strided_slice %188 {offsets = [0, 64], sizes = [8, 32], strides = [1, 1]} : vector<8x128xf32> to vector<8x32xf32>
    %197 = arith.mulf %194, %109 : vector<8x32xf32>
    %198 = arith.mulf %193, %196 : vector<8x32xf32>
    %199 = arith.addf %197, %198 : vector<8x32xf32>
    %200 = math.tanh %199 : vector<8x32xf32>
    %201 = arith.mulf %195, %200 : vector<8x32xf32>
    %202 = arith.truncf %201 : vector<8x32xf32> to vector<8x32xbf16>
    %c0_96 = arith.constant 0 : index
    %c0_97 = arith.constant 0 : index
    %203 = vector.load %arg6[%c0_96, %c0_97] : memref<32x128xbf16, #tpu.memory_space<vmem>>, vector<32x128xbf16>
    %cst_98 = arith.constant dense<0.000000e+00> : vector<8x128xf32>
    %204 = tpu.matmul %202, %203, %cst_98 {dimension_numbers = #tpu.dot_dimension_numbers<[1], [0], [0], [1], [0, 0, 1, 1], [], []>} : vector<8x32xbf16>, vector<32x128xbf16>, vector<8x128xf32> -> vector<8x128xf32>
    %c0_99 = arith.constant 0 : index
    %c0_100 = arith.constant 0 : index
    %205 = vector.load %arg4[%c0_99, %c0_100] : memref<8x128xf32, #tpu.memory_space<vmem>>, vector<8x128xf32>
    %206 = arith.addf %204, %205 : vector<8x128xf32>
    %cst_101 = arith.constant dense<0xFF800000> : vector<8xf32>
    %207 = vector.multi_reduction <maximumf>, %206, %cst_101 [1] : vector<8x128xf32> to vector<8xf32>
    %208 = vector.shape_cast %207 : vector<8xf32> to vector<8x1xf32>
    %209 = vector.broadcast %208 : vector<8x1xf32> to vector<8x128xf32>
    %210 = arith.subf %206, %209 : vector<8x128xf32>
    %211 = math.exp %210 : vector<8x128xf32>
    %212 = arith.truncf %211 : vector<8x128xf32> to vector<8x128xbf16>
    %c0_102 = arith.constant 0 : index
    %c0_103 = arith.constant 0 : index
    %213 = vector.load %arg3[%c0_102, %c0_103] : memref<128x32xbf16, #tpu.memory_space<vmem>>, vector<128x32xbf16>
    %cst_104 = arith.constant dense<0.000000e+00> : vector<8x32xf32>
    %214 = tpu.matmul %212, %213, %cst_104 {dimension_numbers = #tpu.dot_dimension_numbers<[1], [0], [0], [1], [0, 0, 1, 1], [], []>} : vector<8x128xbf16>, vector<128x32xbf16>, vector<8x32xf32> -> vector<8x32xf32>
    %cst_105 = arith.constant dense<0.000000e+00> : vector<8xf32>
    %215 = vector.multi_reduction <add>, %211, %cst_105 [1] : vector<8x128xf32> to vector<8xf32>
    %216 = vector.shape_cast %215 : vector<8xf32> to vector<8x1xf32>
    %217 = tpu.reciprocal %216 {approx = true} : vector<8x1xf32> -> vector<8x1xf32>
    %218 = vector.broadcast %217 : vector<8x1xf32> to vector<8x32xf32>
    %219 = arith.mulf %214, %218 : vector<8x32xf32>
    %220 = tpu.concatenate %219, %201 in 1 : vector<8x32xf32>, vector<8x32xf32> -> vector<8x64xf32>
    %221 = arith.truncf %220 : vector<8x64xf32> to vector<8x64xbf16>
    %c0_106 = arith.constant 0 : index
    %c0_107 = arith.constant 0 : index
    %222 = vector.load %arg7[%c0_106, %c0_107] : memref<64x32xbf16, #tpu.memory_space<vmem>>, vector<64x32xbf16>
    %cst_108 = arith.constant dense<0.000000e+00> : vector<8x32xf32>
    %223 = tpu.matmul %221, %222, %cst_108 {dimension_numbers = #tpu.dot_dimension_numbers<[1], [0], [0], [1], [0, 0, 1, 1], [], []>} : vector<8x64xbf16>, vector<64x32xbf16>, vector<8x32xf32> -> vector<8x32xf32>
    %224 = math.tanh %223 : vector<8x32xf32>
    %225 = tpu.concatenate %224, %178 in 1 : vector<8x32xf32>, vector<8x32xf32> -> vector<8x64xf32>
    %226 = arith.truncf %225 : vector<8x64xf32> to vector<8x64xbf16>
    %c0_109 = arith.constant 0 : index
    %c0_110 = arith.constant 0 : index
    %227 = vector.load %arg8[%c0_109, %c0_110] : memref<64x128xbf16, #tpu.memory_space<vmem>>, vector<64x128xbf16>
    %cst_111 = arith.constant dense<0.000000e+00> : vector<8x128xf32>
    %228 = tpu.matmul %226, %227, %cst_111 {dimension_numbers = #tpu.dot_dimension_numbers<[1], [0], [0], [1], [0, 0, 1, 1], [], []>} : vector<8x64xbf16>, vector<64x128xbf16>, vector<8x128xf32> -> vector<8x128xf32>
    %c0_112 = arith.constant 0 : index
    %c0_113 = arith.constant 0 : index
    %229 = vector.load %arg9[%c0_112, %c0_113] : memref<1x128xf32, #tpu.memory_space<vmem>>, vector<1x128xf32>
    %230 = vector.broadcast %229 : vector<1x128xf32> to vector<8x128xf32>
    %231 = arith.addf %228, %230 : vector<8x128xf32>
    %232 = math.tanh %231 : vector<8x128xf32>
    %cst_114 = arith.constant 5.000000e-01 : f32
    %233 = vector.broadcast %cst_114 : f32 to vector<8x128xf32>
    %234 = arith.mulf %233, %232 : vector<8x128xf32>
    %cst_115 = arith.constant 5.000000e-01 : f32
    %235 = vector.broadcast %cst_115 : f32 to vector<8x128xf32>
    %236 = arith.addf %234, %235 : vector<8x128xf32>
    %237 = vector.extract_strided_slice %236 {offsets = [0, 0], sizes = [8, 32], strides = [1, 1]} : vector<8x128xf32> to vector<8x32xf32>
    %238 = vector.extract_strided_slice %236 {offsets = [0, 32], sizes = [8, 32], strides = [1, 1]} : vector<8x128xf32> to vector<8x32xf32>
    %239 = vector.extract_strided_slice %236 {offsets = [0, 96], sizes = [8, 32], strides = [1, 1]} : vector<8x128xf32> to vector<8x32xf32>
    %240 = vector.extract_strided_slice %232 {offsets = [0, 64], sizes = [8, 32], strides = [1, 1]} : vector<8x128xf32> to vector<8x32xf32>
    %241 = arith.mulf %238, %153 : vector<8x32xf32>
    %242 = arith.mulf %237, %240 : vector<8x32xf32>
    %243 = arith.addf %241, %242 : vector<8x32xf32>
    %244 = math.tanh %243 : vector<8x32xf32>
    %245 = arith.mulf %239, %244 : vector<8x32xf32>
    %246 = arith.truncf %245 : vector<8x32xf32> to vector<8x32xbf16>
    %c0_116 = arith.constant 0 : index
    %c0_117 = arith.constant 0 : index
    %247 = vector.load %arg10[%c0_116, %c0_117] : memref<32x128xbf16, #tpu.memory_space<vmem>>, vector<32x128xbf16>
    %cst_118 = arith.constant dense<0.000000e+00> : vector<8x128xf32>
    %248 = tpu.matmul %246, %247, %cst_118 {dimension_numbers = #tpu.dot_dimension_numbers<[1], [0], [0], [1], [0, 0, 1, 1], [], []>} : vector<8x32xbf16>, vector<32x128xbf16>, vector<8x128xf32> -> vector<8x128xf32>
    %c0_119 = arith.constant 0 : index
    %c0_120 = arith.constant 0 : index
    %249 = vector.load %arg4[%c0_119, %c0_120] : memref<8x128xf32, #tpu.memory_space<vmem>>, vector<8x128xf32>
    %250 = arith.addf %248, %249 : vector<8x128xf32>
    %cst_121 = arith.constant dense<0xFF800000> : vector<8xf32>
    %251 = vector.multi_reduction <maximumf>, %250, %cst_121 [1] : vector<8x128xf32> to vector<8xf32>
    %252 = vector.shape_cast %251 : vector<8xf32> to vector<8x1xf32>
    %253 = vector.broadcast %252 : vector<8x1xf32> to vector<8x128xf32>
    %254 = arith.subf %250, %253 : vector<8x128xf32>
    %255 = math.exp %254 : vector<8x128xf32>
    %256 = arith.truncf %255 : vector<8x128xf32> to vector<8x128xbf16>
    %c0_122 = arith.constant 0 : index
    %c0_123 = arith.constant 0 : index
    %257 = vector.load %arg3[%c0_122, %c0_123] : memref<128x32xbf16, #tpu.memory_space<vmem>>, vector<128x32xbf16>
    %cst_124 = arith.constant dense<0.000000e+00> : vector<8x32xf32>
    %258 = tpu.matmul %256, %257, %cst_124 {dimension_numbers = #tpu.dot_dimension_numbers<[1], [0], [0], [1], [0, 0, 1, 1], [], []>} : vector<8x128xbf16>, vector<128x32xbf16>, vector<8x32xf32> -> vector<8x32xf32>
    %cst_125 = arith.constant dense<0.000000e+00> : vector<8xf32>
    %259 = vector.multi_reduction <add>, %255, %cst_125 [1] : vector<8x128xf32> to vector<8xf32>
    %260 = vector.shape_cast %259 : vector<8xf32> to vector<8x1xf32>
    %261 = tpu.reciprocal %260 {approx = true} : vector<8x1xf32> -> vector<8x1xf32>
    %262 = vector.broadcast %261 : vector<8x1xf32> to vector<8x32xf32>
    %263 = arith.mulf %258, %262 : vector<8x32xf32>
    %264 = tpu.concatenate %263, %245 in 1 : vector<8x32xf32>, vector<8x32xf32> -> vector<8x64xf32>
    %265 = arith.truncf %264 : vector<8x64xf32> to vector<8x64xbf16>
    %c0_126 = arith.constant 0 : index
    %c0_127 = arith.constant 0 : index
    %266 = vector.load %arg11[%c0_126, %c0_127] : memref<64x32xbf16, #tpu.memory_space<vmem>>, vector<64x32xbf16>
    %cst_128 = arith.constant dense<0.000000e+00> : vector<8x32xf32>
    %267 = tpu.matmul %265, %266, %cst_128 {dimension_numbers = #tpu.dot_dimension_numbers<[1], [0], [0], [1], [0, 0, 1, 1], [], []>} : vector<8x64xbf16>, vector<64x32xbf16>, vector<8x32xf32> -> vector<8x32xf32>
    %268 = math.tanh %267 : vector<8x32xf32>
    %c2_129 = arith.constant 2 : index
    %c0_130 = arith.constant 0 : index
    %c0_131 = arith.constant 0 : index
    %269 = vector.load %arg12[%c2_129, %c0_130, %c0_131] : memref<8x8x32xf32, #tpu.memory_space<vmem>>, vector<1x8x32xf32>
    %270 = vector.shape_cast %269 : vector<1x8x32xf32> to vector<8x32xf32>
    %271 = vector.shape_cast %268 : vector<8x32xf32> to vector<1x8x32xf32>
    tpu.vector_store %arg12[%c2_129, %c0_130, %c0_131], %271 {strides = array<i32>} : memref<8x8x32xf32, #tpu.memory_space<vmem>>, vector<1x8x32xf32>,
    %c3 = arith.constant 3 : index
    %c0_132 = arith.constant 0 : index
    %c0_133 = arith.constant 0 : index
    %272 = vector.load %arg0[%c3, %c0_132, %c0_133] : memref<8x8x128xf32, #tpu.memory_space<vmem>>, vector<1x8x128xf32>
    %273 = vector.shape_cast %272 : vector<1x8x128xf32> to vector<8x128xf32>
    %274 = arith.truncf %224 : vector<8x32xf32> to vector<8x32xbf16>
    %c0_134 = arith.constant 0 : index
    %c0_135 = arith.constant 0 : index
    %275 = vector.load %arg5[%c0_134, %c0_135] : memref<32x128xbf16, #tpu.memory_space<vmem>>, vector<32x128xbf16>
    %cst_136 = arith.constant dense<0.000000e+00> : vector<8x128xf32>
    %276 = tpu.matmul %274, %275, %cst_136 {dimension_numbers = #tpu.dot_dimension_numbers<[1], [0], [0], [1], [0, 0, 1, 1], [], []>} : vector<8x32xbf16>, vector<32x128xbf16>, vector<8x128xf32> -> vector<8x128xf32>
    %277 = arith.addf %273, %276 : vector<8x128xf32>
    %278 = math.tanh %277 : vector<8x128xf32>
    %cst_137 = arith.constant 5.000000e-01 : f32
    %279 = vector.broadcast %cst_137 : f32 to vector<8x128xf32>
    %280 = arith.mulf %279, %278 : vector<8x128xf32>
    %cst_138 = arith.constant 5.000000e-01 : f32
    %281 = vector.broadcast %cst_138 : f32 to vector<8x128xf32>
    %282 = arith.addf %280, %281 : vector<8x128xf32>
    %283 = vector.extract_strided_slice %282 {offsets = [0, 0], sizes = [8, 32], strides = [1, 1]} : vector<8x128xf32> to vector<8x32xf32>
    %284 = vector.extract_strided_slice %282 {offsets = [0, 32], sizes = [8, 32], strides = [1, 1]} : vector<8x128xf32> to vector<8x32xf32>
    %285 = vector.extract_strided_slice %282 {offsets = [0, 96], sizes = [8, 32], strides = [1, 1]} : vector<8x128xf32> to vector<8x32xf32>
    %286 = vector.extract_strided_slice %278 {offsets = [0, 64], sizes = [8, 32], strides = [1, 1]} : vector<8x128xf32> to vector<8x32xf32>
    %287 = arith.mulf %284, %199 : vector<8x32xf32>
    %288 = arith.mulf %283, %286 : vector<8x32xf32>
    %289 = arith.addf %287, %288 : vector<8x32xf32>
    %290 = math.tanh %289 : vector<8x32xf32>
    %291 = arith.mulf %285, %290 : vector<8x32xf32>
    %292 = arith.truncf %291 : vector<8x32xf32> to vector<8x32xbf16>
    %c0_139 = arith.constant 0 : index
    %c0_140 = arith.constant 0 : index
    %293 = vector.load %arg6[%c0_139, %c0_140] : memref<32x128xbf16, #tpu.memory_space<vmem>>, vector<32x128xbf16>
    %cst_141 = arith.constant dense<0.000000e+00> : vector<8x128xf32>
    %294 = tpu.matmul %292, %293, %cst_141 {dimension_numbers = #tpu.dot_dimension_numbers<[1], [0], [0], [1], [0, 0, 1, 1], [], []>} : vector<8x32xbf16>, vector<32x128xbf16>, vector<8x128xf32> -> vector<8x128xf32>
    %c0_142 = arith.constant 0 : index
    %c0_143 = arith.constant 0 : index
    %295 = vector.load %arg4[%c0_142, %c0_143] : memref<8x128xf32, #tpu.memory_space<vmem>>, vector<8x128xf32>
    %296 = arith.addf %294, %295 : vector<8x128xf32>
    %cst_144 = arith.constant dense<0xFF800000> : vector<8xf32>
    %297 = vector.multi_reduction <maximumf>, %296, %cst_144 [1] : vector<8x128xf32> to vector<8xf32>
    %298 = vector.shape_cast %297 : vector<8xf32> to vector<8x1xf32>
    %299 = vector.broadcast %298 : vector<8x1xf32> to vector<8x128xf32>
    %300 = arith.subf %296, %299 : vector<8x128xf32>
    %301 = math.exp %300 : vector<8x128xf32>
    %302 = arith.truncf %301 : vector<8x128xf32> to vector<8x128xbf16>
    %c0_145 = arith.constant 0 : index
    %c0_146 = arith.constant 0 : index
    %303 = vector.load %arg3[%c0_145, %c0_146] : memref<128x32xbf16, #tpu.memory_space<vmem>>, vector<128x32xbf16>
    %cst_147 = arith.constant dense<0.000000e+00> : vector<8x32xf32>
    %304 = tpu.matmul %302, %303, %cst_147 {dimension_numbers = #tpu.dot_dimension_numbers<[1], [0], [0], [1], [0, 0, 1, 1], [], []>} : vector<8x128xbf16>, vector<128x32xbf16>, vector<8x32xf32> -> vector<8x32xf32>
    %cst_148 = arith.constant dense<0.000000e+00> : vector<8xf32>
    %305 = vector.multi_reduction <add>, %301, %cst_148 [1] : vector<8x128xf32> to vector<8xf32>
    %306 = vector.shape_cast %305 : vector<8xf32> to vector<8x1xf32>
    %307 = tpu.reciprocal %306 {approx = true} : vector<8x1xf32> -> vector<8x1xf32>
    %308 = vector.broadcast %307 : vector<8x1xf32> to vector<8x32xf32>
    %309 = arith.mulf %304, %308 : vector<8x32xf32>
    %310 = tpu.concatenate %309, %291 in 1 : vector<8x32xf32>, vector<8x32xf32> -> vector<8x64xf32>
    %311 = arith.truncf %310 : vector<8x64xf32> to vector<8x64xbf16>
    %c0_149 = arith.constant 0 : index
    %c0_150 = arith.constant 0 : index
    %312 = vector.load %arg7[%c0_149, %c0_150] : memref<64x32xbf16, #tpu.memory_space<vmem>>, vector<64x32xbf16>
    %cst_151 = arith.constant dense<0.000000e+00> : vector<8x32xf32>
    %313 = tpu.matmul %311, %312, %cst_151 {dimension_numbers = #tpu.dot_dimension_numbers<[1], [0], [0], [1], [0, 0, 1, 1], [], []>} : vector<8x64xbf16>, vector<64x32xbf16>, vector<8x32xf32> -> vector<8x32xf32>
    %314 = math.tanh %313 : vector<8x32xf32>
    %315 = tpu.concatenate %314, %268 in 1 : vector<8x32xf32>, vector<8x32xf32> -> vector<8x64xf32>
    %316 = arith.truncf %315 : vector<8x64xf32> to vector<8x64xbf16>
    %c0_152 = arith.constant 0 : index
    %c0_153 = arith.constant 0 : index
    %317 = vector.load %arg8[%c0_152, %c0_153] : memref<64x128xbf16, #tpu.memory_space<vmem>>, vector<64x128xbf16>
    %cst_154 = arith.constant dense<0.000000e+00> : vector<8x128xf32>
    %318 = tpu.matmul %316, %317, %cst_154 {dimension_numbers = #tpu.dot_dimension_numbers<[1], [0], [0], [1], [0, 0, 1, 1], [], []>} : vector<8x64xbf16>, vector<64x128xbf16>, vector<8x128xf32> -> vector<8x128xf32>
    %c0_155 = arith.constant 0 : index
    %c0_156 = arith.constant 0 : index
    %319 = vector.load %arg9[%c0_155, %c0_156] : memref<1x128xf32, #tpu.memory_space<vmem>>, vector<1x128xf32>
    %320 = vector.broadcast %319 : vector<1x128xf32> to vector<8x128xf32>
    %321 = arith.addf %318, %320 : vector<8x128xf32>
    %322 = math.tanh %321 : vector<8x128xf32>
    %cst_157 = arith.constant 5.000000e-01 : f32
    %323 = vector.broadcast %cst_157 : f32 to vector<8x128xf32>
    %324 = arith.mulf %323, %322 : vector<8x128xf32>
    %cst_158 = arith.constant 5.000000e-01 : f32
    %325 = vector.broadcast %cst_158 : f32 to vector<8x128xf32>
    %326 = arith.addf %324, %325 : vector<8x128xf32>
    %327 = vector.extract_strided_slice %326 {offsets = [0, 0], sizes = [8, 32], strides = [1, 1]} : vector<8x128xf32> to vector<8x32xf32>
    %328 = vector.extract_strided_slice %326 {offsets = [0, 32], sizes = [8, 32], strides = [1, 1]} : vector<8x128xf32> to vector<8x32xf32>
    %329 = vector.extract_strided_slice %326 {offsets = [0, 96], sizes = [8, 32], strides = [1, 1]} : vector<8x128xf32> to vector<8x32xf32>
    %330 = vector.extract_strided_slice %322 {offsets = [0, 64], sizes = [8, 32], strides = [1, 1]} : vector<8x128xf32> to vector<8x32xf32>
    %331 = arith.mulf %328, %243 : vector<8x32xf32>
    %332 = arith.mulf %327, %330 : vector<8x32xf32>
    %333 = arith.addf %331, %332 : vector<8x32xf32>
    %334 = math.tanh %333 : vector<8x32xf32>
    %335 = arith.mulf %329, %334 : vector<8x32xf32>
    %336 = arith.truncf %335 : vector<8x32xf32> to vector<8x32xbf16>
    %c0_159 = arith.constant 0 : index
    %c0_160 = arith.constant 0 : index
    %337 = vector.load %arg10[%c0_159, %c0_160] : memref<32x128xbf16, #tpu.memory_space<vmem>>, vector<32x128xbf16>
    %cst_161 = arith.constant dense<0.000000e+00> : vector<8x128xf32>
    %338 = tpu.matmul %336, %337, %cst_161 {dimension_numbers = #tpu.dot_dimension_numbers<[1], [0], [0], [1], [0, 0, 1, 1], [], []>} : vector<8x32xbf16>, vector<32x128xbf16>, vector<8x128xf32> -> vector<8x128xf32>
    %c0_162 = arith.constant 0 : index
    %c0_163 = arith.constant 0 : index
    %339 = vector.load %arg4[%c0_162, %c0_163] : memref<8x128xf32, #tpu.memory_space<vmem>>, vector<8x128xf32>
    %340 = arith.addf %338, %339 : vector<8x128xf32>
    %cst_164 = arith.constant dense<0xFF800000> : vector<8xf32>
    %341 = vector.multi_reduction <maximumf>, %340, %cst_164 [1] : vector<8x128xf32> to vector<8xf32>
    %342 = vector.shape_cast %341 : vector<8xf32> to vector<8x1xf32>
    %343 = vector.broadcast %342 : vector<8x1xf32> to vector<8x128xf32>
    %344 = arith.subf %340, %343 : vector<8x128xf32>
    %345 = math.exp %344 : vector<8x128xf32>
    %346 = arith.truncf %345 : vector<8x128xf32> to vector<8x128xbf16>
    %c0_165 = arith.constant 0 : index
    %c0_166 = arith.constant 0 : index
    %347 = vector.load %arg3[%c0_165, %c0_166] : memref<128x32xbf16, #tpu.memory_space<vmem>>, vector<128x32xbf16>
    %cst_167 = arith.constant dense<0.000000e+00> : vector<8x32xf32>
    %348 = tpu.matmul %346, %347, %cst_167 {dimension_numbers = #tpu.dot_dimension_numbers<[1], [0], [0], [1], [0, 0, 1, 1], [], []>} : vector<8x128xbf16>, vector<128x32xbf16>, vector<8x32xf32> -> vector<8x32xf32>
    %cst_168 = arith.constant dense<0.000000e+00> : vector<8xf32>
    %349 = vector.multi_reduction <add>, %345, %cst_168 [1] : vector<8x128xf32> to vector<8xf32>
    %350 = vector.shape_cast %349 : vector<8xf32> to vector<8x1xf32>
    %351 = tpu.reciprocal %350 {approx = true} : vector<8x1xf32> -> vector<8x1xf32>
    %352 = vector.broadcast %351 : vector<8x1xf32> to vector<8x32xf32>
    %353 = arith.mulf %348, %352 : vector<8x32xf32>
    %354 = tpu.concatenate %353, %335 in 1 : vector<8x32xf32>, vector<8x32xf32> -> vector<8x64xf32>
    %355 = arith.truncf %354 : vector<8x64xf32> to vector<8x64xbf16>
    %c0_169 = arith.constant 0 : index
    %c0_170 = arith.constant 0 : index
    %356 = vector.load %arg11[%c0_169, %c0_170] : memref<64x32xbf16, #tpu.memory_space<vmem>>, vector<64x32xbf16>
    %cst_171 = arith.constant dense<0.000000e+00> : vector<8x32xf32>
    %357 = tpu.matmul %355, %356, %cst_171 {dimension_numbers = #tpu.dot_dimension_numbers<[1], [0], [0], [1], [0, 0, 1, 1], [], []>} : vector<8x64xbf16>, vector<64x32xbf16>, vector<8x32xf32> -> vector<8x32xf32>
    %358 = math.tanh %357 : vector<8x32xf32>
    %c3_172 = arith.constant 3 : index
    %c0_173 = arith.constant 0 : index
    %c0_174 = arith.constant 0 : index
    %359 = vector.load %arg12[%c3_172, %c0_173, %c0_174] : memref<8x8x32xf32, #tpu.memory_space<vmem>>, vector<1x8x32xf32>
    %360 = vector.shape_cast %359 : vector<1x8x32xf32> to vector<8x32xf32>
    %361 = vector.shape_cast %358 : vector<8x32xf32> to vector<1x8x32xf32>
    tpu.vector_store %arg12[%c3_172, %c0_173, %c0_174], %361 {strides = array<i32>} : memref<8x8x32xf32, #tpu.memory_space<vmem>>, vector<1x8x32xf32>,
    %c4 = arith.constant 4 : index
    %c0_175 = arith.constant 0 : index
    %c0_176 = arith.constant 0 : index
    %362 = vector.load %arg0[%c4, %c0_175, %c0_176] : memref<8x8x128xf32, #tpu.memory_space<vmem>>, vector<1x8x128xf32>
    %363 = vector.shape_cast %362 : vector<1x8x128xf32> to vector<8x128xf32>
    %364 = arith.truncf %314 : vector<8x32xf32> to vector<8x32xbf16>
    %c0_177 = arith.constant 0 : index
    %c0_178 = arith.constant 0 : index
    %365 = vector.load %arg5[%c0_177, %c0_178] : memref<32x128xbf16, #tpu.memory_space<vmem>>, vector<32x128xbf16>
    %cst_179 = arith.constant dense<0.000000e+00> : vector<8x128xf32>
    %366 = tpu.matmul %364, %365, %cst_179 {dimension_numbers = #tpu.dot_dimension_numbers<[1], [0], [0], [1], [0, 0, 1, 1], [], []>} : vector<8x32xbf16>, vector<32x128xbf16>, vector<8x128xf32> -> vector<8x128xf32>
    %367 = arith.addf %363, %366 : vector<8x128xf32>
    %368 = math.tanh %367 : vector<8x128xf32>
    %cst_180 = arith.constant 5.000000e-01 : f32
    %369 = vector.broadcast %cst_180 : f32 to vector<8x128xf32>
    %370 = arith.mulf %369, %368 : vector<8x128xf32>
    %cst_181 = arith.constant 5.000000e-01 : f32
    %371 = vector.broadcast %cst_181 : f32 to vector<8x128xf32>
    %372 = arith.addf %370, %371 : vector<8x128xf32>
    %373 = vector.extract_strided_slice %372 {offsets = [0, 0], sizes = [8, 32], strides = [1, 1]} : vector<8x128xf32> to vector<8x32xf32>
    %374 = vector.extract_strided_slice %372 {offsets = [0, 32], sizes = [8, 32], strides = [1, 1]} : vector<8x128xf32> to vector<8x32xf32>
    %375 = vector.extract_strided_slice %372 {offsets = [0, 96], sizes = [8, 32], strides = [1, 1]} : vector<8x128xf32> to vector<8x32xf32>
    %376 = vector.extract_strided_slice %368 {offsets = [0, 64], sizes = [8, 32], strides = [1, 1]} : vector<8x128xf32> to vector<8x32xf32>
    %377 = arith.mulf %374, %289 : vector<8x32xf32>
    %378 = arith.mulf %373, %376 : vector<8x32xf32>
    %379 = arith.addf %377, %378 : vector<8x32xf32>
    %380 = math.tanh %379 : vector<8x32xf32>
    %381 = arith.mulf %375, %380 : vector<8x32xf32>
    %382 = arith.truncf %381 : vector<8x32xf32> to vector<8x32xbf16>
    %c0_182 = arith.constant 0 : index
    %c0_183 = arith.constant 0 : index
    %383 = vector.load %arg6[%c0_182, %c0_183] : memref<32x128xbf16, #tpu.memory_space<vmem>>, vector<32x128xbf16>
    %cst_184 = arith.constant dense<0.000000e+00> : vector<8x128xf32>
    %384 = tpu.matmul %382, %383, %cst_184 {dimension_numbers = #tpu.dot_dimension_numbers<[1], [0], [0], [1], [0, 0, 1, 1], [], []>} : vector<8x32xbf16>, vector<32x128xbf16>, vector<8x128xf32> -> vector<8x128xf32>
    %c0_185 = arith.constant 0 : index
    %c0_186 = arith.constant 0 : index
    %385 = vector.load %arg4[%c0_185, %c0_186] : memref<8x128xf32, #tpu.memory_space<vmem>>, vector<8x128xf32>
    %386 = arith.addf %384, %385 : vector<8x128xf32>
    %cst_187 = arith.constant dense<0xFF800000> : vector<8xf32>
    %387 = vector.multi_reduction <maximumf>, %386, %cst_187 [1] : vector<8x128xf32> to vector<8xf32>
    %388 = vector.shape_cast %387 : vector<8xf32> to vector<8x1xf32>
    %389 = vector.broadcast %388 : vector<8x1xf32> to vector<8x128xf32>
    %390 = arith.subf %386, %389 : vector<8x128xf32>
    %391 = math.exp %390 : vector<8x128xf32>
    %392 = arith.truncf %391 : vector<8x128xf32> to vector<8x128xbf16>
    %c0_188 = arith.constant 0 : index
    %c0_189 = arith.constant 0 : index
    %393 = vector.load %arg3[%c0_188, %c0_189] : memref<128x32xbf16, #tpu.memory_space<vmem>>, vector<128x32xbf16>
    %cst_190 = arith.constant dense<0.000000e+00> : vector<8x32xf32>
    %394 = tpu.matmul %392, %393, %cst_190 {dimension_numbers = #tpu.dot_dimension_numbers<[1], [0], [0], [1], [0, 0, 1, 1], [], []>} : vector<8x128xbf16>, vector<128x32xbf16>, vector<8x32xf32> -> vector<8x32xf32>
    %cst_191 = arith.constant dense<0.000000e+00> : vector<8xf32>
    %395 = vector.multi_reduction <add>, %391, %cst_191 [1] : vector<8x128xf32> to vector<8xf32>
    %396 = vector.shape_cast %395 : vector<8xf32> to vector<8x1xf32>
    %397 = tpu.reciprocal %396 {approx = true} : vector<8x1xf32> -> vector<8x1xf32>
    %398 = vector.broadcast %397 : vector<8x1xf32> to vector<8x32xf32>
    %399 = arith.mulf %394, %398 : vector<8x32xf32>
    %400 = tpu.concatenate %399, %381 in 1 : vector<8x32xf32>, vector<8x32xf32> -> vector<8x64xf32>
    %401 = arith.truncf %400 : vector<8x64xf32> to vector<8x64xbf16>
    %c0_192 = arith.constant 0 : index
    %c0_193 = arith.constant 0 : index
    %402 = vector.load %arg7[%c0_192, %c0_193] : memref<64x32xbf16, #tpu.memory_space<vmem>>, vector<64x32xbf16>
    %cst_194 = arith.constant dense<0.000000e+00> : vector<8x32xf32>
    %403 = tpu.matmul %401, %402, %cst_194 {dimension_numbers = #tpu.dot_dimension_numbers<[1], [0], [0], [1], [0, 0, 1, 1], [], []>} : vector<8x64xbf16>, vector<64x32xbf16>, vector<8x32xf32> -> vector<8x32xf32>
    %404 = math.tanh %403 : vector<8x32xf32>
    %405 = tpu.concatenate %404, %358 in 1 : vector<8x32xf32>, vector<8x32xf32> -> vector<8x64xf32>
    %406 = arith.truncf %405 : vector<8x64xf32> to vector<8x64xbf16>
    %c0_195 = arith.constant 0 : index
    %c0_196 = arith.constant 0 : index
    %407 = vector.load %arg8[%c0_195, %c0_196] : memref<64x128xbf16, #tpu.memory_space<vmem>>, vector<64x128xbf16>
    %cst_197 = arith.constant dense<0.000000e+00> : vector<8x128xf32>
    %408 = tpu.matmul %406, %407, %cst_197 {dimension_numbers = #tpu.dot_dimension_numbers<[1], [0], [0], [1], [0, 0, 1, 1], [], []>} : vector<8x64xbf16>, vector<64x128xbf16>, vector<8x128xf32> -> vector<8x128xf32>
    %c0_198 = arith.constant 0 : index
    %c0_199 = arith.constant 0 : index
    %409 = vector.load %arg9[%c0_198, %c0_199] : memref<1x128xf32, #tpu.memory_space<vmem>>, vector<1x128xf32>
    %410 = vector.broadcast %409 : vector<1x128xf32> to vector<8x128xf32>
    %411 = arith.addf %408, %410 : vector<8x128xf32>
    %412 = math.tanh %411 : vector<8x128xf32>
    %cst_200 = arith.constant 5.000000e-01 : f32
    %413 = vector.broadcast %cst_200 : f32 to vector<8x128xf32>
    %414 = arith.mulf %413, %412 : vector<8x128xf32>
    %cst_201 = arith.constant 5.000000e-01 : f32
    %415 = vector.broadcast %cst_201 : f32 to vector<8x128xf32>
    %416 = arith.addf %414, %415 : vector<8x128xf32>
    %417 = vector.extract_strided_slice %416 {offsets = [0, 0], sizes = [8, 32], strides = [1, 1]} : vector<8x128xf32> to vector<8x32xf32>
    %418 = vector.extract_strided_slice %416 {offsets = [0, 32], sizes = [8, 32], strides = [1, 1]} : vector<8x128xf32> to vector<8x32xf32>
    %419 = vector.extract_strided_slice %416 {offsets = [0, 96], sizes = [8, 32], strides = [1, 1]} : vector<8x128xf32> to vector<8x32xf32>
    %420 = vector.extract_strided_slice %412 {offsets = [0, 64], sizes = [8, 32], strides = [1, 1]} : vector<8x128xf32> to vector<8x32xf32>
    %421 = arith.mulf %418, %333 : vector<8x32xf32>
    %422 = arith.mulf %417, %420 : vector<8x32xf32>
    %423 = arith.addf %421, %422 : vector<8x32xf32>
    %424 = math.tanh %423 : vector<8x32xf32>
    %425 = arith.mulf %419, %424 : vector<8x32xf32>
    %426 = arith.truncf %425 : vector<8x32xf32> to vector<8x32xbf16>
    %c0_202 = arith.constant 0 : index
    %c0_203 = arith.constant 0 : index
    %427 = vector.load %arg10[%c0_202, %c0_203] : memref<32x128xbf16, #tpu.memory_space<vmem>>, vector<32x128xbf16>
    %cst_204 = arith.constant dense<0.000000e+00> : vector<8x128xf32>
    %428 = tpu.matmul %426, %427, %cst_204 {dimension_numbers = #tpu.dot_dimension_numbers<[1], [0], [0], [1], [0, 0, 1, 1], [], []>} : vector<8x32xbf16>, vector<32x128xbf16>, vector<8x128xf32> -> vector<8x128xf32>
    %c0_205 = arith.constant 0 : index
    %c0_206 = arith.constant 0 : index
    %429 = vector.load %arg4[%c0_205, %c0_206] : memref<8x128xf32, #tpu.memory_space<vmem>>, vector<8x128xf32>
    %430 = arith.addf %428, %429 : vector<8x128xf32>
    %cst_207 = arith.constant dense<0xFF800000> : vector<8xf32>
    %431 = vector.multi_reduction <maximumf>, %430, %cst_207 [1] : vector<8x128xf32> to vector<8xf32>
    %432 = vector.shape_cast %431 : vector<8xf32> to vector<8x1xf32>
    %433 = vector.broadcast %432 : vector<8x1xf32> to vector<8x128xf32>
    %434 = arith.subf %430, %433 : vector<8x128xf32>
    %435 = math.exp %434 : vector<8x128xf32>
    %436 = arith.truncf %435 : vector<8x128xf32> to vector<8x128xbf16>
    %c0_208 = arith.constant 0 : index
    %c0_209 = arith.constant 0 : index
    %437 = vector.load %arg3[%c0_208, %c0_209] : memref<128x32xbf16, #tpu.memory_space<vmem>>, vector<128x32xbf16>
    %cst_210 = arith.constant dense<0.000000e+00> : vector<8x32xf32>
    %438 = tpu.matmul %436, %437, %cst_210 {dimension_numbers = #tpu.dot_dimension_numbers<[1], [0], [0], [1], [0, 0, 1, 1], [], []>} : vector<8x128xbf16>, vector<128x32xbf16>, vector<8x32xf32> -> vector<8x32xf32>
    %cst_211 = arith.constant dense<0.000000e+00> : vector<8xf32>
    %439 = vector.multi_reduction <add>, %435, %cst_211 [1] : vector<8x128xf32> to vector<8xf32>
    %440 = vector.shape_cast %439 : vector<8xf32> to vector<8x1xf32>
    %441 = tpu.reciprocal %440 {approx = true} : vector<8x1xf32> -> vector<8x1xf32>
    %442 = vector.broadcast %441 : vector<8x1xf32> to vector<8x32xf32>
    %443 = arith.mulf %438, %442 : vector<8x32xf32>
    %444 = tpu.concatenate %443, %425 in 1 : vector<8x32xf32>, vector<8x32xf32> -> vector<8x64xf32>
    %445 = arith.truncf %444 : vector<8x64xf32> to vector<8x64xbf16>
    %c0_212 = arith.constant 0 : index
    %c0_213 = arith.constant 0 : index
    %446 = vector.load %arg11[%c0_212, %c0_213] : memref<64x32xbf16, #tpu.memory_space<vmem>>, vector<64x32xbf16>
    %cst_214 = arith.constant dense<0.000000e+00> : vector<8x32xf32>
    %447 = tpu.matmul %445, %446, %cst_214 {dimension_numbers = #tpu.dot_dimension_numbers<[1], [0], [0], [1], [0, 0, 1, 1], [], []>} : vector<8x64xbf16>, vector<64x32xbf16>, vector<8x32xf32> -> vector<8x32xf32>
    %448 = math.tanh %447 : vector<8x32xf32>
    %c4_215 = arith.constant 4 : index
    %c0_216 = arith.constant 0 : index
    %c0_217 = arith.constant 0 : index
    %449 = vector.load %arg12[%c4_215, %c0_216, %c0_217] : memref<8x8x32xf32, #tpu.memory_space<vmem>>, vector<1x8x32xf32>
    %450 = vector.shape_cast %449 : vector<1x8x32xf32> to vector<8x32xf32>
    %451 = vector.shape_cast %448 : vector<8x32xf32> to vector<1x8x32xf32>
    tpu.vector_store %arg12[%c4_215, %c0_216, %c0_217], %451 {strides = array<i32>} : memref<8x8x32xf32, #tpu.memory_space<vmem>>, vector<1x8x32xf32>,
    %c5 = arith.constant 5 : index
    %c0_218 = arith.constant 0 : index
    %c0_219 = arith.constant 0 : index
    %452 = vector.load %arg0[%c5, %c0_218, %c0_219] : memref<8x8x128xf32, #tpu.memory_space<vmem>>, vector<1x8x128xf32>
    %453 = vector.shape_cast %452 : vector<1x8x128xf32> to vector<8x128xf32>
    %454 = arith.truncf %404 : vector<8x32xf32> to vector<8x32xbf16>
    %c0_220 = arith.constant 0 : index
    %c0_221 = arith.constant 0 : index
    %455 = vector.load %arg5[%c0_220, %c0_221] : memref<32x128xbf16, #tpu.memory_space<vmem>>, vector<32x128xbf16>
    %cst_222 = arith.constant dense<0.000000e+00> : vector<8x128xf32>
    %456 = tpu.matmul %454, %455, %cst_222 {dimension_numbers = #tpu.dot_dimension_numbers<[1], [0], [0], [1], [0, 0, 1, 1], [], []>} : vector<8x32xbf16>, vector<32x128xbf16>, vector<8x128xf32> -> vector<8x128xf32>
    %457 = arith.addf %453, %456 : vector<8x128xf32>
    %458 = math.tanh %457 : vector<8x128xf32>
    %cst_223 = arith.constant 5.000000e-01 : f32
    %459 = vector.broadcast %cst_223 : f32 to vector<8x128xf32>
    %460 = arith.mulf %459, %458 : vector<8x128xf32>
    %cst_224 = arith.constant 5.000000e-01 : f32
    %461 = vector.broadcast %cst_224 : f32 to vector<8x128xf32>
    %462 = arith.addf %460, %461 : vector<8x128xf32>
    %463 = vector.extract_strided_slice %462 {offsets = [0, 0], sizes = [8, 32], strides = [1, 1]} : vector<8x128xf32> to vector<8x32xf32>
    %464 = vector.extract_strided_slice %462 {offsets = [0, 32], sizes = [8, 32], strides = [1, 1]} : vector<8x128xf32> to vector<8x32xf32>
    %465 = vector.extract_strided_slice %462 {offsets = [0, 96], sizes = [8, 32], strides = [1, 1]} : vector<8x128xf32> to vector<8x32xf32>
    %466 = vector.extract_strided_slice %458 {offsets = [0, 64], sizes = [8, 32], strides = [1, 1]} : vector<8x128xf32> to vector<8x32xf32>
    %467 = arith.mulf %464, %379 : vector<8x32xf32>
    %468 = arith.mulf %463, %466 : vector<8x32xf32>
    %469 = arith.addf %467, %468 : vector<8x32xf32>
    %470 = math.tanh %469 : vector<8x32xf32>
    %471 = arith.mulf %465, %470 : vector<8x32xf32>
    %472 = arith.truncf %471 : vector<8x32xf32> to vector<8x32xbf16>
    %c0_225 = arith.constant 0 : index
    %c0_226 = arith.constant 0 : index
    %473 = vector.load %arg6[%c0_225, %c0_226] : memref<32x128xbf16, #tpu.memory_space<vmem>>, vector<32x128xbf16>
    %cst_227 = arith.constant dense<0.000000e+00> : vector<8x128xf32>
    %474 = tpu.matmul %472, %473, %cst_227 {dimension_numbers = #tpu.dot_dimension_numbers<[1], [0], [0], [1], [0, 0, 1, 1], [], []>} : vector<8x32xbf16>, vector<32x128xbf16>, vector<8x128xf32> -> vector<8x128xf32>
    %c0_228 = arith.constant 0 : index
    %c0_229 = arith.constant 0 : index
    %475 = vector.load %arg4[%c0_228, %c0_229] : memref<8x128xf32, #tpu.memory_space<vmem>>, vector<8x128xf32>
    %476 = arith.addf %474, %475 : vector<8x128xf32>
    %cst_230 = arith.constant dense<0xFF800000> : vector<8xf32>
    %477 = vector.multi_reduction <maximumf>, %476, %cst_230 [1] : vector<8x128xf32> to vector<8xf32>
    %478 = vector.shape_cast %477 : vector<8xf32> to vector<8x1xf32>
    %479 = vector.broadcast %478 : vector<8x1xf32> to vector<8x128xf32>
    %480 = arith.subf %476, %479 : vector<8x128xf32>
    %481 = math.exp %480 : vector<8x128xf32>
    %482 = arith.truncf %481 : vector<8x128xf32> to vector<8x128xbf16>
    %c0_231 = arith.constant 0 : index
    %c0_232 = arith.constant 0 : index
    %483 = vector.load %arg3[%c0_231, %c0_232] : memref<128x32xbf16, #tpu.memory_space<vmem>>, vector<128x32xbf16>
    %cst_233 = arith.constant dense<0.000000e+00> : vector<8x32xf32>
    %484 = tpu.matmul %482, %483, %cst_233 {dimension_numbers = #tpu.dot_dimension_numbers<[1], [0], [0], [1], [0, 0, 1, 1], [], []>} : vector<8x128xbf16>, vector<128x32xbf16>, vector<8x32xf32> -> vector<8x32xf32>
    %cst_234 = arith.constant dense<0.000000e+00> : vector<8xf32>
    %485 = vector.multi_reduction <add>, %481, %cst_234 [1] : vector<8x128xf32> to vector<8xf32>
    %486 = vector.shape_cast %485 : vector<8xf32> to vector<8x1xf32>
    %487 = tpu.reciprocal %486 {approx = true} : vector<8x1xf32> -> vector<8x1xf32>
    %488 = vector.broadcast %487 : vector<8x1xf32> to vector<8x32xf32>
    %489 = arith.mulf %484, %488 : vector<8x32xf32>
    %490 = tpu.concatenate %489, %471 in 1 : vector<8x32xf32>, vector<8x32xf32> -> vector<8x64xf32>
    %491 = arith.truncf %490 : vector<8x64xf32> to vector<8x64xbf16>
    %c0_235 = arith.constant 0 : index
    %c0_236 = arith.constant 0 : index
    %492 = vector.load %arg7[%c0_235, %c0_236] : memref<64x32xbf16, #tpu.memory_space<vmem>>, vector<64x32xbf16>
    %cst_237 = arith.constant dense<0.000000e+00> : vector<8x32xf32>
    %493 = tpu.matmul %491, %492, %cst_237 {dimension_numbers = #tpu.dot_dimension_numbers<[1], [0], [0], [1], [0, 0, 1, 1], [], []>} : vector<8x64xbf16>, vector<64x32xbf16>, vector<8x32xf32> -> vector<8x32xf32>
    %494 = math.tanh %493 : vector<8x32xf32>
    %495 = tpu.concatenate %494, %448 in 1 : vector<8x32xf32>, vector<8x32xf32> -> vector<8x64xf32>
    %496 = arith.truncf %495 : vector<8x64xf32> to vector<8x64xbf16>
    %c0_238 = arith.constant 0 : index
    %c0_239 = arith.constant 0 : index
    %497 = vector.load %arg8[%c0_238, %c0_239] : memref<64x128xbf16, #tpu.memory_space<vmem>>, vector<64x128xbf16>
    %cst_240 = arith.constant dense<0.000000e+00> : vector<8x128xf32>
    %498 = tpu.matmul %496, %497, %cst_240 {dimension_numbers = #tpu.dot_dimension_numbers<[1], [0], [0], [1], [0, 0, 1, 1], [], []>} : vector<8x64xbf16>, vector<64x128xbf16>, vector<8x128xf32> -> vector<8x128xf32>
    %c0_241 = arith.constant 0 : index
    %c0_242 = arith.constant 0 : index
    %499 = vector.load %arg9[%c0_241, %c0_242] : memref<1x128xf32, #tpu.memory_space<vmem>>, vector<1x128xf32>
    %500 = vector.broadcast %499 : vector<1x128xf32> to vector<8x128xf32>
    %501 = arith.addf %498, %500 : vector<8x128xf32>
    %502 = math.tanh %501 : vector<8x128xf32>
    %cst_243 = arith.constant 5.000000e-01 : f32
    %503 = vector.broadcast %cst_243 : f32 to vector<8x128xf32>
    %504 = arith.mulf %503, %502 : vector<8x128xf32>
    %cst_244 = arith.constant 5.000000e-01 : f32
    %505 = vector.broadcast %cst_244 : f32 to vector<8x128xf32>
    %506 = arith.addf %504, %505 : vector<8x128xf32>
    %507 = vector.extract_strided_slice %506 {offsets = [0, 0], sizes = [8, 32], strides = [1, 1]} : vector<8x128xf32> to vector<8x32xf32>
    %508 = vector.extract_strided_slice %506 {offsets = [0, 32], sizes = [8, 32], strides = [1, 1]} : vector<8x128xf32> to vector<8x32xf32>
    %509 = vector.extract_strided_slice %506 {offsets = [0, 96], sizes = [8, 32], strides = [1, 1]} : vector<8x128xf32> to vector<8x32xf32>
    %510 = vector.extract_strided_slice %502 {offsets = [0, 64], sizes = [8, 32], strides = [1, 1]} : vector<8x128xf32> to vector<8x32xf32>
    %511 = arith.mulf %508, %423 : vector<8x32xf32>
    %512 = arith.mulf %507, %510 : vector<8x32xf32>
    %513 = arith.addf %511, %512 : vector<8x32xf32>
    %514 = math.tanh %513 : vector<8x32xf32>
    %515 = arith.mulf %509, %514 : vector<8x32xf32>
    %516 = arith.truncf %515 : vector<8x32xf32> to vector<8x32xbf16>
    %c0_245 = arith.constant 0 : index
    %c0_246 = arith.constant 0 : index
    %517 = vector.load %arg10[%c0_245, %c0_246] : memref<32x128xbf16, #tpu.memory_space<vmem>>, vector<32x128xbf16>
    %cst_247 = arith.constant dense<0.000000e+00> : vector<8x128xf32>
    %518 = tpu.matmul %516, %517, %cst_247 {dimension_numbers = #tpu.dot_dimension_numbers<[1], [0], [0], [1], [0, 0, 1, 1], [], []>} : vector<8x32xbf16>, vector<32x128xbf16>, vector<8x128xf32> -> vector<8x128xf32>
    %c0_248 = arith.constant 0 : index
    %c0_249 = arith.constant 0 : index
    %519 = vector.load %arg4[%c0_248, %c0_249] : memref<8x128xf32, #tpu.memory_space<vmem>>, vector<8x128xf32>
    %520 = arith.addf %518, %519 : vector<8x128xf32>
    %cst_250 = arith.constant dense<0xFF800000> : vector<8xf32>
    %521 = vector.multi_reduction <maximumf>, %520, %cst_250 [1] : vector<8x128xf32> to vector<8xf32>
    %522 = vector.shape_cast %521 : vector<8xf32> to vector<8x1xf32>
    %523 = vector.broadcast %522 : vector<8x1xf32> to vector<8x128xf32>
    %524 = arith.subf %520, %523 : vector<8x128xf32>
    %525 = math.exp %524 : vector<8x128xf32>
    %526 = arith.truncf %525 : vector<8x128xf32> to vector<8x128xbf16>
    %c0_251 = arith.constant 0 : index
    %c0_252 = arith.constant 0 : index
    %527 = vector.load %arg3[%c0_251, %c0_252] : memref<128x32xbf16, #tpu.memory_space<vmem>>, vector<128x32xbf16>
    %cst_253 = arith.constant dense<0.000000e+00> : vector<8x32xf32>
    %528 = tpu.matmul %526, %527, %cst_253 {dimension_numbers = #tpu.dot_dimension_numbers<[1], [0], [0], [1], [0, 0, 1, 1], [], []>} : vector<8x128xbf16>, vector<128x32xbf16>, vector<8x32xf32> -> vector<8x32xf32>
    %cst_254 = arith.constant dense<0.000000e+00> : vector<8xf32>
    %529 = vector.multi_reduction <add>, %525, %cst_254 [1] : vector<8x128xf32> to vector<8xf32>
    %530 = vector.shape_cast %529 : vector<8xf32> to vector<8x1xf32>
    %531 = tpu.reciprocal %530 {approx = true} : vector<8x1xf32> -> vector<8x1xf32>
    %532 = vector.broadcast %531 : vector<8x1xf32> to vector<8x32xf32>
    %533 = arith.mulf %528, %532 : vector<8x32xf32>
    %534 = tpu.concatenate %533, %515 in 1 : vector<8x32xf32>, vector<8x32xf32> -> vector<8x64xf32>
    %535 = arith.truncf %534 : vector<8x64xf32> to vector<8x64xbf16>
    %c0_255 = arith.constant 0 : index
    %c0_256 = arith.constant 0 : index
    %536 = vector.load %arg11[%c0_255, %c0_256] : memref<64x32xbf16, #tpu.memory_space<vmem>>, vector<64x32xbf16>
    %cst_257 = arith.constant dense<0.000000e+00> : vector<8x32xf32>
    %537 = tpu.matmul %535, %536, %cst_257 {dimension_numbers = #tpu.dot_dimension_numbers<[1], [0], [0], [1], [0, 0, 1, 1], [], []>} : vector<8x64xbf16>, vector<64x32xbf16>, vector<8x32xf32> -> vector<8x32xf32>
    %538 = math.tanh %537 : vector<8x32xf32>
    %c5_258 = arith.constant 5 : index
    %c0_259 = arith.constant 0 : index
    %c0_260 = arith.constant 0 : index
    %539 = vector.load %arg12[%c5_258, %c0_259, %c0_260] : memref<8x8x32xf32, #tpu.memory_space<vmem>>, vector<1x8x32xf32>
    %540 = vector.shape_cast %539 : vector<1x8x32xf32> to vector<8x32xf32>
    %541 = vector.shape_cast %538 : vector<8x32xf32> to vector<1x8x32xf32>
    tpu.vector_store %arg12[%c5_258, %c0_259, %c0_260], %541 {strides = array<i32>} : memref<8x8x32xf32, #tpu.memory_space<vmem>>, vector<1x8x32xf32>,
    %c6 = arith.constant 6 : index
    %c0_261 = arith.constant 0 : index
    %c0_262 = arith.constant 0 : index
    %542 = vector.load %arg0[%c6, %c0_261, %c0_262] : memref<8x8x128xf32, #tpu.memory_space<vmem>>, vector<1x8x128xf32>
    %543 = vector.shape_cast %542 : vector<1x8x128xf32> to vector<8x128xf32>
    %544 = arith.truncf %494 : vector<8x32xf32> to vector<8x32xbf16>
    %c0_263 = arith.constant 0 : index
    %c0_264 = arith.constant 0 : index
    %545 = vector.load %arg5[%c0_263, %c0_264] : memref<32x128xbf16, #tpu.memory_space<vmem>>, vector<32x128xbf16>
    %cst_265 = arith.constant dense<0.000000e+00> : vector<8x128xf32>
    %546 = tpu.matmul %544, %545, %cst_265 {dimension_numbers = #tpu.dot_dimension_numbers<[1], [0], [0], [1], [0, 0, 1, 1], [], []>} : vector<8x32xbf16>, vector<32x128xbf16>, vector<8x128xf32> -> vector<8x128xf32>
    %547 = arith.addf %543, %546 : vector<8x128xf32>
    %548 = math.tanh %547 : vector<8x128xf32>
    %cst_266 = arith.constant 5.000000e-01 : f32
    %549 = vector.broadcast %cst_266 : f32 to vector<8x128xf32>
    %550 = arith.mulf %549, %548 : vector<8x128xf32>
    %cst_267 = arith.constant 5.000000e-01 : f32
    %551 = vector.broadcast %cst_267 : f32 to vector<8x128xf32>
    %552 = arith.addf %550, %551 : vector<8x128xf32>
    %553 = vector.extract_strided_slice %552 {offsets = [0, 0], sizes = [8, 32], strides = [1, 1]} : vector<8x128xf32> to vector<8x32xf32>
    %554 = vector.extract_strided_slice %552 {offsets = [0, 32], sizes = [8, 32], strides = [1, 1]} : vector<8x128xf32> to vector<8x32xf32>
    %555 = vector.extract_strided_slice %552 {offsets = [0, 96], sizes = [8, 32], strides = [1, 1]} : vector<8x128xf32> to vector<8x32xf32>
    %556 = vector.extract_strided_slice %548 {offsets = [0, 64], sizes = [8, 32], strides = [1, 1]} : vector<8x128xf32> to vector<8x32xf32>
    %557 = arith.mulf %554, %469 : vector<8x32xf32>
    %558 = arith.mulf %553, %556 : vector<8x32xf32>
    %559 = arith.addf %557, %558 : vector<8x32xf32>
    %560 = math.tanh %559 : vector<8x32xf32>
    %561 = arith.mulf %555, %560 : vector<8x32xf32>
    %562 = arith.truncf %561 : vector<8x32xf32> to vector<8x32xbf16>
    %c0_268 = arith.constant 0 : index
    %c0_269 = arith.constant 0 : index
    %563 = vector.load %arg6[%c0_268, %c0_269] : memref<32x128xbf16, #tpu.memory_space<vmem>>, vector<32x128xbf16>
    %cst_270 = arith.constant dense<0.000000e+00> : vector<8x128xf32>
    %564 = tpu.matmul %562, %563, %cst_270 {dimension_numbers = #tpu.dot_dimension_numbers<[1], [0], [0], [1], [0, 0, 1, 1], [], []>} : vector<8x32xbf16>, vector<32x128xbf16>, vector<8x128xf32> -> vector<8x128xf32>
    %c0_271 = arith.constant 0 : index
    %c0_272 = arith.constant 0 : index
    %565 = vector.load %arg4[%c0_271, %c0_272] : memref<8x128xf32, #tpu.memory_space<vmem>>, vector<8x128xf32>
    %566 = arith.addf %564, %565 : vector<8x128xf32>
    %cst_273 = arith.constant dense<0xFF800000> : vector<8xf32>
    %567 = vector.multi_reduction <maximumf>, %566, %cst_273 [1] : vector<8x128xf32> to vector<8xf32>
    %568 = vector.shape_cast %567 : vector<8xf32> to vector<8x1xf32>
    %569 = vector.broadcast %568 : vector<8x1xf32> to vector<8x128xf32>
    %570 = arith.subf %566, %569 : vector<8x128xf32>
    %571 = math.exp %570 : vector<8x128xf32>
    %572 = arith.truncf %571 : vector<8x128xf32> to vector<8x128xbf16>
    %c0_274 = arith.constant 0 : index
    %c0_275 = arith.constant 0 : index
    %573 = vector.load %arg3[%c0_274, %c0_275] : memref<128x32xbf16, #tpu.memory_space<vmem>>, vector<128x32xbf16>
    %cst_276 = arith.constant dense<0.000000e+00> : vector<8x32xf32>
    %574 = tpu.matmul %572, %573, %cst_276 {dimension_numbers = #tpu.dot_dimension_numbers<[1], [0], [0], [1], [0, 0, 1, 1], [], []>} : vector<8x128xbf16>, vector<128x32xbf16>, vector<8x32xf32> -> vector<8x32xf32>
    %cst_277 = arith.constant dense<0.000000e+00> : vector<8xf32>
    %575 = vector.multi_reduction <add>, %571, %cst_277 [1] : vector<8x128xf32> to vector<8xf32>
    %576 = vector.shape_cast %575 : vector<8xf32> to vector<8x1xf32>
    %577 = tpu.reciprocal %576 {approx = true} : vector<8x1xf32> -> vector<8x1xf32>
    %578 = vector.broadcast %577 : vector<8x1xf32> to vector<8x32xf32>
    %579 = arith.mulf %574, %578 : vector<8x32xf32>
    %580 = tpu.concatenate %579, %561 in 1 : vector<8x32xf32>, vector<8x32xf32> -> vector<8x64xf32>
    %581 = arith.truncf %580 : vector<8x64xf32> to vector<8x64xbf16>
    %c0_278 = arith.constant 0 : index
    %c0_279 = arith.constant 0 : index
    %582 = vector.load %arg7[%c0_278, %c0_279] : memref<64x32xbf16, #tpu.memory_space<vmem>>, vector<64x32xbf16>
    %cst_280 = arith.constant dense<0.000000e+00> : vector<8x32xf32>
    %583 = tpu.matmul %581, %582, %cst_280 {dimension_numbers = #tpu.dot_dimension_numbers<[1], [0], [0], [1], [0, 0, 1, 1], [], []>} : vector<8x64xbf16>, vector<64x32xbf16>, vector<8x32xf32> -> vector<8x32xf32>
    %584 = math.tanh %583 : vector<8x32xf32>
    %585 = tpu.concatenate %584, %538 in 1 : vector<8x32xf32>, vector<8x32xf32> -> vector<8x64xf32>
    %586 = arith.truncf %585 : vector<8x64xf32> to vector<8x64xbf16>
    %c0_281 = arith.constant 0 : index
    %c0_282 = arith.constant 0 : index
    %587 = vector.load %arg8[%c0_281, %c0_282] : memref<64x128xbf16, #tpu.memory_space<vmem>>, vector<64x128xbf16>
    %cst_283 = arith.constant dense<0.000000e+00> : vector<8x128xf32>
    %588 = tpu.matmul %586, %587, %cst_283 {dimension_numbers = #tpu.dot_dimension_numbers<[1], [0], [0], [1], [0, 0, 1, 1], [], []>} : vector<8x64xbf16>, vector<64x128xbf16>, vector<8x128xf32> -> vector<8x128xf32>
    %c0_284 = arith.constant 0 : index
    %c0_285 = arith.constant 0 : index
    %589 = vector.load %arg9[%c0_284, %c0_285] : memref<1x128xf32, #tpu.memory_space<vmem>>, vector<1x128xf32>
    %590 = vector.broadcast %589 : vector<1x128xf32> to vector<8x128xf32>
    %591 = arith.addf %588, %590 : vector<8x128xf32>
    %592 = math.tanh %591 : vector<8x128xf32>
    %cst_286 = arith.constant 5.000000e-01 : f32
    %593 = vector.broadcast %cst_286 : f32 to vector<8x128xf32>
    %594 = arith.mulf %593, %592 : vector<8x128xf32>
    %cst_287 = arith.constant 5.000000e-01 : f32
    %595 = vector.broadcast %cst_287 : f32 to vector<8x128xf32>
    %596 = arith.addf %594, %595 : vector<8x128xf32>
    %597 = vector.extract_strided_slice %596 {offsets = [0, 0], sizes = [8, 32], strides = [1, 1]} : vector<8x128xf32> to vector<8x32xf32>
    %598 = vector.extract_strided_slice %596 {offsets = [0, 32], sizes = [8, 32], strides = [1, 1]} : vector<8x128xf32> to vector<8x32xf32>
    %599 = vector.extract_strided_slice %596 {offsets = [0, 96], sizes = [8, 32], strides = [1, 1]} : vector<8x128xf32> to vector<8x32xf32>
    %600 = vector.extract_strided_slice %592 {offsets = [0, 64], sizes = [8, 32], strides = [1, 1]} : vector<8x128xf32> to vector<8x32xf32>
    %601 = arith.mulf %598, %513 : vector<8x32xf32>
    %602 = arith.mulf %597, %600 : vector<8x32xf32>
    %603 = arith.addf %601, %602 : vector<8x32xf32>
    %604 = math.tanh %603 : vector<8x32xf32>
    %605 = arith.mulf %599, %604 : vector<8x32xf32>
    %606 = arith.truncf %605 : vector<8x32xf32> to vector<8x32xbf16>
    %c0_288 = arith.constant 0 : index
    %c0_289 = arith.constant 0 : index
    %607 = vector.load %arg10[%c0_288, %c0_289] : memref<32x128xbf16, #tpu.memory_space<vmem>>, vector<32x128xbf16>
    %cst_290 = arith.constant dense<0.000000e+00> : vector<8x128xf32>
    %608 = tpu.matmul %606, %607, %cst_290 {dimension_numbers = #tpu.dot_dimension_numbers<[1], [0], [0], [1], [0, 0, 1, 1], [], []>} : vector<8x32xbf16>, vector<32x128xbf16>, vector<8x128xf32> -> vector<8x128xf32>
    %c0_291 = arith.constant 0 : index
    %c0_292 = arith.constant 0 : index
    %609 = vector.load %arg4[%c0_291, %c0_292] : memref<8x128xf32, #tpu.memory_space<vmem>>, vector<8x128xf32>
    %610 = arith.addf %608, %609 : vector<8x128xf32>
    %cst_293 = arith.constant dense<0xFF800000> : vector<8xf32>
    %611 = vector.multi_reduction <maximumf>, %610, %cst_293 [1] : vector<8x128xf32> to vector<8xf32>
    %612 = vector.shape_cast %611 : vector<8xf32> to vector<8x1xf32>
    %613 = vector.broadcast %612 : vector<8x1xf32> to vector<8x128xf32>
    %614 = arith.subf %610, %613 : vector<8x128xf32>
    %615 = math.exp %614 : vector<8x128xf32>
    %616 = arith.truncf %615 : vector<8x128xf32> to vector<8x128xbf16>
    %c0_294 = arith.constant 0 : index
    %c0_295 = arith.constant 0 : index
    %617 = vector.load %arg3[%c0_294, %c0_295] : memref<128x32xbf16, #tpu.memory_space<vmem>>, vector<128x32xbf16>
    %cst_296 = arith.constant dense<0.000000e+00> : vector<8x32xf32>
    %618 = tpu.matmul %616, %617, %cst_296 {dimension_numbers = #tpu.dot_dimension_numbers<[1], [0], [0], [1], [0, 0, 1, 1], [], []>} : vector<8x128xbf16>, vector<128x32xbf16>, vector<8x32xf32> -> vector<8x32xf32>
    %cst_297 = arith.constant dense<0.000000e+00> : vector<8xf32>
    %619 = vector.multi_reduction <add>, %615, %cst_297 [1] : vector<8x128xf32> to vector<8xf32>
    %620 = vector.shape_cast %619 : vector<8xf32> to vector<8x1xf32>
    %621 = tpu.reciprocal %620 {approx = true} : vector<8x1xf32> -> vector<8x1xf32>
    %622 = vector.broadcast %621 : vector<8x1xf32> to vector<8x32xf32>
    %623 = arith.mulf %618, %622 : vector<8x32xf32>
    %624 = tpu.concatenate %623, %605 in 1 : vector<8x32xf32>, vector<8x32xf32> -> vector<8x64xf32>
    %625 = arith.truncf %624 : vector<8x64xf32> to vector<8x64xbf16>
    %c0_298 = arith.constant 0 : index
    %c0_299 = arith.constant 0 : index
    %626 = vector.load %arg11[%c0_298, %c0_299] : memref<64x32xbf16, #tpu.memory_space<vmem>>, vector<64x32xbf16>
    %cst_300 = arith.constant dense<0.000000e+00> : vector<8x32xf32>
    %627 = tpu.matmul %625, %626, %cst_300 {dimension_numbers = #tpu.dot_dimension_numbers<[1], [0], [0], [1], [0, 0, 1, 1], [], []>} : vector<8x64xbf16>, vector<64x32xbf16>, vector<8x32xf32> -> vector<8x32xf32>
    %628 = math.tanh %627 : vector<8x32xf32>
    %c6_301 = arith.constant 6 : index
    %c0_302 = arith.constant 0 : index
    %c0_303 = arith.constant 0 : index
    %629 = vector.load %arg12[%c6_301, %c0_302, %c0_303] : memref<8x8x32xf32, #tpu.memory_space<vmem>>, vector<1x8x32xf32>
    %630 = vector.shape_cast %629 : vector<1x8x32xf32> to vector<8x32xf32>
    %631 = vector.shape_cast %628 : vector<8x32xf32> to vector<1x8x32xf32>
    tpu.vector_store %arg12[%c6_301, %c0_302, %c0_303], %631 {strides = array<i32>} : memref<8x8x32xf32, #tpu.memory_space<vmem>>, vector<1x8x32xf32>,
    %c7 = arith.constant 7 : index
    %c0_304 = arith.constant 0 : index
    %c0_305 = arith.constant 0 : index
    %632 = vector.load %arg0[%c7, %c0_304, %c0_305] : memref<8x8x128xf32, #tpu.memory_space<vmem>>, vector<1x8x128xf32>
    %633 = vector.shape_cast %632 : vector<1x8x128xf32> to vector<8x128xf32>
    %634 = arith.truncf %584 : vector<8x32xf32> to vector<8x32xbf16>
    %c0_306 = arith.constant 0 : index
    %c0_307 = arith.constant 0 : index
    %635 = vector.load %arg5[%c0_306, %c0_307] : memref<32x128xbf16, #tpu.memory_space<vmem>>, vector<32x128xbf16>
    %cst_308 = arith.constant dense<0.000000e+00> : vector<8x128xf32>
    %636 = tpu.matmul %634, %635, %cst_308 {dimension_numbers = #tpu.dot_dimension_numbers<[1], [0], [0], [1], [0, 0, 1, 1], [], []>} : vector<8x32xbf16>, vector<32x128xbf16>, vector<8x128xf32> -> vector<8x128xf32>
    %637 = arith.addf %633, %636 : vector<8x128xf32>
    %638 = math.tanh %637 : vector<8x128xf32>
    %cst_309 = arith.constant 5.000000e-01 : f32
    %639 = vector.broadcast %cst_309 : f32 to vector<8x128xf32>
    %640 = arith.mulf %639, %638 : vector<8x128xf32>
    %cst_310 = arith.constant 5.000000e-01 : f32
    %641 = vector.broadcast %cst_310 : f32 to vector<8x128xf32>
    %642 = arith.addf %640, %641 : vector<8x128xf32>
    %643 = vector.extract_strided_slice %642 {offsets = [0, 0], sizes = [8, 32], strides = [1, 1]} : vector<8x128xf32> to vector<8x32xf32>
    %644 = vector.extract_strided_slice %642 {offsets = [0, 32], sizes = [8, 32], strides = [1, 1]} : vector<8x128xf32> to vector<8x32xf32>
    %645 = vector.extract_strided_slice %642 {offsets = [0, 96], sizes = [8, 32], strides = [1, 1]} : vector<8x128xf32> to vector<8x32xf32>
    %646 = vector.extract_strided_slice %638 {offsets = [0, 64], sizes = [8, 32], strides = [1, 1]} : vector<8x128xf32> to vector<8x32xf32>
    %647 = arith.mulf %644, %559 : vector<8x32xf32>
    %648 = arith.mulf %643, %646 : vector<8x32xf32>
    %649 = arith.addf %647, %648 : vector<8x32xf32>
    %650 = math.tanh %649 : vector<8x32xf32>
    %651 = arith.mulf %645, %650 : vector<8x32xf32>
    %652 = arith.truncf %651 : vector<8x32xf32> to vector<8x32xbf16>
    %c0_311 = arith.constant 0 : index
    %c0_312 = arith.constant 0 : index
    %653 = vector.load %arg6[%c0_311, %c0_312] : memref<32x128xbf16, #tpu.memory_space<vmem>>, vector<32x128xbf16>
    %cst_313 = arith.constant dense<0.000000e+00> : vector<8x128xf32>
    %654 = tpu.matmul %652, %653, %cst_313 {dimension_numbers = #tpu.dot_dimension_numbers<[1], [0], [0], [1], [0, 0, 1, 1], [], []>} : vector<8x32xbf16>, vector<32x128xbf16>, vector<8x128xf32> -> vector<8x128xf32>
    %c0_314 = arith.constant 0 : index
    %c0_315 = arith.constant 0 : index
    %655 = vector.load %arg4[%c0_314, %c0_315] : memref<8x128xf32, #tpu.memory_space<vmem>>, vector<8x128xf32>
    %656 = arith.addf %654, %655 : vector<8x128xf32>
    %cst_316 = arith.constant dense<0xFF800000> : vector<8xf32>
    %657 = vector.multi_reduction <maximumf>, %656, %cst_316 [1] : vector<8x128xf32> to vector<8xf32>
    %658 = vector.shape_cast %657 : vector<8xf32> to vector<8x1xf32>
    %659 = vector.broadcast %658 : vector<8x1xf32> to vector<8x128xf32>
    %660 = arith.subf %656, %659 : vector<8x128xf32>
    %661 = math.exp %660 : vector<8x128xf32>
    %662 = arith.truncf %661 : vector<8x128xf32> to vector<8x128xbf16>
    %c0_317 = arith.constant 0 : index
    %c0_318 = arith.constant 0 : index
    %663 = vector.load %arg3[%c0_317, %c0_318] : memref<128x32xbf16, #tpu.memory_space<vmem>>, vector<128x32xbf16>
    %cst_319 = arith.constant dense<0.000000e+00> : vector<8x32xf32>
    %664 = tpu.matmul %662, %663, %cst_319 {dimension_numbers = #tpu.dot_dimension_numbers<[1], [0], [0], [1], [0, 0, 1, 1], [], []>} : vector<8x128xbf16>, vector<128x32xbf16>, vector<8x32xf32> -> vector<8x32xf32>
    %cst_320 = arith.constant dense<0.000000e+00> : vector<8xf32>
    %665 = vector.multi_reduction <add>, %661, %cst_320 [1] : vector<8x128xf32> to vector<8xf32>
    %666 = vector.shape_cast %665 : vector<8xf32> to vector<8x1xf32>
    %667 = tpu.reciprocal %666 {approx = true} : vector<8x1xf32> -> vector<8x1xf32>
    %668 = vector.broadcast %667 : vector<8x1xf32> to vector<8x32xf32>
    %669 = arith.mulf %664, %668 : vector<8x32xf32>
    %670 = tpu.concatenate %669, %651 in 1 : vector<8x32xf32>, vector<8x32xf32> -> vector<8x64xf32>
    %671 = arith.truncf %670 : vector<8x64xf32> to vector<8x64xbf16>
    %c0_321 = arith.constant 0 : index
    %c0_322 = arith.constant 0 : index
    %672 = vector.load %arg7[%c0_321, %c0_322] : memref<64x32xbf16, #tpu.memory_space<vmem>>, vector<64x32xbf16>
    %cst_323 = arith.constant dense<0.000000e+00> : vector<8x32xf32>
    %673 = tpu.matmul %671, %672, %cst_323 {dimension_numbers = #tpu.dot_dimension_numbers<[1], [0], [0], [1], [0, 0, 1, 1], [], []>} : vector<8x64xbf16>, vector<64x32xbf16>, vector<8x32xf32> -> vector<8x32xf32>
    %674 = math.tanh %673 : vector<8x32xf32>
    %675 = tpu.concatenate %674, %628 in 1 : vector<8x32xf32>, vector<8x32xf32> -> vector<8x64xf32>
    %676 = arith.truncf %675 : vector<8x64xf32> to vector<8x64xbf16>
    %c0_324 = arith.constant 0 : index
    %c0_325 = arith.constant 0 : index
    %677 = vector.load %arg8[%c0_324, %c0_325] : memref<64x128xbf16, #tpu.memory_space<vmem>>, vector<64x128xbf16>
    %cst_326 = arith.constant dense<0.000000e+00> : vector<8x128xf32>
    %678 = tpu.matmul %676, %677, %cst_326 {dimension_numbers = #tpu.dot_dimension_numbers<[1], [0], [0], [1], [0, 0, 1, 1], [], []>} : vector<8x64xbf16>, vector<64x128xbf16>, vector<8x128xf32> -> vector<8x128xf32>
    %c0_327 = arith.constant 0 : index
    %c0_328 = arith.constant 0 : index
    %679 = vector.load %arg9[%c0_327, %c0_328] : memref<1x128xf32, #tpu.memory_space<vmem>>, vector<1x128xf32>
    %680 = vector.broadcast %679 : vector<1x128xf32> to vector<8x128xf32>
    %681 = arith.addf %678, %680 : vector<8x128xf32>
    %682 = math.tanh %681 : vector<8x128xf32>
    %cst_329 = arith.constant 5.000000e-01 : f32
    %683 = vector.broadcast %cst_329 : f32 to vector<8x128xf32>
    %684 = arith.mulf %683, %682 : vector<8x128xf32>
    %cst_330 = arith.constant 5.000000e-01 : f32
    %685 = vector.broadcast %cst_330 : f32 to vector<8x128xf32>
    %686 = arith.addf %684, %685 : vector<8x128xf32>
    %687 = vector.extract_strided_slice %686 {offsets = [0, 0], sizes = [8, 32], strides = [1, 1]} : vector<8x128xf32> to vector<8x32xf32>
    %688 = vector.extract_strided_slice %686 {offsets = [0, 32], sizes = [8, 32], strides = [1, 1]} : vector<8x128xf32> to vector<8x32xf32>
    %689 = vector.extract_strided_slice %686 {offsets = [0, 96], sizes = [8, 32], strides = [1, 1]} : vector<8x128xf32> to vector<8x32xf32>
    %690 = vector.extract_strided_slice %682 {offsets = [0, 64], sizes = [8, 32], strides = [1, 1]} : vector<8x128xf32> to vector<8x32xf32>
    %691 = arith.mulf %688, %603 : vector<8x32xf32>
    %692 = arith.mulf %687, %690 : vector<8x32xf32>
    %693 = arith.addf %691, %692 : vector<8x32xf32>
    %694 = math.tanh %693 : vector<8x32xf32>
    %695 = arith.mulf %689, %694 : vector<8x32xf32>
    %696 = arith.truncf %695 : vector<8x32xf32> to vector<8x32xbf16>
    %c0_331 = arith.constant 0 : index
    %c0_332 = arith.constant 0 : index
    %697 = vector.load %arg10[%c0_331, %c0_332] : memref<32x128xbf16, #tpu.memory_space<vmem>>, vector<32x128xbf16>
    %cst_333 = arith.constant dense<0.000000e+00> : vector<8x128xf32>
    %698 = tpu.matmul %696, %697, %cst_333 {dimension_numbers = #tpu.dot_dimension_numbers<[1], [0], [0], [1], [0, 0, 1, 1], [], []>} : vector<8x32xbf16>, vector<32x128xbf16>, vector<8x128xf32> -> vector<8x128xf32>
    %c0_334 = arith.constant 0 : index
    %c0_335 = arith.constant 0 : index
    %699 = vector.load %arg4[%c0_334, %c0_335] : memref<8x128xf32, #tpu.memory_space<vmem>>, vector<8x128xf32>
    %700 = arith.addf %698, %699 : vector<8x128xf32>
    %cst_336 = arith.constant dense<0xFF800000> : vector<8xf32>
    %701 = vector.multi_reduction <maximumf>, %700, %cst_336 [1] : vector<8x128xf32> to vector<8xf32>
    %702 = vector.shape_cast %701 : vector<8xf32> to vector<8x1xf32>
    %703 = vector.broadcast %702 : vector<8x1xf32> to vector<8x128xf32>
    %704 = arith.subf %700, %703 : vector<8x128xf32>
    %705 = math.exp %704 : vector<8x128xf32>
    %706 = arith.truncf %705 : vector<8x128xf32> to vector<8x128xbf16>
    %c0_337 = arith.constant 0 : index
    %c0_338 = arith.constant 0 : index
    %707 = vector.load %arg3[%c0_337, %c0_338] : memref<128x32xbf16, #tpu.memory_space<vmem>>, vector<128x32xbf16>
    %cst_339 = arith.constant dense<0.000000e+00> : vector<8x32xf32>
    %708 = tpu.matmul %706, %707, %cst_339 {dimension_numbers = #tpu.dot_dimension_numbers<[1], [0], [0], [1], [0, 0, 1, 1], [], []>} : vector<8x128xbf16>, vector<128x32xbf16>, vector<8x32xf32> -> vector<8x32xf32>
    %cst_340 = arith.constant dense<0.000000e+00> : vector<8xf32>
    %709 = vector.multi_reduction <add>, %705, %cst_340 [1] : vector<8x128xf32> to vector<8xf32>
    %710 = vector.shape_cast %709 : vector<8xf32> to vector<8x1xf32>
    %711 = tpu.reciprocal %710 {approx = true} : vector<8x1xf32> -> vector<8x1xf32>
    %712 = vector.broadcast %711 : vector<8x1xf32> to vector<8x32xf32>
    %713 = arith.mulf %708, %712 : vector<8x32xf32>
    %714 = tpu.concatenate %713, %695 in 1 : vector<8x32xf32>, vector<8x32xf32> -> vector<8x64xf32>
    %715 = arith.truncf %714 : vector<8x64xf32> to vector<8x64xbf16>
    %c0_341 = arith.constant 0 : index
    %c0_342 = arith.constant 0 : index
    %716 = vector.load %arg11[%c0_341, %c0_342] : memref<64x32xbf16, #tpu.memory_space<vmem>>, vector<64x32xbf16>
    %cst_343 = arith.constant dense<0.000000e+00> : vector<8x32xf32>
    %717 = tpu.matmul %715, %716, %cst_343 {dimension_numbers = #tpu.dot_dimension_numbers<[1], [0], [0], [1], [0, 0, 1, 1], [], []>} : vector<8x64xbf16>, vector<64x32xbf16>, vector<8x32xf32> -> vector<8x32xf32>
    %718 = math.tanh %717 : vector<8x32xf32>
    %c7_344 = arith.constant 7 : index
    %c0_345 = arith.constant 0 : index
    %c0_346 = arith.constant 0 : index
    %719 = vector.load %arg12[%c7_344, %c0_345, %c0_346] : memref<8x8x32xf32, #tpu.memory_space<vmem>>, vector<1x8x32xf32>
    %720 = vector.shape_cast %719 : vector<1x8x32xf32> to vector<8x32xf32>
    %721 = vector.shape_cast %718 : vector<8x32xf32> to vector<1x8x32xf32>
    tpu.vector_store %arg12[%c7_344, %c0_345, %c0_346], %721 {strides = array<i32>} : memref<8x8x32xf32, #tpu.memory_space<vmem>>, vector<1x8x32xf32>,
    %c0_347 = arith.constant 0 : index
    %c0_348 = arith.constant 0 : index
    %c0_349 = arith.constant 0 : index
    %722 = vector.load %arg13[%c0_347, %c0_348, %c0_349] : memref<2x8x32xf32, #tpu.memory_space<vmem>>, vector<1x8x32xf32>
    %723 = vector.shape_cast %722 : vector<1x8x32xf32> to vector<8x32xf32>
    %724 = vector.shape_cast %674 : vector<8x32xf32> to vector<1x8x32xf32>
    tpu.vector_store %arg13[%c0_347, %c0_348, %c0_349], %724 {strides = array<i32>} : memref<2x8x32xf32, #tpu.memory_space<vmem>>, vector<1x8x32xf32>,
    %c0_350 = arith.constant 0 : index
    %c0_351 = arith.constant 0 : index
    %c0_352 = arith.constant 0 : index
    %725 = vector.load %arg14[%c0_350, %c0_351, %c0_352] : memref<2x8x32xf32, #tpu.memory_space<vmem>>, vector<1x8x32xf32>
    %726 = vector.shape_cast %725 : vector<1x8x32xf32> to vector<8x32xf32>
    %727 = vector.shape_cast %649 : vector<8x32xf32> to vector<1x8x32xf32>
    tpu.vector_store %arg14[%c0_350, %c0_351, %c0_352], %727 {strides = array<i32>} : memref<2x8x32xf32, #tpu.memory_space<vmem>>, vector<1x8x32xf32>,
    %c1_353 = arith.constant 1 : index
    %c0_354 = arith.constant 0 : index
    %c0_355 = arith.constant 0 : index
    %728 = vector.load %arg13[%c1_353, %c0_354, %c0_355] : memref<2x8x32xf32, #tpu.memory_space<vmem>>, vector<1x8x32xf32>
    %729 = vector.shape_cast %728 : vector<1x8x32xf32> to vector<8x32xf32>
    %730 = vector.shape_cast %718 : vector<8x32xf32> to vector<1x8x32xf32>
    tpu.vector_store %arg13[%c1_353, %c0_354, %c0_355], %730 {strides = array<i32>} : memref<2x8x32xf32, #tpu.memory_space<vmem>>, vector<1x8x32xf32>,
    %c1_356 = arith.constant 1 : index
    %c0_357 = arith.constant 0 : index
    %c0_358 = arith.constant 0 : index
    %731 = vector.load %arg14[%c1_356, %c0_357, %c0_358] : memref<2x8x32xf32, #tpu.memory_space<vmem>>, vector<1x8x32xf32>
    %732 = vector.shape_cast %731 : vector<1x8x32xf32> to vector<8x32xf32>
    %733 = vector.shape_cast %693 : vector<8x32xf32> to vector<1x8x32xf32>
    tpu.vector_store %arg14[%c1_356, %c0_357, %c0_358], %733 {strides = array<i32>} : memref<2x8x32xf32, #tpu.memory_space<vmem>>, vector<1x8x32xf32>,
    return
  }
}

</mosaic_0001>

<bundles_post_ra>
// kernel: mul.25
= control target key start
LH: loop header
LB: loop body
LE: loop exit
PB: predicated region body
PF: predicated region fallthrough
CT: control target
= control target key end

     0   :  { %s34_s0 = inlined_call_operand.vmem [shape: f32[1,128], index: 0, kind: input, shape index: {}]   ;;  %s35_s1 = inlined_call_operand.vmem [shape: f32[1,128], index: 1, kind: input, shape index: {}]   ;;  %s36_s2 = inlined_call_operand.vmem [shape: f32[1,128], index: 2, kind: output, shape index: {}]  }
   0x1   :  { %v3_v0 = vld [vmem:[%s34_s0] sm:$0x1] }
   0x2   :  { %v4_v1 = vld [vmem:[%s35_s1] sm:$0x1] }
   0x3   :  { %v7_v2 = vmul.f32 %v4_v1, %v3_v0 }
   0x5   :  { %9 = vst [vmem:[%s36_s2] sm:$0x1] %v7_v2 }

// kernel: stacked_attention_lstm.1
= control target key start
LH: loop header
LB: loop body
LE: loop exit
PB: predicated region body
PF: predicated region fallthrough
CT: control target
= control target key end

     0   :  { %20 = vsyncpa [#allocation3], 0  ;;  %v7126_v1 = vmov 0.0   ;;  %vm7127_vm0 = vmmov 0   ;;  %vm67_vm1 = vcmask 261120   ;;  %s8925_s0 = inlined_call_operand.vmem [shape: f32[8,8,128], index: 0, kind: input, shape index: {}]   ;;  %s8926_s1 = inlined_call_operand.vmem [shape: f32[8,32], index: 1, kind: input, shape index: {}]   ;;  %s8927_s2 = inlined_call_operand.vmem [shape: f32[8,32], index: 2, kind: input, shape index: {}]   ;;  %s8928_s3 = inlined_call_operand.vmem [shape: bf16[128,32], index: 3, kind: input, shape index: {}]   ;;  %s8929_s4 = inlined_call_operand.vmem [shape: f32[8,128], index: 4, kind: input, shape index: {}]   ;;  %s8930_s5 = inlined_call_operand.vmem [shape: bf16[32,128], index: 5, kind: input, shape index: {}]   ;;  %s8931_s6 = inlined_call_operand.vmem [shape: bf16[32,128], index: 6, kind: input, shape index: {}]   ;;  %s8932_s7 = inlined_call_operand.vmem [shape: bf16[64,32], index: 7, kind: input, shape index: {}]   ;;  %s8933_s8 = inlined_call_operand.vmem [shape: bf16[64,128], index: 8, kind: input, shape index: {}]   ;;  %s8934_s9 = inlined_call_operand.vmem [shape: f32[1,128], index: 9, kind: input, shape index: {}]   ;;  %s8935_s10 = inlined_call_operand.vmem [shape: bf16[32,128], index: 10, kind: input, shape index: {}]   ;;  %s8936_s11 = inlined_call_operand.vmem [shape: bf16[64,32], index: 11, kind: input, shape index: {}]   ;;  %s8937_s12 = inlined_call_operand.vmem [shape: f32[8,8,32], index: 12, kind: output, shape index: {0}]   ;;  %s8938_s13 = inlined_call_operand.hbm [shape: f32[2,8,32], index: 13, kind: output, shape index: {1}]   ;;  %s8939_s14 = inlined_call_operand.hbm [shape: f32[2,8,32], index: 14, kind: output, shape index: {2}]  }
   0x1   :  { %v6710_v0 = vld [vmem:[%s8930_s5] sm:$0xff]   ;;  %5901 = vmatprep.subr.bf16.mxu1 %v7126_v1  ;;  %5917 = vmatprep.subr.bf16.mxu0 %v7126_v1  ;;  %v6711_v2 = vld [vmem:[%s8930_s5 + $0x8] sm:$0xff]  }
   0x2   :  { %5902 = vmatpush3.bf16.msra.mxu1 %v6710_v0  ;;  %5905 = vmatprep.mubr.msk.bf16.mxu1 %vm7127_vm0, %v7126_v1  ;;  %v7223_v3 = vld [vmem:[%s8926_s1] sm:$0xff] }
   0x3   :  { %5903 = vmatprep.subr.bf16.mxu1 %v7126_v1  ;;  %5933 = vmatprep.mubr.msk.bf16.mxu0 %vm7127_vm0, %v7126_v1  ;;  %v50_v4 = vpack.c.bf16 %v7223_v3, %v7223_v3 }
   0x6   :  { %5904 = vmatpush3.bf16.msra.mxu1 %v6711_v2 }
   0x7   :  { %5909 = vmatprep.subr.bf16.mxu1 %v7126_v1 }
   0x9   :  { %5906 = vmatmul.mubr.msk.bf16.vlgmr.msra.gmra.mrb[0].mxu1 %vm67_vm1, %v50_v4 }
   0xa   :  { %5913 = vmatprep.mubr.msk.bf16.mxu1 %vm7127_vm0, %v7126_v1 }
   0xb   :  { %21 = vsyncpa [#allocation5], 0  ;;  %v49_v5 = vld [vmem:[%s8925_s0] sm:$0xff]  ;;  %s7128_s20 = smov 64   ;;  %s7129_s23 = smov 32   ;;  %v6713_v22 = vld [vmem:[%s8931_s6 + $0x8] sm:$0xff]  }
   0xc   :  { %v48_v12 = vld [vmem:[%s8927_s2] sm:$0xff]  ;;  %v7271_v29 = vld [vmem:[%s8928_s3 + $0x8] sm:$0xff]   ;;  %v7278_v30 = vld [vmem:[%s8928_s3 + $0x10] sm:$0xff]   ;;  %vm352_vm2 = vcmask 523264  }
   0xd   :  { %v6712_v21 = vld [vmem:[%s8931_s6] sm:$0xff]   ;;  %v7285_v31 = vld [vmem:[%s8928_s3 + $0x18] sm:$0xff]   ;;  %v7308_v39 = vld [vmem:[%s8928_s3 + $0x28] sm:$0xff]  }
   0xe   :  { %5910 = vmatpush3.bf16.msra.mxu1 %v6712_v21  ;;  %v7265_v28 = vld [vmem:[%s8928_s3] sm:$0xff]   ;;  %v7314_v40 = vld [vmem:[%s8928_s3 + $0x30] sm:$0xff]   ;;  %v7321_v41 = vld [vmem:[%s8928_s3 + $0x38] sm:$0xff]  }
   0xf   :  { %5911 = vmatprep.subr.bf16.mxu1 %v7126_v1  ;;  %5918 = vmatpush3.bf16.msra.mxu0 %v7265_v28  ;;  %v7293_v32 = vld [vmem:[%s8929_s4] sm:$0xff]  ;;  %v6723_v48 = vld [vmem:[%s8932_s7 + $0x8] sm:$0xff]   ;;  %v6724_v49 = vld [vmem:[%s8932_s7 + $0x10] sm:$0xff]  }
  0x10   :  { %5919 = vmatprep.subr.bf16.mxu0 %v7126_v1  ;;  %v7299_v38 = vld [vmem:[%s8928_s3 + $0x20] sm:$0xff]   ;;  %v6725_v50 = vld [vmem:[%s8932_s7 + $0x18] sm:$0xff]   ;;  %v6727_v62 = vld [vmem:[%s8933_s8 + $0x8] sm:$0xff]  }
  0x11   :  { %v6722_v47 = vld [vmem:[%s8932_s7] sm:$0xff]   ;;  %v6728_v63 = vld [vmem:[%s8933_s8 + $0x10] sm:$0xff]   ;;  %v6729_v0 = vld [vmem:[%s8933_s8 + $0x18] sm:$0xff]  }
  0x12   :  { %5912 = vmatpush3.bf16.msra.mxu1 %v6713_v22  ;;  %v6726_v61 = vld [vmem:[%s8933_s8] sm:$0xff]  }
  0x13   :  { %5937 = vmatprep.subr.bf16.mxu1 %v7126_v1  ;;  %5920 = vmatpush3.bf16.msra.mxu0 %v7271_v29 }
  0x14   :  { %5921 = vmatprep.subr.bf16.mxu0 %v7126_v1 }
  0x17   :  { %5922 = vmatpush3.bf16.msra.mxu0 %v7278_v30 }
  0x18   :  { %5923 = vmatprep.subr.bf16.mxu0 %v7126_v1 }
  0x1b   :  { %5924 = vmatpush3.bf16.msra.mxu0 %v7285_v31 }
  0x1c   :  { %5925 = vmatprep.subr.bf16.mxu0 %v7126_v1 }
  0x1f   :  { %5926 = vmatpush3.bf16.msra.mxu0 %v7299_v38 }
  0x20   :  { %5927 = vmatprep.subr.bf16.mxu0 %v7126_v1 }
  0x23   :  { %5928 = vmatpush3.bf16.msra.mxu0 %v7308_v39 }
  0x24   :  { %5929 = vmatprep.subr.bf16.mxu0 %v7126_v1 }
  0x27   :  { %5930 = vmatpush3.bf16.msra.mxu0 %v7314_v40 }
  0x28   :  { %5931 = vmatprep.subr.bf16.mxu0 %v7126_v1 }
  0x2b   :  { %5932 = vmatpush3.bf16.msra.mxu0 %v7321_v41 }
  0x2c   :  { %5961 = vmatprep.subr.bf16.mxu0 %v7126_v1 }
  0xdc   :  { %v105_v6 = vpop.f32.mrb[0].mxu1 }
  0xdd   :  { %v111_v7 = vadd.f32 %v105_v6, %v49_v5  ;;  %v5907_v8 = vpop.f32.mrb[1].mxu1 }
  0xde   :  { %v108_v9 = vpop.f32.mrb[2].mxu1 }
  0xdf   :  { %6918 = vtanh.f32 %v111_v7  ;;  %v5908_v10 = vpop.f32.mrb[3].mxu1 }
  0xe0   :  { %v7391_v10 = vld [vmem:[%s8934_s9] ss:$0 sm:$0xff] }
  0xe9   :  { %v6919_v11 = vpop.eup %6918 }
  0xea   :  { %121 = vrot.lane.b32.xlu0 %v6919_v11, %s7128_s20  ;;  %v113_v13 = vmul.f32 0.5, %v6919_v11 }
  0xec   :  { %v114_v14 = vadd.f32 0.5, %v113_v13 }
  0xee   :  { %116 = vrot.lane.b32.xlu0 %v48_v12, %s7129_s23 }
 0x15c   :  { %v122_v15 = vpop.permute.xlu0 %121 }
 0x15d   :  { %v124_v16 = vmul.f32 %v122_v15, %v114_v14 }
 0x15f   :  { %126 = vrot.lane.b32.xlu1 %v124_v16, %s7129_s23 }
 0x160   :  { %v7243_v17 = vpop.permute.xlu0 %116 }
 0x161   :  { %v119_v18 = vmul.f32 %v7243_v17, %v114_v14 }
 0x1d1   :  { %v127_v19 = vpop.permute.xlu1 %126 }
 0x1d2   :  { %v7246_v20 = vadd.f32 %v127_v19, %v119_v18 }
 0x1d4   :  { %6920 = vtanh.f32 %v7246_v20 }
 0x1de   :  { %v6921_v23 = vpop.eup %6920 }
 0x1df   :  { %132 = vrot.lane.b32.xlu1 %v6921_v23, %s7128_s20 }
 0x251   :  { %v133_v24 = vpop.permute.xlu1 %132 }
 0x252   :  { %v135_v25 = vmul.f32 %v133_v24, %v114_v14 }
 0x254   :  { %v136_v26 = vpack.c.bf16 %v135_v25, %v135_v25 }
 0x256   :  { %143 = vrot.lane.b32.xlu0 %v136_v26, %s7129_s23  ;;  %v6730_v26 = vld [vmem:[%s8935_s10] sm:$0xff]  }
 0x2c8   :  { %v144_v27 = vpop.permute.xlu0 %143 }
 0x2c9   :  { %5914 = vmatmul.mubr.msk.bf16.vlgmr.msra.gmra.mrb[4].mxu1 %vm67_vm1, %v144_v27  ;;  %v6731_v27 = vld [vmem:[%s8935_s10 + $0x8] sm:$0xff]  }
 0x2ca   :  { %5945 = vmatprep.mubr.msk.bf16.mxu1 %vm7127_vm0, %v7126_v1  ;;  %5938 = vmatpush3.bf16.msra.mxu1 %v6722_v47 }
 0x2cb   :  { %5939 = vmatprep.subr.bf16.mxu1 %v7126_v1 }
 0x2ce   :  { %5940 = vmatpush3.bf16.msra.mxu1 %v6723_v48 }
 0x2cf   :  { %5941 = vmatprep.subr.bf16.mxu1 %v7126_v1 }
 0x2d2   :  { %5942 = vmatpush3.bf16.msra.mxu1 %v6724_v49 }
 0x2d3   :  { %5943 = vmatprep.subr.bf16.mxu1 %v7126_v1 }
 0x2d6   :  { %5944 = vmatpush3.bf16.msra.mxu1 %v6725_v50 }
 0x2d7   :  { %5949 = vmatprep.subr.bf16.mxu1 %v7126_v1 }
 0x39c   :  { %v194_v33 = vpop.f32.mrb[4].mxu1 }
 0x39d   :  { %v195_v34 = vadd.f32 %v194_v33, %v7293_v32  ;;  %v5915_v35 = vpop.f32.mrb[5].mxu1 }
 0x39e   :  { %v197_v36 = vpop.f32.mrb[6].mxu1 }
 0x39f   :  { %200 = vmax.xlane.f32.xlu1 %v195_v34  ;;  %v5916_v37 = vpop.f32.mrb[7].mxu1 }
 0x3b0   :  { %398 = vrot.lane.b32.xlu1 %v7223_v3, %s7129_s23 }
 0x42c   :  { %v201_v42 = vpop.xlane.xlu1 %200 }
 0x42d   :  { %v202_v43 = vsub.f32 %v195_v34, %v201_v42 }
 0x42f   :  { %v203_v44 = vmul.f32 1.442695, %v202_v43  ;;  %v6732_v43 = vld [vmem:[%s8936_s11] sm:$0xff]  }
 0x430   :  { %v399_v6 = vpop.permute.xlu1 %398 }
 0x431   :  { %6922 = vpow2.f32 %v203_v44  ;;  %v6733_v44 = vld [vmem:[%s8936_s11 + $0x8] sm:$0xff]  }
 0x43b   :  { %v6923_v45 = vpop.eup %6922 }
 0x43c   :  { %310 = vadd.xlane.f32.xlu0 %v6923_v45  ;;  %v205_v46 = vpack.c.bf16 %v6923_v45, %v6923_v45  ;;  %v6734_v45 = vld [vmem:[%s8936_s11 + $0x10] sm:$0xff]  }
 0x43e   :  { %5934 = vmatmul.mubr.bf16.vlgmr.msra.gmra.mrb[0].mxu0 %v205_v46  ;;  %v6735_v46 = vld [vmem:[%s8936_s11 + $0x18] sm:$0xff]  }
 0x43f   :  { %5965 = vmatprep.mubr.msk.bf16.mxu0 %vm7127_vm0, %v7126_v1  ;;  %5962 = vmatpush3.bf16.msra.mxu0 %v6730_v26  ;;  %v7482_v26 = vld [vmem:[%s8928_s3] sm:$0xff]  }
 0x440   :  { %5963 = vmatprep.subr.bf16.mxu0 %v7126_v1 }
 0x443   :  { %5964 = vmatpush3.bf16.msra.mxu0 %v6731_v27  ;;  %v7488_v27 = vld [vmem:[%s8928_s3 + $0x8] sm:$0xff]  }
 0x444   :  { %5989 = vmatprep.subr.bf16.mxu0 %v7126_v1 }
 0x452   :  { %315 = vrot.lane.b32.xlu0 %v135_v25, %s7128_s20 }
 0x4c9   :  { %v311_v51 = vpop.xlane.xlu0 %310 }
 0x4ca   :  { %6924 = vrcp.f32 %v311_v51 }
 0x4cd   :  { %v316_v56 = vpop.permute.xlu0 %315 }
 0x4d4   :  { %v6925_v52 = vpop.eup %6924 }
 0x511   :  { %v304_v53 = vpop.f32.mrb[0].mxu0 }
 0x512   :  { %v313_v54 = vmul.f32 %v6925_v52, %v304_v53  ;;  %v5935_v55 = vpop.f32.mrb[1].mxu0 }
 0x513   :  { %v307_v57 = vpop.f32.mrb[2].mxu0 }
 0x514   :  { %v318_v58 = vsel %vm67_vm1, %v313_v54, %v316_v56  ;;  %v5936_v59 = vpop.f32.mrb[3].mxu0  ;;  %v6736_v56 = vld [vmem:[%s8930_s5] sm:$0xff]  }
 0x515   :  { %v319_v60 = vpack.c.bf16 %v318_v58, %v318_v58  ;;  %v6737_v58 = vld [vmem:[%s8930_s5 + $0x8] sm:$0xff]  }
 0x517   :  { %5946 = vmatmul.mubr.msk.bf16.vlgmr.msra.gmra.mrb[8].mxu1 %vm352_vm2, %v319_v60 }
 0x518   :  { %5957 = vmatprep.mubr.msk.bf16.mxu1 %vm7127_vm0, %v7126_v1  ;;  %5950 = vmatpush3.bf16.msra.mxu1 %v6726_v61 }
 0x519   :  { %5951 = vmatprep.subr.bf16.mxu1 %v7126_v1 }
 0x51c   :  { %5952 = vmatpush3.bf16.msra.mxu1 %v6727_v62 }
 0x51d   :  { %5953 = vmatprep.subr.bf16.mxu1 %v7126_v1 }
 0x520   :  { %5954 = vmatpush3.bf16.msra.mxu1 %v6728_v63 }
 0x521   :  { %5955 = vmatprep.subr.bf16.mxu1 %v7126_v1 }
 0x524   :  { %5956 = vmatpush3.bf16.msra.mxu1 %v6729_v0  ;;  %v5320_v0 = vld [vmem:[%s8925_s0 + $0x8] sm:$0xff] }
 0x525   :  { %5969 = vmatprep.subr.bf16.mxu1 %v7126_v1 }
 0x5ea   :  { %v390_v2 = vpop.f32.mrb[8].mxu1 }
 0x5eb   :  { %6926 = vtanh.f32 %v390_v2  ;;  %v5947_v3 = vpop.f32.mrb[9].mxu1 }
 0x5ec   :  { %v393_v4 = vpop.f32.mrb[10].mxu1 }
 0x5ed   :  { %v5948_v5 = vpop.f32.mrb[11].mxu1 }
 0x5f5   :  { %v7365_v7 = vpop.eup %6926 }
 0x5f6   :  { %v401_v8 = vsel %vm67_vm1, %v7365_v7, %v399_v6  ;;  %v703_v59 = vpack.c.bf16 %v7365_v7, %v7365_v7 }
 0x5f7   :  { %v402_v9 = vpack.c.bf16 %v401_v8, %v401_v8 }
 0x5f9   :  { %5958 = vmatmul.mubr.msk.bf16.vlgmr.msra.gmra.mrb[12].mxu1 %vm352_vm2, %v402_v9 }
 0x5fa   :  { %5970 = vmatpush3.bf16.msra.mxu1 %v7265_v28  ;;  %5985 = vmatprep.mubr.msk.bf16.mxu1 %vm7127_vm0, %v7126_v1 }
 0x5fb   :  { %5971 = vmatprep.subr.bf16.mxu1 %v7126_v1 }
 0x5fe   :  { %5972 = vmatpush3.bf16.msra.mxu1 %v7271_v29 }
 0x5ff   :  { %5973 = vmatprep.subr.bf16.mxu1 %v7126_v1 }
 0x602   :  { %5974 = vmatpush3.bf16.msra.mxu1 %v7278_v30 }
 0x603   :  { %5975 = vmatprep.subr.bf16.mxu1 %v7126_v1 }
 0x606   :  { %5976 = vmatpush3.bf16.msra.mxu1 %v7285_v31 }
 0x607   :  { %5977 = vmatprep.subr.bf16.mxu1 %v7126_v1 }
 0x60a   :  { %5978 = vmatpush3.bf16.msra.mxu1 %v7299_v38 }
 0x60b   :  { %5979 = vmatprep.subr.bf16.mxu1 %v7126_v1 }
 0x60e   :  { %5980 = vmatpush3.bf16.msra.mxu1 %v7308_v39 }
 0x60f   :  { %5981 = vmatprep.subr.bf16.mxu1 %v7126_v1 }
 0x612   :  { %5982 = vmatpush3.bf16.msra.mxu1 %v7314_v40 }
 0x613   :  { %5983 = vmatprep.subr.bf16.mxu1 %v7126_v1 }
 0x616   :  { %5984 = vmatpush3.bf16.msra.mxu1 %v7321_v41 }
 0x617   :  { %6017 = vmatprep.subr.bf16.mxu1 %v7126_v1 }
 0x6cc   :  { %v479_v11 = vpop.f32.mrb[12].mxu1 }
 0x6cd   :  { %v480_v12 = vadd.f32 %v7391_v10, %v479_v11  ;;  %v5959_v13 = vpop.f32.mrb[13].mxu1 }
 0x6ce   :  { %v482_v14 = vpop.f32.mrb[14].mxu1 }
 0x6cf   :  { %6928 = vtanh.f32 %v480_v12  ;;  %v5960_v15 = vpop.f32.mrb[15].mxu1 }
 0x6d9   :  { %v6929_v16 = vpop.eup %6928 }
 0x6da   :  { %490 = vrot.lane.b32.xlu1 %v6929_v16, %s7128_s20  ;;  %v486_v18 = vmul.f32 0.5, %v6929_v16 }
 0x6dc   :  { %v487_v19 = vadd.f32 0.5, %v486_v18  ;;  %v6738_v18 = vld [vmem:[%s8931_s6] sm:$0xff]  }
 0x6de   :  { %v488_v23 = vmul.f32 %v487_v19, %v7243_v17 }
 0x74c   :  { %v491_v21 = vpop.permute.xlu1 %490 }
 0x74d   :  { %v493_v22 = vmul.f32 %v491_v21, %v487_v19 }
 0x74f   :  { %495 = vrot.lane.b32.xlu0 %v493_v22, %s7129_s23 }
 0x7c1   :  { %v496_v24 = vpop.permute.xlu0 %495 }
 0x7c2   :  { %v7397_v25 = vadd.f32 %v496_v24, %v488_v23 }
 0x7c4   :  { %6930 = vtanh.f32 %v7397_v25 }
 0x7ce   :  { %v6931_v17 = vpop.eup %6930 }
 0x7cf   :  { %501 = vrot.lane.b32.xlu1 %v6931_v17, %s7128_s20  ;;  %v7495_v17 = vld [vmem:[%s8928_s3 + $0x10] sm:$0xff]  }
 0x841   :  { %v502_v28 = vpop.permute.xlu1 %501 }
 0x842   :  { %v504_v29 = vmul.f32 %v502_v28, %v487_v19  ;;  %v6739_v19 = vld [vmem:[%s8931_s6 + $0x8] sm:$0xff]   ;;  %v7502_v28 = vld [vmem:[%s8928_s3 + $0x18] sm:$0xff]  }
 0x844   :  { %v505_v30 = vpack.c.bf16 %v504_v29, %v504_v29 }
 0x846   :  { %511 = vrot.lane.b32.xlu0 %v505_v30, %s7129_s23 }
 0x8b8   :  { %v512_v31 = vpop.permute.xlu0 %511 }
 0x8b9   :  { %5966 = vmatmul.mubr.msk.bf16.vlgmr.msra.gmra.mrb[4].mxu0 %vm67_vm1, %v512_v31 }
 0x8ba   :  { %5997 = vmatprep.mubr.msk.bf16.mxu0 %vm7127_vm0, %v7126_v1  ;;  %5990 = vmatpush3.bf16.msra.mxu0 %v6732_v43 }
 0x8bb   :  { %5991 = vmatprep.subr.bf16.mxu0 %v7126_v1 }
 0x8be   :  { %5992 = vmatpush3.bf16.msra.mxu0 %v6733_v44  ;;  %v6748_v44 = vld [vmem:[%s8932_s7] sm:$0xff]  }
 0x8bf   :  { %5993 = vmatprep.subr.bf16.mxu0 %v7126_v1 }
 0x8c2   :  { %5994 = vmatpush3.bf16.msra.mxu0 %v6734_v45  ;;  %v6749_v45 = vld [vmem:[%s8932_s7 + $0x8] sm:$0xff]  }
 0x8c3   :  { %5995 = vmatprep.subr.bf16.mxu0 %v7126_v1 }
 0x8c6   :  { %5996 = vmatpush3.bf16.msra.mxu0 %v6735_v46  ;;  %v6750_v46 = vld [vmem:[%s8932_s7 + $0x10] sm:$0xff]  }
 0x8c7   :  { %6001 = vmatprep.subr.bf16.mxu0 %v7126_v1 }
 0x98c   :  { %v562_v33 = vpop.f32.mrb[4].mxu0 }
 0x98d   :  { %v563_v34 = vadd.f32 %v562_v33, %v7293_v32  ;;  %v5967_v35 = vpop.f32.mrb[5].mxu0 }
 0x98e   :  { %v565_v36 = vpop.f32.mrb[6].mxu0  ;;  %v7511_v35 = vld [vmem:[%s8928_s3 + $0x20] sm:$0xff]  }
 0x98f   :  { %568 = vmax.xlane.f32.xlu1 %v563_v34  ;;  %v5968_v37 = vpop.f32.mrb[7].mxu0  ;;  %v7518_v36 = vld [vmem:[%s8928_s3 + $0x28] sm:$0xff]  }
 0x990   :  { %v7524_v37 = vld [vmem:[%s8928_s3 + $0x30] sm:$0xff]  }
 0xa1c   :  { %v569_v38 = vpop.xlane.xlu1 %568 }
 0xa1d   :  { %v570_v39 = vsub.f32 %v563_v34, %v569_v38  ;;  %v7532_v38 = vld [vmem:[%s8928_s3 + $0x38] sm:$0xff]  }
 0xa1f   :  { %v571_v40 = vmul.f32 1.442695, %v570_v39 }
 0xa21   :  { %6932 = vpow2.f32 %v571_v40 }
 0xa2b   :  { %v6933_v41 = vpop.eup %6932 }
 0xa2c   :  { %614 = vadd.xlane.f32.xlu0 %v6933_v41  ;;  %v573_v42 = vpack.c.bf16 %v6933_v41, %v6933_v41 }
 0xa2e   :  { %5986 = vmatmul.mubr.bf16.vlgmr.msra.gmra.mrb[16].mxu1 %v573_v42 }
 0xa2f   :  { %6033 = vmatprep.mubr.msk.bf16.mxu1 %vm7127_vm0, %v7126_v1  ;;  %6018 = vmatpush3.bf16.msra.mxu1 %v7482_v26 }
 0xa30   :  { %6019 = vmatprep.subr.bf16.mxu1 %v7126_v1 }
 0xa33   :  { %6020 = vmatpush3.bf16.msra.mxu1 %v7488_v27 }
 0xa34   :  { %6021 = vmatprep.subr.bf16.mxu1 %v7126_v1 }
 0xa37   :  { %6022 = vmatpush3.bf16.msra.mxu1 %v7495_v17 }
 0xa38   :  { %6023 = vmatprep.subr.bf16.mxu1 %v7126_v1 }
 0xa3b   :  { %6024 = vmatpush3.bf16.msra.mxu1 %v7502_v28 }
 0xa3c   :  { %6025 = vmatprep.subr.bf16.mxu1 %v7126_v1 }
 0xa3f   :  { %6026 = vmatpush3.bf16.msra.mxu1 %v7511_v35 }
 0xa40   :  { %6027 = vmatprep.subr.bf16.mxu1 %v7126_v1 }
 0xa42   :  { %619 = vrot.lane.b32.xlu0 %v504_v29, %s7128_s20 }
 0xa43   :  { %6028 = vmatpush3.bf16.msra.mxu1 %v7518_v36 }
 0xa44   :  { %6029 = vmatprep.subr.bf16.mxu1 %v7126_v1 }
 0xa47   :  { %6030 = vmatpush3.bf16.msra.mxu1 %v7524_v37 }
 0xa48   :  { %6031 = vmatprep.subr.bf16.mxu1 %v7126_v1 }
 0xa4b   :  { %6032 = vmatpush3.bf16.msra.mxu1 %v7532_v38 }
 0xa4c   :  { %6061 = vmatprep.subr.bf16.mxu1 %v7126_v1 }
 0xab9   :  { %v615_v47 = vpop.xlane.xlu0 %614 }
 0xaba   :  { %6934 = vrcp.f32 %v615_v47  ;;  %v6751_v47 = vld [vmem:[%s8932_s7 + $0x18] sm:$0xff]  }
 0xabd   :  { %v620_v52 = vpop.permute.xlu0 %619 }
 0xac4   :  { %v6935_v48 = vpop.eup %6934 }
 0xb01   :  { %v608_v49 = vpop.f32.mrb[16].mxu1 }
 0xb02   :  { %v617_v50 = vmul.f32 %v6935_v48, %v608_v49  ;;  %v5987_v51 = vpop.f32.mrb[17].mxu1 }
 0xb03   :  { %v611_v53 = vpop.f32.mrb[18].mxu1 }
 0xb04   :  { %v622_v54 = vsel %vm67_vm1, %v617_v50, %v620_v52  ;;  %v5988_v55 = vpop.f32.mrb[19].mxu1 }
 0xb05   :  { %v623_v57 = vpack.c.bf16 %v622_v54, %v622_v54 }
 0xb07   :  { %5998 = vmatmul.mubr.msk.bf16.vlgmr.msra.gmra.mrb[8].mxu0 %vm352_vm2, %v623_v57 }
 0xb08   :  { %6002 = vmatpush3.bf16.msra.mxu0 %v6736_v56  ;;  %6005 = vmatprep.mubr.msk.bf16.mxu0 %vm7127_vm0, %v7126_v1 }
 0xb09   :  { %6003 = vmatprep.subr.bf16.mxu0 %v7126_v1 }
 0xb0c   :  { %6004 = vmatpush3.bf16.msra.mxu0 %v6737_v58  ;;  %v6752_v58 = vld [vmem:[%s8933_s8] sm:$0xff]  }
 0xb0d   :  { %6009 = vmatprep.subr.bf16.mxu0 %v7126_v1 }
 0xb0f   :  { %6006 = vmatmul.mubr.msk.bf16.vlgmr.msra.gmra.mrb[12].mxu0 %vm67_vm1, %v703_v59  ;;  %v6753_v59 = vld [vmem:[%s8933_s8 + $0x8] sm:$0xff]  }
 0xb10   :  { %6013 = vmatprep.mubr.msk.bf16.mxu0 %vm7127_vm0, %v7126_v1  ;;  %6010 = vmatpush3.bf16.msra.mxu0 %v6738_v18 }
 0xb11   :  { %6011 = vmatprep.subr.bf16.mxu0 %v7126_v1 }
 0xb14   :  { %6012 = vmatpush3.bf16.msra.mxu0 %v6739_v19 }
 0xb15   :  { %6037 = vmatprep.subr.bf16.mxu0 %v7126_v1 }
 0xbda   :  { %v693_v60 = vpop.f32.mrb[8].mxu0 }
 0xbdb   :  { %6936 = vtanh.f32 %v693_v60  ;;  %v5999_v61 = vpop.f32.mrb[9].mxu0  ;;  %v6754_v60 = vld [vmem:[%s8933_s8 + $0x10] sm:$0xff]  }
 0xbdc   :  { %v696_v62 = vpop.f32.mrb[10].mxu0  ;;  %v6755_v61 = vld [vmem:[%s8933_s8 + $0x18] sm:$0xff]  }
 0xbdd   :  { %v6000_v63 = vpop.f32.mrb[11].mxu0 }
 0xbe2   :  { %v757_v2 = vpop.f32.mrb[12].mxu0 }
 0xbe3   :  { %v763_v3 = vadd.f32 %v5320_v0, %v757_v2  ;;  %v6007_v4 = vpop.f32.mrb[13].mxu0 }
 0xbe4   :  { %v760_v5 = vpop.f32.mrb[14].mxu0 }
 0xbe5   :  { %v7453_v6 = vpop.eup %6936  ;;  %6938 = vtanh.f32 %v763_v3  ;;  %v6008_v7 = vpop.f32.mrb[15].mxu0 }
 0xbe6   :  { %700 = vst.msk [vmem:[%s8937_s12] sm:$0xff] %vm67_vm1, %v7453_v6 }
 0xbef   :  { %v6939_v8 = vpop.eup %6938 }
 0xbf0   :  { %769 = vrot.lane.b32.xlu1 %v6939_v8, %s7128_s20  ;;  %v765_v9 = vmul.f32 0.5, %v6939_v8 }
 0xbf2   :  { %v766_v11 = vadd.f32 0.5, %v765_v9 }
 0xbf4   :  { %v767_v14 = vmul.f32 %v766_v11, %v7246_v20 }
 0xc62   :  { %v770_v12 = vpop.permute.xlu1 %769 }
 0xc63   :  { %v772_v13 = vmul.f32 %v770_v12, %v766_v11 }
 0xc65   :  { %774 = vrot.lane.b32.xlu1 %v772_v13, %s7129_s23 }
 0xcd7   :  { %v775_v15 = vpop.permute.xlu1 %774 }
 0xcd8   :  { %v7463_v16 = vadd.f32 %v775_v15, %v767_v14 }
 0xcda   :  { %6940 = vtanh.f32 %v7463_v16 }
 0xce4   :  { %v6941_v20 = vpop.eup %6940 }
 0xce5   :  { %780 = vrot.lane.b32.xlu0 %v6941_v20, %s7128_s20 }
 0xd57   :  { %v781_v21 = vpop.permute.xlu0 %780 }
 0xd58   :  { %v783_v22 = vmul.f32 %v781_v21, %v766_v11 }
 0xd5a   :  { %v784_v23 = vpack.c.bf16 %v783_v22, %v783_v22 }
 0xd5c   :  { %791 = vrot.lane.b32.xlu1 %v784_v23, %s7129_s23  ;;  %v6757_v23 = vld [vmem:[%s8935_s10 + $0x8] sm:$0xff]  }
 0xdce   :  { %v792_v24 = vpop.permute.xlu1 %791 }
 0xdcf   :  { %6014 = vmatmul.mubr.msk.bf16.vlgmr.msra.gmra.mrb[16].mxu0 %vm67_vm1, %v792_v24 }
 0xdd0   :  { %6045 = vmatprep.mubr.msk.bf16.mxu0 %vm7127_vm0, %v7126_v1  ;;  %6038 = vmatpush3.bf16.msra.mxu0 %v6748_v44 }
 0xdd1   :  { %6039 = vmatprep.subr.bf16.mxu0 %v7126_v1 }
 0xdd4   :  { %6040 = vmatpush3.bf16.msra.mxu0 %v6749_v45 }
 0xdd5   :  { %6041 = vmatprep.subr.bf16.mxu0 %v7126_v1 }
 0xdd8   :  { %6042 = vmatpush3.bf16.msra.mxu0 %v6750_v46 }
 0xdd9   :  { %6043 = vmatprep.subr.bf16.mxu0 %v7126_v1 }
 0xddc   :  { %6044 = vmatpush3.bf16.msra.mxu0 %v6751_v47 }
 0xddd   :  { %6049 = vmatprep.subr.bf16.mxu0 %v7126_v1 }
 0xea2   :  { %v842_v29 = vpop.f32.mrb[16].mxu0 }
 0xea3   :  { %v843_v30 = vadd.f32 %v842_v29, %v7293_v32  ;;  %v6015_v31 = vpop.f32.mrb[17].mxu0 }
 0xea4   :  { %v845_v33 = vpop.f32.mrb[18].mxu0 }
 0xea5   :  { %848 = vmax.xlane.f32.xlu0 %v843_v30  ;;  %v6016_v34 = vpop.f32.mrb[19].mxu0 }
 0xebb   :  { %963 = vrot.lane.b32.xlu0 %v783_v22, %s7128_s20 }
 0xf32   :  { %v849_v39 = vpop.xlane.xlu0 %848 }
 0xf33   :  { %v850_v40 = vsub.f32 %v843_v30, %v849_v39  ;;  %v6759_v39 = vld [vmem:[%s8936_s11 + $0x8] sm:$0xff]  }
 0xf35   :  { %v851_v41 = vmul.f32 1.442695, %v850_v40  ;;  %v6760_v40 = vld [vmem:[%s8936_s11 + $0x10] sm:$0xff]  }
 0xf36   :  { %v964_v53 = vpop.permute.xlu0 %963 }
 0xf37   :  { %6942 = vpow2.f32 %v851_v41  ;;  %v6761_v41 = vld [vmem:[%s8936_s11 + $0x18] sm:$0xff]  }
 0xf41   :  { %v6943_v42 = vpop.eup %6942 }
 0xf42   :  { %958 = vadd.xlane.f32.xlu1 %v6943_v42  ;;  %v853_v43 = vpack.c.bf16 %v6943_v42, %v6943_v42 }
 0xf44   :  { %6034 = vmatmul.mubr.bf16.vlgmr.msra.gmra.mrb[20].mxu1 %v853_v43 }
 0xf45   :  { %6065 = vmatprep.mubr.msk.bf16.mxu1 %vm7127_vm0, %v7126_v1 }
 0xf53   :  { %1045 = vrot.lane.b32.xlu1 %v7453_v6, %s7129_s23 }
 0xfcf   :  { %v959_v48 = vpop.xlane.xlu1 %958 }
 0xfd0   :  { %6944 = vrcp.f32 %v959_v48 }
 0xfd3   :  { %v1046_v4 = vpop.permute.xlu1 %1045 }
 0xfda   :  { %v6945_v49 = vpop.eup %6944 }
0x1017   :  { %v952_v50 = vpop.f32.mrb[20].mxu1 }
0x1018   :  { %v961_v51 = vmul.f32 %v6945_v49, %v952_v50  ;;  %v6035_v52 = vpop.f32.mrb[21].mxu1 }
0x1019   :  { %v955_v54 = vpop.f32.mrb[22].mxu1 }
0x101a   :  { %v966_v55 = vsel %vm67_vm1, %v961_v51, %v964_v53  ;;  %v6036_v56 = vpop.f32.mrb[23].mxu1  ;;  %v6762_v51 = vld [vmem:[%s8930_s5] sm:$0xff]   ;;  %v6763_v53 = vld [vmem:[%s8930_s5 + $0x8] sm:$0xff]  }
0x101b   :  { %v967_v57 = vpack.c.bf16 %v966_v55, %v966_v55 }
0x101d   :  { %6046 = vmatmul.mubr.msk.bf16.vlgmr.msra.gmra.mrb[20].mxu0 %vm352_vm2, %v967_v57 }
0x101e   :  { %6057 = vmatprep.mubr.msk.bf16.mxu0 %vm7127_vm0, %v7126_v1  ;;  %6050 = vmatpush3.bf16.msra.mxu0 %v6752_v58 }
0x101f   :  { %6051 = vmatprep.subr.bf16.mxu0 %v7126_v1 }
0x1022   :  { %6052 = vmatpush3.bf16.msra.mxu0 %v6753_v59  ;;  %v5355_v59 = vld [vmem:[%s8925_s0 + $0x10] sm:$0xff] }
0x1023   :  { %6053 = vmatprep.subr.bf16.mxu0 %v7126_v1 }
0x1026   :  { %6054 = vmatpush3.bf16.msra.mxu0 %v6754_v60 }
0x1027   :  { %6055 = vmatprep.subr.bf16.mxu0 %v7126_v1 }
0x102a   :  { %6056 = vmatpush3.bf16.msra.mxu0 %v6755_v61 }
0x102b   :  { %6069 = vmatprep.subr.bf16.mxu0 %v7126_v1 }
0x10f0   :  { %v1037_v62 = vpop.f32.mrb[20].mxu0 }
0x10f1   :  { %6946 = vtanh.f32 %v1037_v62  ;;  %v6047_v63 = vpop.f32.mrb[21].mxu0 }
0x10f2   :  { %v1040_v0 = vpop.f32.mrb[22].mxu0 }
0x10f3   :  { %v6048_v2 = vpop.f32.mrb[23].mxu0 }
0x10fb   :  { %v7577_v3 = vpop.eup %6946 }
0x10fc   :  { %v1048_v5 = vsel %vm67_vm1, %v7577_v3, %v1046_v4  ;;  %v1351_v54 = vpack.c.bf16 %v7577_v3, %v7577_v3 }
0x10fd   :  { %v1049_v6 = vpack.c.bf16 %v1048_v5, %v1048_v5 }
0x10ff   :  { %6058 = vmatmul.mubr.msk.bf16.vlgmr.msra.gmra.mrb[24].mxu0 %vm352_vm2, %v1049_v6 }
0x1100   :  { %6070 = vmatpush3.bf16.msra.mxu0 %v7482_v26  ;;  %6085 = vmatprep.mubr.msk.bf16.mxu0 %vm7127_vm0, %v7126_v1 }
0x1101   :  { %6071 = vmatprep.subr.bf16.mxu0 %v7126_v1 }
0x1104   :  { %6072 = vmatpush3.bf16.msra.mxu0 %v7488_v27 }
0x1105   :  { %6073 = vmatprep.subr.bf16.mxu0 %v7126_v1 }
0x1108   :  { %6074 = vmatpush3.bf16.msra.mxu0 %v7495_v17 }
0x1109   :  { %6075 = vmatprep.subr.bf16.mxu0 %v7126_v1 }
0x110c   :  { %6076 = vmatpush3.bf16.msra.mxu0 %v7502_v28 }
0x110d   :  { %6077 = vmatprep.subr.bf16.mxu0 %v7126_v1 }
0x1110   :  { %6078 = vmatpush3.bf16.msra.mxu0 %v7511_v35 }
0x1111   :  { %6079 = vmatprep.subr.bf16.mxu0 %v7126_v1 }
0x1114   :  { %6080 = vmatpush3.bf16.msra.mxu0 %v7518_v36 }
0x1115   :  { %6081 = vmatprep.subr.bf16.mxu0 %v7126_v1 }
0x1118   :  { %6082 = vmatpush3.bf16.msra.mxu0 %v7524_v37 }
0x1119   :  { %6083 = vmatprep.subr.bf16.mxu0 %v7126_v1 }
0x111c   :  { %6084 = vmatpush3.bf16.msra.mxu0 %v7532_v38 }
0x111d   :  { %6117 = vmatprep.subr.bf16.mxu0 %v7126_v1 }
0x11d2   :  { %v1126_v7 = vpop.f32.mrb[24].mxu0 }
0x11d3   :  { %v1127_v8 = vadd.f32 %v7391_v10, %v1126_v7  ;;  %v6059_v9 = vpop.f32.mrb[25].mxu0  ;;  %v6756_v10 = vld [vmem:[%s8935_s10] sm:$0xff]  }
0x11d4   :  { %v1129_v11 = vpop.f32.mrb[26].mxu0  ;;  %6062 = vmatpush3.bf16.msra.mxu1 %v6756_v10  ;;  %v7699_v10 = vld [vmem:[%s8928_s3 + $0x10] sm:$0xff]  }
0x11d5   :  { %6948 = vtanh.f32 %v1127_v8  ;;  %v6060_v12 = vpop.f32.mrb[27].mxu0  ;;  %6063 = vmatprep.subr.bf16.mxu1 %v7126_v1 }
0x11d6   :  { %v6764_v12 = vld [vmem:[%s8931_s6] sm:$0xff]  }
0x11d8   :  { %6064 = vmatpush3.bf16.msra.mxu1 %v6757_v23  ;;  %v7706_v23 = vld [vmem:[%s8928_s3 + $0x18] sm:$0xff]  }
0x11d9   :  { %6089 = vmatprep.subr.bf16.mxu1 %v7126_v1 }
0x11df   :  { %v6949_v13 = vpop.eup %6948 }
0x11e0   :  { %1137 = vrot.lane.b32.xlu0 %v6949_v13, %s7128_s20  ;;  %v1133_v14 = vmul.f32 0.5, %v6949_v13  ;;  %v6765_v13 = vld [vmem:[%s8931_s6 + $0x8] sm:$0xff]  }
0x11e2   :  { %v1134_v15 = vadd.f32 0.5, %v1133_v14 }
0x11e4   :  { %v1135_v20 = vmul.f32 %v1134_v15, %v7397_v25 }
0x1252   :  { %v1138_v18 = vpop.permute.xlu0 %1137 }
0x1253   :  { %v1140_v19 = vmul.f32 %v1138_v18, %v1134_v15 }
0x1255   :  { %1142 = vrot.lane.b32.xlu1 %v1140_v19, %s7129_s23 }
0x12c7   :  { %v1143_v21 = vpop.permute.xlu1 %1142 }
0x12c8   :  { %v7604_v22 = vadd.f32 %v1143_v21, %v1135_v20  ;;  %v7686_v20 = vld [vmem:[%s8928_s3] sm:$0xff]   ;;  %v7692_v21 = vld [vmem:[%s8928_s3 + $0x8] sm:$0xff]  }
0x12ca   :  { %6950 = vtanh.f32 %v7604_v22 }
0x12d4   :  { %v6951_v25 = vpop.eup %6950 }
0x12d5   :  { %1148 = vrot.lane.b32.xlu0 %v6951_v25, %s7128_s20  ;;  %v7714_v25 = vld [vmem:[%s8929_s4] sm:$0xff] }
0x1347   :  { %v1149_v24 = vpop.permute.xlu0 %1148 }
0x1348   :  { %v1151_v26 = vmul.f32 %v1149_v24, %v1134_v15 }
0x134a   :  { %v1152_v27 = vpack.c.bf16 %v1151_v26, %v1151_v26 }
0x134c   :  { %1158 = vrot.lane.b32.xlu1 %v1152_v27, %s7129_s23 }
0x13be   :  { %v1159_v17 = vpop.permute.xlu1 %1158 }
0x13bf   :  { %6066 = vmatmul.mubr.msk.bf16.vlgmr.msra.gmra.mrb[24].mxu1 %vm67_vm1, %v1159_v17 }
0x13c0   :  { %6097 = vmatprep.mubr.msk.bf16.mxu1 %vm7127_vm0, %v7126_v1 }
0x1492   :  { %v1209_v28 = vpop.f32.mrb[24].mxu1 }
0x1493   :  { %v1210_v29 = vadd.f32 %v1209_v28, %v7293_v32  ;;  %v6067_v30 = vpop.f32.mrb[25].mxu1  ;;  %v6758_v32 = vld [vmem:[%s8936_s11] sm:$0xff]  }
0x1494   :  { %v1212_v31 = vpop.f32.mrb[26].mxu1  ;;  %6090 = vmatpush3.bf16.msra.mxu1 %v6758_v32  ;;  %v7728_v30 = vld [vmem:[%s8928_s3 + $0x28] sm:$0xff]   ;;  %v6774_v32 = vld [vmem:[%s8932_s7] sm:$0xff]  }
0x1495   :  { %1215 = vmax.xlane.f32.xlu0 %v1210_v29  ;;  %v6068_v33 = vpop.f32.mrb[27].mxu1  ;;  %6091 = vmatprep.subr.bf16.mxu1 %v7126_v1  ;;  %v7734_v31 = vld [vmem:[%s8928_s3 + $0x30] sm:$0xff]  }
0x1496   :  { %v7741_v33 = vld [vmem:[%s8928_s3 + $0x38] sm:$0xff]  }
0x1498   :  { %6092 = vmatpush3.bf16.msra.mxu1 %v6759_v39  ;;  %v6775_v39 = vld [vmem:[%s8932_s7 + $0x8] sm:$0xff]  }
0x1499   :  { %6093 = vmatprep.subr.bf16.mxu1 %v7126_v1 }
0x149c   :  { %6094 = vmatpush3.bf16.msra.mxu1 %v6760_v40  ;;  %v6776_v40 = vld [vmem:[%s8932_s7 + $0x10] sm:$0xff]  }
0x149d   :  { %6095 = vmatprep.subr.bf16.mxu1 %v7126_v1 }
0x14a0   :  { %6096 = vmatpush3.bf16.msra.mxu1 %v6761_v41  ;;  %v6777_v41 = vld [vmem:[%s8932_s7 + $0x18] sm:$0xff]  }
0x14a1   :  { %6101 = vmatprep.subr.bf16.mxu1 %v7126_v1 }
0x14ab   :  { %1266 = vrot.lane.b32.xlu0 %v1151_v26, %s7128_s20 }
0x1522   :  { %v1216_v34 = vpop.xlane.xlu0 %1215 }
0x1523   :  { %v1217_v35 = vsub.f32 %v1210_v29, %v1216_v34  ;;  %v7720_v29 = vld [vmem:[%s8928_s3 + $0x20] sm:$0xff]  }
0x1525   :  { %v1218_v36 = vmul.f32 1.442695, %v1217_v35 }
0x1526   :  { %v1267_v47 = vpop.permute.xlu0 %1266 }
0x1527   :  { %6952 = vpow2.f32 %v1218_v36 }
0x1531   :  { %v6953_v37 = vpop.eup %6952 }
0x1532   :  { %1261 = vadd.xlane.f32.xlu1 %v6953_v37  ;;  %v1220_v38 = vpack.c.bf16 %v6953_v37, %v6953_v37 }
0x1534   :  { %6086 = vmatmul.mubr.bf16.vlgmr.msra.gmra.mrb[28].mxu0 %v1220_v38 }
0x1535   :  { %6133 = vmatprep.mubr.msk.bf16.mxu0 %vm7127_vm0, %v7126_v1  ;;  %6118 = vmatpush3.bf16.msra.mxu0 %v7686_v20 }
0x1536   :  { %6119 = vmatprep.subr.bf16.mxu0 %v7126_v1 }
0x1539   :  { %6120 = vmatpush3.bf16.msra.mxu0 %v7692_v21 }
0x153a   :  { %6121 = vmatprep.subr.bf16.mxu0 %v7126_v1 }
0x153d   :  { %6122 = vmatpush3.bf16.msra.mxu0 %v7699_v10 }
0x153e   :  { %6123 = vmatprep.subr.bf16.mxu0 %v7126_v1 }
0x1541   :  { %6124 = vmatpush3.bf16.msra.mxu0 %v7706_v23 }
0x1542   :  { %6125 = vmatprep.subr.bf16.mxu0 %v7126_v1 }
0x1545   :  { %6126 = vmatpush3.bf16.msra.mxu0 %v7720_v29 }
0x1546   :  { %6127 = vmatprep.subr.bf16.mxu0 %v7126_v1 }
0x1549   :  { %6128 = vmatpush3.bf16.msra.mxu0 %v7728_v30 }
0x154a   :  { %6129 = vmatprep.subr.bf16.mxu0 %v7126_v1 }
0x154d   :  { %6130 = vmatpush3.bf16.msra.mxu0 %v7734_v31 }
0x154e   :  { %6131 = vmatprep.subr.bf16.mxu0 %v7126_v1 }
0x1551   :  { %6132 = vmatpush3.bf16.msra.mxu0 %v7741_v33 }
0x1552   :  { %6161 = vmatprep.subr.bf16.mxu0 %v7126_v1 }
0x15bf   :  { %v1262_v42 = vpop.xlane.xlu1 %1261 }
0x15c0   :  { %6954 = vrcp.f32 %v1262_v42 }
0x15ca   :  { %v6955_v43 = vpop.eup %6954 }
0x1607   :  { %v1255_v44 = vpop.f32.mrb[28].mxu0 }
0x1608   :  { %v1264_v45 = vmul.f32 %v6955_v43, %v1255_v44  ;;  %v6087_v46 = vpop.f32.mrb[29].mxu0 }
0x1609   :  { %v1258_v48 = vpop.f32.mrb[30].mxu0 }
0x160a   :  { %v1269_v49 = vsel %vm67_vm1, %v1264_v45, %v1267_v47  ;;  %v6088_v50 = vpop.f32.mrb[31].mxu0 }
0x160b   :  { %v1270_v52 = vpack.c.bf16 %v1269_v49, %v1269_v49 }
0x160d   :  { %6098 = vmatmul.mubr.msk.bf16.vlgmr.msra.gmra.mrb[28].mxu1 %vm352_vm2, %v1270_v52  ;;  %v6778_v52 = vld [vmem:[%s8933_s8] sm:$0xff]  }
0x160e   :  { %6102 = vmatpush3.bf16.msra.mxu1 %v6762_v51  ;;  %6105 = vmatprep.mubr.msk.bf16.mxu1 %vm7127_vm0, %v7126_v1 }
0x160f   :  { %6103 = vmatprep.subr.bf16.mxu1 %v7126_v1 }
0x1612   :  { %6104 = vmatpush3.bf16.msra.mxu1 %v6763_v53  ;;  %v6779_v53 = vld [vmem:[%s8933_s8 + $0x8] sm:$0xff]  }
0x1613   :  { %6109 = vmatprep.subr.bf16.mxu1 %v7126_v1 }
0x1615   :  { %6106 = vmatmul.mubr.msk.bf16.vlgmr.msra.gmra.mrb[32].mxu1 %vm67_vm1, %v1351_v54  ;;  %v6780_v54 = vld [vmem:[%s8933_s8 + $0x10] sm:$0xff]  }
0x1616   :  { %6113 = vmatprep.mubr.msk.bf16.mxu1 %vm7127_vm0, %v7126_v1  ;;  %6110 = vmatpush3.bf16.msra.mxu1 %v6764_v12 }
0x1617   :  { %6111 = vmatprep.subr.bf16.mxu1 %v7126_v1 }
0x161a   :  { %6112 = vmatpush3.bf16.msra.mxu1 %v6765_v13 }
0x161b   :  { %6137 = vmatprep.subr.bf16.mxu1 %v7126_v1 }
0x16e0   :  { %v1340_v55 = vpop.f32.mrb[28].mxu1 }
0x16e1   :  { %6956 = vtanh.f32 %v1340_v55  ;;  %v6099_v56 = vpop.f32.mrb[29].mxu1  ;;  %v6781_v55 = vld [vmem:[%s8933_s8 + $0x18] sm:$0xff]  }
0x16e2   :  { %v1343_v57 = vpop.f32.mrb[30].mxu1 }
0x16e3   :  { %v6100_v58 = vpop.f32.mrb[31].mxu1 }
0x16e8   :  { %v1405_v60 = vpop.f32.mrb[32].mxu1 }
0x16e9   :  { %v1411_v61 = vadd.f32 %v5355_v59, %v1405_v60  ;;  %v6107_v62 = vpop.f32.mrb[33].mxu1 }
0x16ea   :  { %v1408_v63 = vpop.f32.mrb[34].mxu1 }
0x16eb   :  { %v6957_v0 = vpop.eup %6956  ;;  %6958 = vtanh.f32 %v1411_v61  ;;  %v6108_v2 = vpop.f32.mrb[35].mxu1 }
0x16ec   :  { %5354 = vst.msk [vmem:[%s8937_s12 + $0x8] sm:$0xff] %vm67_vm1, %v6957_v0 }
0x16f5   :  { %v6959_v3 = vpop.eup %6958 }
0x16f6   :  { %1417 = vrot.lane.b32.xlu1 %v6959_v3, %s7128_s20  ;;  %v1413_v4 = vmul.f32 0.5, %v6959_v3 }
0x16f8   :  { %v1414_v5 = vadd.f32 0.5, %v1413_v4 }
0x16fa   :  { %v1415_v8 = vmul.f32 %v1414_v5, %v7463_v16 }
0x1768   :  { %v1418_v6 = vpop.permute.xlu1 %1417 }
0x1769   :  { %v1420_v7 = vmul.f32 %v1418_v6, %v1414_v5 }
0x176b   :  { %1422 = vrot.lane.b32.xlu0 %v1420_v7, %s7129_s23 }
0x17dd   :  { %v1423_v9 = vpop.permute.xlu0 %1422 }
0x17de   :  { %v7667_v11 = vadd.f32 %v1423_v9, %v1415_v8 }
0x17e0   :  { %6960 = vtanh.f32 %v7667_v11 }
0x17ea   :  { %v6961_v16 = vpop.eup %6960 }
0x17eb   :  { %1428 = vrot.lane.b32.xlu1 %v6961_v16, %s7128_s20 }
0x185d   :  { %v1429_v14 = vpop.permute.xlu1 %1428 }
0x185e   :  { %v1431_v15 = vmul.f32 %v1429_v14, %v1414_v5 }
0x1860   :  { %v1432_v18 = vpack.c.bf16 %v1431_v15, %v1431_v15 }
0x1862   :  { %1439 = vrot.lane.b32.xlu0 %v1432_v18, %s7129_s23  ;;  %v6782_v18 = vld [vmem:[%s8935_s10] sm:$0xff]  }
0x18d4   :  { %v1440_v19 = vpop.permute.xlu0 %1439 }
0x18d5   :  { %6114 = vmatmul.mubr.msk.bf16.vlgmr.msra.gmra.mrb[36].mxu1 %vm67_vm1, %v1440_v19  ;;  %v6783_v19 = vld [vmem:[%s8935_s10 + $0x8] sm:$0xff]  }
0x18d6   :  { %6145 = vmatprep.mubr.msk.bf16.mxu1 %vm7127_vm0, %v7126_v1  ;;  %6138 = vmatpush3.bf16.msra.mxu1 %v6774_v32 }
0x18d7   :  { %6139 = vmatprep.subr.bf16.mxu1 %v7126_v1 }
0x18da   :  { %6140 = vmatpush3.bf16.msra.mxu1 %v6775_v39 }
0x18db   :  { %6141 = vmatprep.subr.bf16.mxu1 %v7126_v1 }
0x18de   :  { %6142 = vmatpush3.bf16.msra.mxu1 %v6776_v40 }
0x18df   :  { %6143 = vmatprep.subr.bf16.mxu1 %v7126_v1 }
0x18e2   :  { %6144 = vmatpush3.bf16.msra.mxu1 %v6777_v41 }
0x18e3   :  { %6149 = vmatprep.subr.bf16.mxu1 %v7126_v1 }
0x19a8   :  { %v1490_v24 = vpop.f32.mrb[36].mxu1 }
0x19a9   :  { %v1491_v26 = vadd.f32 %v1490_v24, %v7714_v25  ;;  %v6115_v27 = vpop.f32.mrb[37].mxu1 }
0x19aa   :  { %v1493_v17 = vpop.f32.mrb[38].mxu1 }
0x19ab   :  { %1496 = vmax.xlane.f32.xlu1 %v1491_v26  ;;  %v6116_v28 = vpop.f32.mrb[39].mxu1 }
0x19bc   :  { %1693 = vrot.lane.b32.xlu1 %v6957_v0, %s7129_s23  ;;  %v7811_v0 = vld [vmem:[%s8934_s9] ss:$0 sm:$0xff] }
0x1a38   :  { %v1497_v34 = vpop.xlane.xlu1 %1496 }
0x1a39   :  { %v1498_v35 = vsub.f32 %v1491_v26, %v1497_v34 }
0x1a3b   :  { %v1499_v36 = vmul.f32 1.442695, %v1498_v35  ;;  %v6784_v35 = vld [vmem:[%s8936_s11] sm:$0xff]  }
0x1a3c   :  { %v1694_v61 = vpop.permute.xlu1 %1693 }
0x1a3d   :  { %6962 = vpow2.f32 %v1499_v36  ;;  %v6785_v36 = vld [vmem:[%s8936_s11 + $0x8] sm:$0xff]  }
0x1a47   :  { %v6963_v37 = vpop.eup %6962 }
0x1a48   :  { %1606 = vadd.xlane.f32.xlu0 %v6963_v37  ;;  %v1501_v38 = vpack.c.bf16 %v6963_v37, %v6963_v37  ;;  %v6786_v37 = vld [vmem:[%s8936_s11 + $0x10] sm:$0xff]  }
0x1a4a   :  { %6134 = vmatmul.mubr.bf16.vlgmr.msra.gmra.mrb[32].mxu0 %v1501_v38  ;;  %v6787_v38 = vld [vmem:[%s8936_s11 + $0x18] sm:$0xff]  }
0x1a4b   :  { %6165 = vmatprep.mubr.msk.bf16.mxu0 %vm7127_vm0, %v7126_v1  ;;  %6162 = vmatpush3.bf16.msra.mxu0 %v6782_v18  ;;  %v7902_v18 = vld [vmem:[%s8928_s3] sm:$0xff]  }
0x1a4c   :  { %6163 = vmatprep.subr.bf16.mxu0 %v7126_v1 }
0x1a4f   :  { %6164 = vmatpush3.bf16.msra.mxu0 %v6783_v19  ;;  %v7908_v19 = vld [vmem:[%s8928_s3 + $0x8] sm:$0xff]  }
0x1a50   :  { %6189 = vmatprep.subr.bf16.mxu0 %v7126_v1 }
0x1a5e   :  { %1611 = vrot.lane.b32.xlu0 %v1431_v15, %s7128_s20 }
0x1ad5   :  { %v1607_v42 = vpop.xlane.xlu0 %1606 }
0x1ad6   :  { %6964 = vrcp.f32 %v1607_v42 }
0x1ad9   :  { %v1612_v47 = vpop.permute.xlu0 %1611 }
0x1ae0   :  { %v6965_v43 = vpop.eup %6964 }
0x1b1d   :  { %v1600_v44 = vpop.f32.mrb[32].mxu0 }
0x1b1e   :  { %v1609_v45 = vmul.f32 %v6965_v43, %v1600_v44  ;;  %v6135_v46 = vpop.f32.mrb[33].mxu0 }
0x1b1f   :  { %v1603_v48 = vpop.f32.mrb[34].mxu0 }
0x1b20   :  { %v1614_v49 = vsel %vm67_vm1, %v1609_v45, %v1612_v47  ;;  %v6136_v50 = vpop.f32.mrb[35].mxu0  ;;  %v6788_v47 = vld [vmem:[%s8930_s5] sm:$0xff]  }
0x1b21   :  { %v1615_v51 = vpack.c.bf16 %v1614_v49, %v1614_v49  ;;  %v6789_v49 = vld [vmem:[%s8930_s5 + $0x8] sm:$0xff]  }
0x1b23   :  { %6146 = vmatmul.mubr.msk.bf16.vlgmr.msra.gmra.mrb[40].mxu1 %vm352_vm2, %v1615_v51 }
0x1b24   :  { %6157 = vmatprep.mubr.msk.bf16.mxu1 %vm7127_vm0, %v7126_v1  ;;  %6150 = vmatpush3.bf16.msra.mxu1 %v6778_v52 }
0x1b25   :  { %6151 = vmatprep.subr.bf16.mxu1 %v7126_v1 }
0x1b28   :  { %6152 = vmatpush3.bf16.msra.mxu1 %v6779_v53 }
0x1b29   :  { %6153 = vmatprep.subr.bf16.mxu1 %v7126_v1 }
0x1b2c   :  { %6154 = vmatpush3.bf16.msra.mxu1 %v6780_v54 }
0x1b2d   :  { %6155 = vmatprep.subr.bf16.mxu1 %v7126_v1 }
0x1b30   :  { %6156 = vmatpush3.bf16.msra.mxu1 %v6781_v55  ;;  %v5390_v55 = vld [vmem:[%s8925_s0 + $0x18] sm:$0xff] }
0x1b31   :  { %6169 = vmatprep.subr.bf16.mxu1 %v7126_v1 }
0x1bf6   :  { %v1685_v56 = vpop.f32.mrb[40].mxu1 }
0x1bf7   :  { %6966 = vtanh.f32 %v1685_v56  ;;  %v6147_v57 = vpop.f32.mrb[41].mxu1 }
0x1bf8   :  { %v1688_v58 = vpop.f32.mrb[42].mxu1 }
0x1bf9   :  { %v6148_v59 = vpop.f32.mrb[43].mxu1 }
0x1c01   :  { %v7785_v60 = vpop.eup %6966 }
0x1c02   :  { %v1696_v62 = vsel %vm67_vm1, %v7785_v60, %v1694_v61  ;;  %v1999_v50 = vpack.c.bf16 %v7785_v60, %v7785_v60 }
0x1c03   :  { %v1697_v63 = vpack.c.bf16 %v1696_v62, %v1696_v62 }
0x1c05   :  { %6158 = vmatmul.mubr.msk.bf16.vlgmr.msra.gmra.mrb[44].mxu1 %vm352_vm2, %v1697_v63 }
0x1c06   :  { %6170 = vmatpush3.bf16.msra.mxu1 %v7686_v20  ;;  %6185 = vmatprep.mubr.msk.bf16.mxu1 %vm7127_vm0, %v7126_v1 }
0x1c07   :  { %6171 = vmatprep.subr.bf16.mxu1 %v7126_v1 }
0x1c0a   :  { %6172 = vmatpush3.bf16.msra.mxu1 %v7692_v21 }
0x1c0b   :  { %6173 = vmatprep.subr.bf16.mxu1 %v7126_v1 }
0x1c0e   :  { %6174 = vmatpush3.bf16.msra.mxu1 %v7699_v10 }
0x1c0f   :  { %6175 = vmatprep.subr.bf16.mxu1 %v7126_v1 }
0x1c12   :  { %6176 = vmatpush3.bf16.msra.mxu1 %v7706_v23 }
0x1c13   :  { %6177 = vmatprep.subr.bf16.mxu1 %v7126_v1 }
0x1c16   :  { %6178 = vmatpush3.bf16.msra.mxu1 %v7720_v29 }
0x1c17   :  { %6179 = vmatprep.subr.bf16.mxu1 %v7126_v1 }
0x1c1a   :  { %6180 = vmatpush3.bf16.msra.mxu1 %v7728_v30 }
0x1c1b   :  { %6181 = vmatprep.subr.bf16.mxu1 %v7126_v1 }
0x1c1e   :  { %6182 = vmatpush3.bf16.msra.mxu1 %v7734_v31 }
0x1c1f   :  { %6183 = vmatprep.subr.bf16.mxu1 %v7126_v1 }
0x1c22   :  { %6184 = vmatpush3.bf16.msra.mxu1 %v7741_v33 }
0x1c23   :  { %6217 = vmatprep.subr.bf16.mxu1 %v7126_v1 }
0x1cd8   :  { %v1774_v2 = vpop.f32.mrb[44].mxu1 }
0x1cd9   :  { %v1775_v3 = vadd.f32 %v7811_v0, %v1774_v2  ;;  %v6159_v4 = vpop.f32.mrb[45].mxu1 }
0x1cda   :  { %v1777_v5 = vpop.f32.mrb[46].mxu1 }
0x1cdb   :  { %6968 = vtanh.f32 %v1775_v3  ;;  %v6160_v6 = vpop.f32.mrb[47].mxu1 }
0x1ce5   :  { %v6969_v7 = vpop.eup %6968 }
0x1ce6   :  { %1785 = vrot.lane.b32.xlu1 %v6969_v7, %s7128_s20  ;;  %v1781_v8 = vmul.f32 0.5, %v6969_v7 }
0x1ce8   :  { %v1782_v9 = vadd.f32 0.5, %v1781_v8  ;;  %v6790_v8 = vld [vmem:[%s8931_s6] sm:$0xff]  }
0x1cea   :  { %v1783_v16 = vmul.f32 %v1782_v9, %v7604_v22 }
0x1d58   :  { %v1786_v12 = vpop.permute.xlu1 %1785 }
0x1d59   :  { %v1788_v13 = vmul.f32 %v1786_v12, %v1782_v9 }
0x1d5b   :  { %1790 = vrot.lane.b32.xlu0 %v1788_v13, %s7129_s23 }
0x1dcd   :  { %v1791_v14 = vpop.permute.xlu0 %1790 }
0x1dce   :  { %v7817_v15 = vadd.f32 %v1791_v14, %v1783_v16 }
0x1dd0   :  { %6970 = vtanh.f32 %v7817_v15 }
0x1dda   :  { %v6971_v22 = vpop.eup %6970 }
0x1ddb   :  { %1796 = vrot.lane.b32.xlu1 %v6971_v22, %s7128_s20  ;;  %v7915_v22 = vld [vmem:[%s8928_s3 + $0x10] sm:$0xff]  }
0x1e4d   :  { %v1797_v20 = vpop.permute.xlu1 %1796 }
0x1e4e   :  { %v1799_v21 = vmul.f32 %v1797_v20, %v1782_v9  ;;  %v6791_v9 = vld [vmem:[%s8931_s6 + $0x8] sm:$0xff]   ;;  %v7922_v20 = vld [vmem:[%s8928_s3 + $0x18] sm:$0xff]  }
0x1e50   :  { %v1800_v10 = vpack.c.bf16 %v1799_v21, %v1799_v21 }
0x1e52   :  { %1806 = vrot.lane.b32.xlu0 %v1800_v10, %s7129_s23 }
0x1ec4   :  { %v1807_v23 = vpop.permute.xlu0 %1806 }
0x1ec5   :  { %6166 = vmatmul.mubr.msk.bf16.vlgmr.msra.gmra.mrb[36].mxu0 %vm67_vm1, %v1807_v23 }
0x1ec6   :  { %6197 = vmatprep.mubr.msk.bf16.mxu0 %vm7127_vm0, %v7126_v1  ;;  %6190 = vmatpush3.bf16.msra.mxu0 %v6784_v35 }
0x1ec7   :  { %6191 = vmatprep.subr.bf16.mxu0 %v7126_v1 }
0x1eca   :  { %6192 = vmatpush3.bf16.msra.mxu0 %v6785_v36  ;;  %v6800_v36 = vld [vmem:[%s8932_s7] sm:$0xff]  }
0x1ecb   :  { %6193 = vmatprep.subr.bf16.mxu0 %v7126_v1 }
0x1ece   :  { %6194 = vmatpush3.bf16.msra.mxu0 %v6786_v37  ;;  %v6801_v37 = vld [vmem:[%s8932_s7 + $0x8] sm:$0xff]  }
0x1ecf   :  { %6195 = vmatprep.subr.bf16.mxu0 %v7126_v1 }
0x1ed2   :  { %6196 = vmatpush3.bf16.msra.mxu0 %v6787_v38  ;;  %v6802_v38 = vld [vmem:[%s8932_s7 + $0x10] sm:$0xff]  }
0x1ed3   :  { %6201 = vmatprep.subr.bf16.mxu0 %v7126_v1 }
0x1f98   :  { %v1857_v24 = vpop.f32.mrb[36].mxu0 }
0x1f99   :  { %v1858_v26 = vadd.f32 %v1857_v24, %v7714_v25  ;;  %v6167_v27 = vpop.f32.mrb[37].mxu0 }
0x1f9a   :  { %v1860_v17 = vpop.f32.mrb[38].mxu0  ;;  %v7931_v27 = vld [vmem:[%s8928_s3 + $0x20] sm:$0xff]  }
0x1f9b   :  { %1863 = vmax.xlane.f32.xlu1 %v1858_v26  ;;  %v6168_v28 = vpop.f32.mrb[39].mxu0  ;;  %v7938_v17 = vld [vmem:[%s8928_s3 + $0x28] sm:$0xff]  }
0x1f9c   :  { %v7944_v28 = vld [vmem:[%s8928_s3 + $0x30] sm:$0xff]  }
0x2028   :  { %v1864_v29 = vpop.xlane.xlu1 %1863 }
0x2029   :  { %v1865_v30 = vsub.f32 %v1858_v26, %v1864_v29  ;;  %v7952_v29 = vld [vmem:[%s8928_s3 + $0x38] sm:$0xff]  }
0x202b   :  { %v1866_v31 = vmul.f32 1.442695, %v1865_v30 }
0x202d   :  { %6972 = vpow2.f32 %v1866_v31 }
0x2037   :  { %v6973_v33 = vpop.eup %6972 }
0x2038   :  { %1909 = vadd.xlane.f32.xlu0 %v6973_v33  ;;  %v1868_v34 = vpack.c.bf16 %v6973_v33, %v6973_v33 }
0x203a   :  { %6186 = vmatmul.mubr.bf16.vlgmr.msra.gmra.mrb[48].mxu1 %v1868_v34 }
0x203b   :  { %6233 = vmatprep.mubr.msk.bf16.mxu1 %vm7127_vm0, %v7126_v1  ;;  %6218 = vmatpush3.bf16.msra.mxu1 %v7902_v18 }
0x203c   :  { %6219 = vmatprep.subr.bf16.mxu1 %v7126_v1 }
0x203f   :  { %6220 = vmatpush3.bf16.msra.mxu1 %v7908_v19 }
0x2040   :  { %6221 = vmatprep.subr.bf16.mxu1 %v7126_v1 }
0x2043   :  { %6222 = vmatpush3.bf16.msra.mxu1 %v7915_v22 }
0x2044   :  { %6223 = vmatprep.subr.bf16.mxu1 %v7126_v1 }
0x2047   :  { %6224 = vmatpush3.bf16.msra.mxu1 %v7922_v20 }
0x2048   :  { %6225 = vmatprep.subr.bf16.mxu1 %v7126_v1 }
0x204b   :  { %6226 = vmatpush3.bf16.msra.mxu1 %v7931_v27 }
0x204c   :  { %6227 = vmatprep.subr.bf16.mxu1 %v7126_v1 }
0x204e   :  { %1914 = vrot.lane.b32.xlu0 %v1799_v21, %s7128_s20 }
0x204f   :  { %6228 = vmatpush3.bf16.msra.mxu1 %v7938_v17 }
0x2050   :  { %6229 = vmatprep.subr.bf16.mxu1 %v7126_v1 }
0x2053   :  { %6230 = vmatpush3.bf16.msra.mxu1 %v7944_v28 }
0x2054   :  { %6231 = vmatprep.subr.bf16.mxu1 %v7126_v1 }
0x2057   :  { %6232 = vmatpush3.bf16.msra.mxu1 %v7952_v29 }
0x2058   :  { %6261 = vmatprep.subr.bf16.mxu1 %v7126_v1 }
0x20c5   :  { %v1910_v32 = vpop.xlane.xlu0 %1909 }
0x20c6   :  { %6974 = vrcp.f32 %v1910_v32  ;;  %v6803_v32 = vld [vmem:[%s8932_s7 + $0x18] sm:$0xff]  }
0x20c9   :  { %v1915_v43 = vpop.permute.xlu0 %1914 }
0x20d0   :  { %v6975_v39 = vpop.eup %6974 }
0x210d   :  { %v1903_v40 = vpop.f32.mrb[48].mxu1 }
0x210e   :  { %v1912_v41 = vmul.f32 %v6975_v39, %v1903_v40  ;;  %v6187_v42 = vpop.f32.mrb[49].mxu1 }
0x210f   :  { %v1906_v44 = vpop.f32.mrb[50].mxu1 }
0x2110   :  { %v1917_v45 = vsel %vm67_vm1, %v1912_v41, %v1915_v43  ;;  %v6188_v46 = vpop.f32.mrb[51].mxu1 }
0x2111   :  { %v1918_v48 = vpack.c.bf16 %v1917_v45, %v1917_v45 }
0x2113   :  { %6198 = vmatmul.mubr.msk.bf16.vlgmr.msra.gmra.mrb[40].mxu0 %vm352_vm2, %v1918_v48 }
0x2114   :  { %6202 = vmatpush3.bf16.msra.mxu0 %v6788_v47  ;;  %6205 = vmatprep.mubr.msk.bf16.mxu0 %vm7127_vm0, %v7126_v1 }
0x2115   :  { %6203 = vmatprep.subr.bf16.mxu0 %v7126_v1 }
0x2118   :  { %6204 = vmatpush3.bf16.msra.mxu0 %v6789_v49  ;;  %v6804_v49 = vld [vmem:[%s8933_s8] sm:$0xff]  }
0x2119   :  { %6209 = vmatprep.subr.bf16.mxu0 %v7126_v1 }
0x211b   :  { %6206 = vmatmul.mubr.msk.bf16.vlgmr.msra.gmra.mrb[44].mxu0 %vm67_vm1, %v1999_v50  ;;  %v6805_v50 = vld [vmem:[%s8933_s8 + $0x8] sm:$0xff]  }
0x211c   :  { %6213 = vmatprep.mubr.msk.bf16.mxu0 %vm7127_vm0, %v7126_v1  ;;  %6210 = vmatpush3.bf16.msra.mxu0 %v6790_v8 }
0x211d   :  { %6211 = vmatprep.subr.bf16.mxu0 %v7126_v1 }
0x2120   :  { %6212 = vmatpush3.bf16.msra.mxu0 %v6791_v9 }
0x2121   :  { %6237 = vmatprep.subr.bf16.mxu0 %v7126_v1 }
0x21e6   :  { %v1988_v51 = vpop.f32.mrb[40].mxu0 }
0x21e7   :  { %6976 = vtanh.f32 %v1988_v51  ;;  %v6199_v52 = vpop.f32.mrb[41].mxu0  ;;  %v6806_v51 = vld [vmem:[%s8933_s8 + $0x10] sm:$0xff]  }
0x21e8   :  { %v1991_v53 = vpop.f32.mrb[42].mxu0  ;;  %v6807_v52 = vld [vmem:[%s8933_s8 + $0x18] sm:$0xff]  }
0x21e9   :  { %v6200_v54 = vpop.f32.mrb[43].mxu0 }
0x21ee   :  { %v2053_v56 = vpop.f32.mrb[44].mxu0 }
0x21ef   :  { %v2059_v57 = vadd.f32 %v5390_v55, %v2053_v56  ;;  %v6207_v58 = vpop.f32.mrb[45].mxu0 }
0x21f0   :  { %v2056_v59 = vpop.f32.mrb[46].mxu0 }
0x21f1   :  { %v7873_v60 = vpop.eup %6976  ;;  %6978 = vtanh.f32 %v2059_v57  ;;  %v6208_v61 = vpop.f32.mrb[47].mxu0 }
0x21f2   :  { %5389 = vst.msk [vmem:[%s8937_s12 + $0x10] sm:$0xff] %vm67_vm1, %v7873_v60 }
0x21fb   :  { %v6979_v62 = vpop.eup %6978 }
0x21fc   :  { %2065 = vrot.lane.b32.xlu1 %v6979_v62, %s7128_s20  ;;  %v2061_v63 = vmul.f32 0.5, %v6979_v62 }
0x21fe   :  { %v2062_v2 = vadd.f32 0.5, %v2061_v63 }
0x2200   :  { %v2063_v5 = vmul.f32 %v2062_v2, %v7667_v11 }
0x226e   :  { %v2066_v3 = vpop.permute.xlu1 %2065 }
0x226f   :  { %v2068_v4 = vmul.f32 %v2066_v3, %v2062_v2 }
0x2271   :  { %2070 = vrot.lane.b32.xlu1 %v2068_v4, %s7129_s23 }
0x22e3   :  { %v2071_v6 = vpop.permute.xlu1 %2070 }
0x22e4   :  { %v7883_v7 = vadd.f32 %v2071_v6, %v2063_v5 }
0x22e6   :  { %6980 = vtanh.f32 %v7883_v7 }
0x22f0   :  { %v6981_v11 = vpop.eup %6980 }
0x22f1   :  { %2076 = vrot.lane.b32.xlu0 %v6981_v11, %s7128_s20 }
0x2363   :  { %v2077_v12 = vpop.permute.xlu0 %2076 }
0x2364   :  { %v2079_v13 = vmul.f32 %v2077_v12, %v2062_v2 }
0x2366   :  { %v2080_v16 = vpack.c.bf16 %v2079_v13, %v2079_v13 }
0x2368   :  { %2087 = vrot.lane.b32.xlu1 %v2080_v16, %s7129_s23  ;;  %v6809_v16 = vld [vmem:[%s8935_s10 + $0x8] sm:$0xff]  }
0x23da   :  { %v2088_v14 = vpop.permute.xlu1 %2087 }
0x23db   :  { %6214 = vmatmul.mubr.msk.bf16.vlgmr.msra.gmra.mrb[48].mxu0 %vm67_vm1, %v2088_v14 }
0x23dc   :  { %6245 = vmatprep.mubr.msk.bf16.mxu0 %vm7127_vm0, %v7126_v1  ;;  %6238 = vmatpush3.bf16.msra.mxu0 %v6800_v36 }
0x23dd   :  { %6239 = vmatprep.subr.bf16.mxu0 %v7126_v1 }
0x23e0   :  { %6240 = vmatpush3.bf16.msra.mxu0 %v6801_v37 }
0x23e1   :  { %6241 = vmatprep.subr.bf16.mxu0 %v7126_v1 }
0x23e4   :  { %6242 = vmatpush3.bf16.msra.mxu0 %v6802_v38 }
0x23e5   :  { %6243 = vmatprep.subr.bf16.mxu0 %v7126_v1 }
0x23e8   :  { %6244 = vmatpush3.bf16.msra.mxu0 %v6803_v32 }
0x23e9   :  { %6249 = vmatprep.subr.bf16.mxu0 %v7126_v1 }
0x24ae   :  { %v2138_v21 = vpop.f32.mrb[48].mxu0 }
0x24af   :  { %v2139_v10 = vadd.f32 %v2138_v21, %v7714_v25  ;;  %v6215_v23 = vpop.f32.mrb[49].mxu0 }
0x24b0   :  { %v2141_v24 = vpop.f32.mrb[50].mxu0 }
0x24b1   :  { %2144 = vmax.xlane.f32.xlu0 %v2139_v10  ;;  %v6216_v26 = vpop.f32.mrb[51].mxu0 }
0x24c7   :  { %2259 = vrot.lane.b32.xlu0 %v2079_v13, %s7128_s20 }
0x253e   :  { %v2145_v30 = vpop.xlane.xlu0 %2144 }
0x253f   :  { %v2146_v31 = vsub.f32 %v2139_v10, %v2145_v30  ;;  %v6811_v30 = vld [vmem:[%s8936_s11 + $0x8] sm:$0xff]  }
0x2541   :  { %v2147_v33 = vmul.f32 1.442695, %v2146_v31  ;;  %v6812_v31 = vld [vmem:[%s8936_s11 + $0x10] sm:$0xff]  }
0x2542   :  { %v2260_v44 = vpop.permute.xlu0 %2259 }
0x2543   :  { %6982 = vpow2.f32 %v2147_v33  ;;  %v6813_v33 = vld [vmem:[%s8936_s11 + $0x18] sm:$0xff]  }
0x254d   :  { %v6983_v34 = vpop.eup %6982 }
0x254e   :  { %2254 = vadd.xlane.f32.xlu1 %v6983_v34  ;;  %v2149_v35 = vpack.c.bf16 %v6983_v34, %v6983_v34 }
0x2550   :  { %6234 = vmatmul.mubr.bf16.vlgmr.msra.gmra.mrb[52].mxu1 %v2149_v35 }
0x2551   :  { %6265 = vmatprep.mubr.msk.bf16.mxu1 %vm7127_vm0, %v7126_v1 }
0x255f   :  { %2341 = vrot.lane.b32.xlu1 %v7873_v60, %s7129_s23 }
0x25db   :  { %v2255_v39 = vpop.xlane.xlu1 %2254 }
0x25dc   :  { %6984 = vrcp.f32 %v2255_v39 }
0x25df   :  { %v2342_v58 = vpop.permute.xlu1 %2341 }
0x25e6   :  { %v6985_v40 = vpop.eup %6984 }
0x2623   :  { %v2248_v41 = vpop.f32.mrb[52].mxu1 }
0x2624   :  { %v2257_v42 = vmul.f32 %v6985_v40, %v2248_v41  ;;  %v6235_v43 = vpop.f32.mrb[53].mxu1 }
0x2625   :  { %v2251_v45 = vpop.f32.mrb[54].mxu1 }
0x2626   :  { %v2262_v46 = vsel %vm67_vm1, %v2257_v42, %v2260_v44  ;;  %v6236_v47 = vpop.f32.mrb[55].mxu1  ;;  %v6814_v42 = vld [vmem:[%s8930_s5] sm:$0xff]   ;;  %v6815_v44 = vld [vmem:[%s8930_s5 + $0x8] sm:$0xff]  }
0x2627   :  { %v2263_v48 = vpack.c.bf16 %v2262_v46, %v2262_v46 }
0x2629   :  { %6246 = vmatmul.mubr.msk.bf16.vlgmr.msra.gmra.mrb[52].mxu0 %vm352_vm2, %v2263_v48 }
0x262a   :  { %6257 = vmatprep.mubr.msk.bf16.mxu0 %vm7127_vm0, %v7126_v1  ;;  %6250 = vmatpush3.bf16.msra.mxu0 %v6804_v49 }
0x262b   :  { %6251 = vmatprep.subr.bf16.mxu0 %v7126_v1 }
0x262e   :  { %6252 = vmatpush3.bf16.msra.mxu0 %v6805_v50  ;;  %v5425_v50 = vld [vmem:[%s8925_s0 + $0x20] sm:$0xff] }
0x262f   :  { %6253 = vmatprep.subr.bf16.mxu0 %v7126_v1 }
0x2632   :  { %6254 = vmatpush3.bf16.msra.mxu0 %v6806_v51 }
0x2633   :  { %6255 = vmatprep.subr.bf16.mxu0 %v7126_v1 }
0x2636   :  { %6256 = vmatpush3.bf16.msra.mxu0 %v6807_v52 }
0x2637   :  { %6269 = vmatprep.subr.bf16.mxu0 %v7126_v1 }
0x26fc   :  { %v2333_v53 = vpop.f32.mrb[52].mxu0 }
0x26fd   :  { %6986 = vtanh.f32 %v2333_v53  ;;  %v6247_v54 = vpop.f32.mrb[53].mxu0 }
0x26fe   :  { %v2336_v55 = vpop.f32.mrb[54].mxu0 }
0x26ff   :  { %v6248_v56 = vpop.f32.mrb[55].mxu0 }
0x2707   :  { %v7997_v57 = vpop.eup %6986 }
0x2708   :  { %v2344_v59 = vsel %vm67_vm1, %v7997_v57, %v2342_v58  ;;  %v2647_v45 = vpack.c.bf16 %v7997_v57, %v7997_v57 }
0x2709   :  { %v2345_v60 = vpack.c.bf16 %v2344_v59, %v2344_v59 }
0x270b   :  { %6258 = vmatmul.mubr.msk.bf16.vlgmr.msra.gmra.mrb[56].mxu0 %vm352_vm2, %v2345_v60 }
0x270c   :  { %6270 = vmatpush3.bf16.msra.mxu0 %v7902_v18  ;;  %6285 = vmatprep.mubr.msk.bf16.mxu0 %vm7127_vm0, %v7126_v1 }
0x270d   :  { %6271 = vmatprep.subr.bf16.mxu0 %v7126_v1 }
0x2710   :  { %6272 = vmatpush3.bf16.msra.mxu0 %v7908_v19 }
0x2711   :  { %6273 = vmatprep.subr.bf16.mxu0 %v7126_v1 }
0x2714   :  { %6274 = vmatpush3.bf16.msra.mxu0 %v7915_v22 }
0x2715   :  { %6275 = vmatprep.subr.bf16.mxu0 %v7126_v1 }
0x2718   :  { %6276 = vmatpush3.bf16.msra.mxu0 %v7922_v20 }
0x2719   :  { %6277 = vmatprep.subr.bf16.mxu0 %v7126_v1 }
0x271c   :  { %6278 = vmatpush3.bf16.msra.mxu0 %v7931_v27 }
0x271d   :  { %6279 = vmatprep.subr.bf16.mxu0 %v7126_v1 }
0x2720   :  { %6280 = vmatpush3.bf16.msra.mxu0 %v7938_v17 }
0x2721   :  { %6281 = vmatprep.subr.bf16.mxu0 %v7126_v1 }
0x2724   :  { %6282 = vmatpush3.bf16.msra.mxu0 %v7944_v28 }
0x2725   :  { %6283 = vmatprep.subr.bf16.mxu0 %v7126_v1 }
0x2728   :  { %6284 = vmatpush3.bf16.msra.mxu0 %v7952_v29 }
0x2729   :  { %6317 = vmatprep.subr.bf16.mxu0 %v7126_v1 }
0x27de   :  { %v2422_v61 = vpop.f32.mrb[56].mxu0 }
0x27df   :  { %v2423_v62 = vadd.f32 %v7811_v0, %v2422_v61  ;;  %v6259_v63 = vpop.f32.mrb[57].mxu0  ;;  %v6808_v0 = vld [vmem:[%s8935_s10] sm:$0xff]  }
0x27e0   :  { %v2425_v2 = vpop.f32.mrb[58].mxu0  ;;  %6262 = vmatpush3.bf16.msra.mxu1 %v6808_v0  ;;  %v8119_v0 = vld [vmem:[%s8928_s3 + $0x10] sm:$0xff]  }
0x27e1   :  { %6988 = vtanh.f32 %v2423_v62  ;;  %v6260_v3 = vpop.f32.mrb[59].mxu0  ;;  %6263 = vmatprep.subr.bf16.mxu1 %v7126_v1 }
0x27e2   :  { %v6816_v3 = vld [vmem:[%s8931_s6] sm:$0xff]  }
0x27e4   :  { %6264 = vmatpush3.bf16.msra.mxu1 %v6809_v16  ;;  %v8126_v16 = vld [vmem:[%s8928_s3 + $0x18] sm:$0xff]  }
0x27e5   :  { %6289 = vmatprep.subr.bf16.mxu1 %v7126_v1 }
0x27eb   :  { %v6989_v4 = vpop.eup %6988 }
0x27ec   :  { %2433 = vrot.lane.b32.xlu0 %v6989_v4, %s7128_s20  ;;  %v2429_v5 = vmul.f32 0.5, %v6989_v4  ;;  %v6817_v4 = vld [vmem:[%s8931_s6 + $0x8] sm:$0xff]  }
0x27ee   :  { %v2430_v6 = vadd.f32 0.5, %v2429_v5 }
0x27f0   :  { %v2431_v11 = vmul.f32 %v2430_v6, %v7817_v15 }
0x285e   :  { %v2434_v8 = vpop.permute.xlu0 %2433 }
0x285f   :  { %v2436_v9 = vmul.f32 %v2434_v8, %v2430_v6 }
0x2861   :  { %2438 = vrot.lane.b32.xlu1 %v2436_v9, %s7129_s23 }
0x28d3   :  { %v2439_v12 = vpop.permute.xlu1 %2438 }
0x28d4   :  { %v8024_v13 = vadd.f32 %v2439_v12, %v2431_v11  ;;  %v8106_v11 = vld [vmem:[%s8928_s3] sm:$0xff]   ;;  %v8112_v12 = vld [vmem:[%s8928_s3 + $0x8] sm:$0xff]  }
0x28d6   :  { %6990 = vtanh.f32 %v8024_v13 }
0x28e0   :  { %v6991_v15 = vpop.eup %6990 }
0x28e1   :  { %2444 = vrot.lane.b32.xlu0 %v6991_v15, %s7128_s20  ;;  %v8134_v15 = vld [vmem:[%s8929_s4] sm:$0xff] }
0x2953   :  { %v2445_v14 = vpop.permute.xlu0 %2444 }
0x2954   :  { %v2447_v18 = vmul.f32 %v2445_v14, %v2430_v6 }
0x2956   :  { %v2448_v19 = vpack.c.bf16 %v2447_v18, %v2447_v18 }
0x2958   :  { %2454 = vrot.lane.b32.xlu1 %v2448_v19, %s7129_s23 }
0x29ca   :  { %v2455_v22 = vpop.permute.xlu1 %2454 }
0x29cb   :  { %6266 = vmatmul.mubr.msk.bf16.vlgmr.msra.gmra.mrb[56].mxu1 %vm67_vm1, %v2455_v22 }
0x29cc   :  { %6297 = vmatprep.mubr.msk.bf16.mxu1 %vm7127_vm0, %v7126_v1 }
0x2a9e   :  { %v2505_v20 = vpop.f32.mrb[56].mxu1 }
0x2a9f   :  { %v2506_v21 = vadd.f32 %v2505_v20, %v7714_v25  ;;  %v6267_v10 = vpop.f32.mrb[57].mxu1  ;;  %v6810_v25 = vld [vmem:[%s8936_s11] sm:$0xff]  }
0x2aa0   :  { %v2508_v23 = vpop.f32.mrb[58].mxu1  ;;  %6290 = vmatpush3.bf16.msra.mxu1 %v6810_v25  ;;  %v8148_v10 = vld [vmem:[%s8928_s3 + $0x28] sm:$0xff]   ;;  %v6826_v25 = vld [vmem:[%s8932_s7] sm:$0xff]  }
0x2aa1   :  { %2511 = vmax.xlane.f32.xlu0 %v2506_v21  ;;  %v6268_v24 = vpop.f32.mrb[59].mxu1  ;;  %6291 = vmatprep.subr.bf16.mxu1 %v7126_v1  ;;  %v8154_v23 = vld [vmem:[%s8928_s3 + $0x30] sm:$0xff]  }
0x2aa2   :  { %v8161_v24 = vld [vmem:[%s8928_s3 + $0x38] sm:$0xff]  }
0x2aa4   :  { %6292 = vmatpush3.bf16.msra.mxu1 %v6811_v30  ;;  %v6827_v30 = vld [vmem:[%s8932_s7 + $0x8] sm:$0xff]  }
0x2aa5   :  { %6293 = vmatprep.subr.bf16.mxu1 %v7126_v1 }
0x2aa8   :  { %6294 = vmatpush3.bf16.msra.mxu1 %v6812_v31  ;;  %v6828_v31 = vld [vmem:[%s8932_s7 + $0x10] sm:$0xff]  }
0x2aa9   :  { %6295 = vmatprep.subr.bf16.mxu1 %v7126_v1 }
0x2aac   :  { %6296 = vmatpush3.bf16.msra.mxu1 %v6813_v33  ;;  %v6829_v33 = vld [vmem:[%s8932_s7 + $0x18] sm:$0xff]  }
0x2aad   :  { %6301 = vmatprep.subr.bf16.mxu1 %v7126_v1 }
0x2ab7   :  { %2562 = vrot.lane.b32.xlu0 %v2447_v18, %s7128_s20 }
0x2b2e   :  { %v2512_v26 = vpop.xlane.xlu0 %2511 }
0x2b2f   :  { %v2513_v27 = vsub.f32 %v2506_v21, %v2512_v26  ;;  %v8140_v21 = vld [vmem:[%s8928_s3 + $0x20] sm:$0xff]  }
0x2b31   :  { %v2514_v17 = vmul.f32 1.442695, %v2513_v27 }
0x2b32   :  { %v2563_v32 = vpop.permute.xlu0 %2562 }
0x2b33   :  { %6992 = vpow2.f32 %v2514_v17 }
0x2b3d   :  { %v6993_v28 = vpop.eup %6992 }
0x2b3e   :  { %2557 = vadd.xlane.f32.xlu1 %v6993_v28  ;;  %v2516_v29 = vpack.c.bf16 %v6993_v28, %v6993_v28 }
0x2b40   :  { %6286 = vmatmul.mubr.bf16.vlgmr.msra.gmra.mrb[60].mxu0 %v2516_v29 }
0x2b41   :  { %6333 = vmatprep.mubr.msk.bf16.mxu0 %vm7127_vm0, %v7126_v1  ;;  %6318 = vmatpush3.bf16.msra.mxu0 %v8106_v11 }
0x2b42   :  { %6319 = vmatprep.subr.bf16.mxu0 %v7126_v1 }
0x2b45   :  { %6320 = vmatpush3.bf16.msra.mxu0 %v8112_v12 }
0x2b46   :  { %6321 = vmatprep.subr.bf16.mxu0 %v7126_v1 }
0x2b49   :  { %6322 = vmatpush3.bf16.msra.mxu0 %v8119_v0 }
0x2b4a   :  { %6323 = vmatprep.subr.bf16.mxu0 %v7126_v1 }
0x2b4d   :  { %6324 = vmatpush3.bf16.msra.mxu0 %v8126_v16 }
0x2b4e   :  { %6325 = vmatprep.subr.bf16.mxu0 %v7126_v1 }
0x2b51   :  { %6326 = vmatpush3.bf16.msra.mxu0 %v8140_v21 }
0x2b52   :  { %6327 = vmatprep.subr.bf16.mxu0 %v7126_v1 }
0x2b55   :  { %6328 = vmatpush3.bf16.msra.mxu0 %v8148_v10 }
0x2b56   :  { %6329 = vmatprep.subr.bf16.mxu0 %v7126_v1 }
0x2b59   :  { %6330 = vmatpush3.bf16.msra.mxu0 %v8154_v23 }
0x2b5a   :  { %6331 = vmatprep.subr.bf16.mxu0 %v7126_v1 }
0x2b5d   :  { %6332 = vmatpush3.bf16.msra.mxu0 %v8161_v24 }
0x2b5e   :  { %6361 = vmatprep.subr.bf16.mxu0 %v7126_v1 }
0x2bcb   :  { %v2558_v34 = vpop.xlane.xlu1 %2557 }
0x2bcc   :  { %6994 = vrcp.f32 %v2558_v34 }
0x2bd6   :  { %v6995_v35 = vpop.eup %6994 }
0x2c13   :  { %v2551_v36 = vpop.f32.mrb[60].mxu0 }
0x2c14   :  { %v2560_v37 = vmul.f32 %v6995_v35, %v2551_v36  ;;  %v6287_v38 = vpop.f32.mrb[61].mxu0 }
0x2c15   :  { %v2554_v39 = vpop.f32.mrb[62].mxu0 }
0x2c16   :  { %v2565_v40 = vsel %vm67_vm1, %v2560_v37, %v2563_v32  ;;  %v6288_v41 = vpop.f32.mrb[63].mxu0 }
0x2c17   :  { %v2566_v43 = vpack.c.bf16 %v2565_v40, %v2565_v40 }
0x2c19   :  { %6298 = vmatmul.mubr.msk.bf16.vlgmr.msra.gmra.mrb[60].mxu1 %vm352_vm2, %v2566_v43  ;;  %v6830_v43 = vld [vmem:[%s8933_s8] sm:$0xff]  }
0x2c1a   :  { %6302 = vmatpush3.bf16.msra.mxu1 %v6814_v42  ;;  %6305 = vmatprep.mubr.msk.bf16.mxu1 %vm7127_vm0, %v7126_v1 }
0x2c1b   :  { %6303 = vmatprep.subr.bf16.mxu1 %v7126_v1 }
0x2c1e   :  { %6304 = vmatpush3.bf16.msra.mxu1 %v6815_v44  ;;  %v6831_v44 = vld [vmem:[%s8933_s8 + $0x8] sm:$0xff]  }
0x2c1f   :  { %6309 = vmatprep.subr.bf16.mxu1 %v7126_v1 }
0x2c21   :  { %6306 = vmatmul.mubr.msk.bf16.vlgmr.msra.gmra.mrb[64].mxu1 %vm67_vm1, %v2647_v45  ;;  %v6832_v45 = vld [vmem:[%s8933_s8 + $0x10] sm:$0xff]  }
0x2c22   :  { %6313 = vmatprep.mubr.msk.bf16.mxu1 %vm7127_vm0, %v7126_v1  ;;  %6310 = vmatpush3.bf16.msra.mxu1 %v6816_v3 }
0x2c23   :  { %6311 = vmatprep.subr.bf16.mxu1 %v7126_v1 }
0x2c26   :  { %6312 = vmatpush3.bf16.msra.mxu1 %v6817_v4 }
0x2c27   :  { %6337 = vmatprep.subr.bf16.mxu1 %v7126_v1 }
0x2cec   :  { %v2636_v46 = vpop.f32.mrb[60].mxu1 }
0x2ced   :  { %6996 = vtanh.f32 %v2636_v46  ;;  %v6299_v47 = vpop.f32.mrb[61].mxu1  ;;  %v6833_v46 = vld [vmem:[%s8933_s8 + $0x18] sm:$0xff]  }
0x2cee   :  { %v2639_v48 = vpop.f32.mrb[62].mxu1 }
0x2cef   :  { %v6300_v49 = vpop.f32.mrb[63].mxu1 }
0x2cf4   :  { %v2701_v51 = vpop.f32.mrb[64].mxu1 }
0x2cf5   :  { %v2707_v52 = vadd.f32 %v5425_v50, %v2701_v51  ;;  %v6307_v53 = vpop.f32.mrb[65].mxu1 }
0x2cf6   :  { %v2704_v54 = vpop.f32.mrb[66].mxu1 }
0x2cf7   :  { %v6997_v55 = vpop.eup %6996  ;;  %6998 = vtanh.f32 %v2707_v52  ;;  %v6308_v56 = vpop.f32.mrb[67].mxu1 }
0x2cf8   :  { %5424 = vst.msk [vmem:[%s8937_s12 + $0x18] sm:$0xff] %vm67_vm1, %v6997_v55 }
0x2d01   :  { %v6999_v57 = vpop.eup %6998 }
0x2d02   :  { %2713 = vrot.lane.b32.xlu1 %v6999_v57, %s7128_s20  ;;  %v2709_v58 = vmul.f32 0.5, %v6999_v57 }
0x2d04   :  { %v2710_v59 = vadd.f32 0.5, %v2709_v58 }
0x2d06   :  { %v2711_v62 = vmul.f32 %v2710_v59, %v7883_v7 }
0x2d74   :  { %v2714_v60 = vpop.permute.xlu1 %2713 }
0x2d75   :  { %v2716_v61 = vmul.f32 %v2714_v60, %v2710_v59 }
0x2d77   :  { %2718 = vrot.lane.b32.xlu0 %v2716_v61, %s7129_s23 }
0x2de9   :  { %v2719_v63 = vpop.permute.xlu0 %2718 }
0x2dea   :  { %v8087_v2 = vadd.f32 %v2719_v63, %v2711_v62 }
0x2dec   :  { %7000 = vtanh.f32 %v8087_v2 }
0x2df6   :  { %v7001_v7 = vpop.eup %7000 }
0x2df7   :  { %2724 = vrot.lane.b32.xlu1 %v7001_v7, %s7128_s20 }
0x2e69   :  { %v2725_v5 = vpop.permute.xlu1 %2724 }
0x2e6a   :  { %v2727_v6 = vmul.f32 %v2725_v5, %v2710_v59 }
0x2e6c   :  { %v2728_v8 = vpack.c.bf16 %v2727_v6, %v2727_v6 }
0x2e6e   :  { %2735 = vrot.lane.b32.xlu0 %v2728_v8, %s7129_s23  ;;  %v6834_v8 = vld [vmem:[%s8935_s10] sm:$0xff]  }
0x2ee0   :  { %v2736_v9 = vpop.permute.xlu0 %2735 }
0x2ee1   :  { %6314 = vmatmul.mubr.msk.bf16.vlgmr.msra.gmra.mrb[68].mxu1 %vm67_vm1, %v2736_v9  ;;  %v6835_v9 = vld [vmem:[%s8935_s10 + $0x8] sm:$0xff]  }
0x2ee2   :  { %6345 = vmatprep.mubr.msk.bf16.mxu1 %vm7127_vm0, %v7126_v1  ;;  %6338 = vmatpush3.bf16.msra.mxu1 %v6826_v25 }
0x2ee3   :  { %6339 = vmatprep.subr.bf16.mxu1 %v7126_v1 }
0x2ee6   :  { %6340 = vmatpush3.bf16.msra.mxu1 %v6827_v30 }
0x2ee7   :  { %6341 = vmatprep.subr.bf16.mxu1 %v7126_v1 }
0x2eea   :  { %6342 = vmatpush3.bf16.msra.mxu1 %v6828_v31 }
0x2eeb   :  { %6343 = vmatprep.subr.bf16.mxu1 %v7126_v1 }
0x2eee   :  { %6344 = vmatpush3.bf16.msra.mxu1 %v6829_v33 }
0x2eef   :  { %6349 = vmatprep.subr.bf16.mxu1 %v7126_v1 }
0x2fb4   :  { %v2786_v14 = vpop.f32.mrb[68].mxu1 }
0x2fb5   :  { %v2787_v18 = vadd.f32 %v2786_v14, %v8134_v15  ;;  %v6315_v19 = vpop.f32.mrb[69].mxu1 }
0x2fb6   :  { %v2789_v22 = vpop.f32.mrb[70].mxu1 }
0x2fb7   :  { %2792 = vmax.xlane.f32.xlu1 %v2787_v18  ;;  %v6316_v20 = vpop.f32.mrb[71].mxu1 }
0x2fc8   :  { %2989 = vrot.lane.b32.xlu1 %v6997_v55, %s7129_s23  ;;  %v8231_v55 = vld [vmem:[%s8934_s9] ss:$0 sm:$0xff] }
0x3044   :  { %v2793_v26 = vpop.xlane.xlu1 %2792 }
0x3045   :  { %v2794_v27 = vsub.f32 %v2787_v18, %v2793_v26 }
0x3047   :  { %v2795_v17 = vmul.f32 1.442695, %v2794_v27  ;;  %v6836_v27 = vld [vmem:[%s8936_s11] sm:$0xff]  }
0x3048   :  { %v2990_v52 = vpop.permute.xlu1 %2989 }
0x3049   :  { %7002 = vpow2.f32 %v2795_v17  ;;  %v6837_v17 = vld [vmem:[%s8936_s11 + $0x8] sm:$0xff]  }
0x3053   :  { %v7003_v28 = vpop.eup %7002 }
0x3054   :  { %2902 = vadd.xlane.f32.xlu0 %v7003_v28  ;;  %v2797_v29 = vpack.c.bf16 %v7003_v28, %v7003_v28  ;;  %v6838_v28 = vld [vmem:[%s8936_s11 + $0x10] sm:$0xff]  }
0x3056   :  { %6334 = vmatmul.mubr.bf16.vlgmr.msra.gmra.mrb[64].mxu0 %v2797_v29  ;;  %v6839_v29 = vld [vmem:[%s8936_s11 + $0x18] sm:$0xff]  }
0x3057   :  { %6365 = vmatprep.mubr.msk.bf16.mxu0 %vm7127_vm0, %v7126_v1  ;;  %6362 = vmatpush3.bf16.msra.mxu0 %v6834_v8  ;;  %v8322_v8 = vld [vmem:[%s8928_s3] sm:$0xff]  }
0x3058   :  { %6363 = vmatprep.subr.bf16.mxu0 %v7126_v1 }
0x305b   :  { %6364 = vmatpush3.bf16.msra.mxu0 %v6835_v9  ;;  %v8328_v9 = vld [vmem:[%s8928_s3 + $0x8] sm:$0xff]  }
0x305c   :  { %6389 = vmatprep.subr.bf16.mxu0 %v7126_v1 }
0x306a   :  { %2907 = vrot.lane.b32.xlu0 %v2727_v6, %s7128_s20 }
0x30e1   :  { %v2903_v34 = vpop.xlane.xlu0 %2902 }
0x30e2   :  { %7004 = vrcp.f32 %v2903_v34 }
0x30e5   :  { %v2908_v32 = vpop.permute.xlu0 %2907 }
0x30ec   :  { %v7005_v35 = vpop.eup %7004 }
0x3129   :  { %v2896_v36 = vpop.f32.mrb[64].mxu0 }
0x312a   :  { %v2905_v37 = vmul.f32 %v7005_v35, %v2896_v36  ;;  %v6335_v38 = vpop.f32.mrb[65].mxu0 }
0x312b   :  { %v2899_v39 = vpop.f32.mrb[66].mxu0 }
0x312c   :  { %v2910_v40 = vsel %vm67_vm1, %v2905_v37, %v2908_v32  ;;  %v6336_v41 = vpop.f32.mrb[67].mxu0  ;;  %v6840_v32 = vld [vmem:[%s8930_s5] sm:$0xff]  }
0x312d   :  { %v2911_v42 = vpack.c.bf16 %v2910_v40, %v2910_v40  ;;  %v6841_v40 = vld [vmem:[%s8930_s5 + $0x8] sm:$0xff]  }
0x312f   :  { %6346 = vmatmul.mubr.msk.bf16.vlgmr.msra.gmra.mrb[72].mxu1 %vm352_vm2, %v2911_v42 }
0x3130   :  { %6357 = vmatprep.mubr.msk.bf16.mxu1 %vm7127_vm0, %v7126_v1  ;;  %6350 = vmatpush3.bf16.msra.mxu1 %v6830_v43 }
0x3131   :  { %6351 = vmatprep.subr.bf16.mxu1 %v7126_v1 }
0x3134   :  { %6352 = vmatpush3.bf16.msra.mxu1 %v6831_v44 }
0x3135   :  { %6353 = vmatprep.subr.bf16.mxu1 %v7126_v1 }
0x3138   :  { %6354 = vmatpush3.bf16.msra.mxu1 %v6832_v45 }
0x3139   :  { %6355 = vmatprep.subr.bf16.mxu1 %v7126_v1 }
0x313c   :  { %6356 = vmatpush3.bf16.msra.mxu1 %v6833_v46  ;;  %v5460_v46 = vld [vmem:[%s8925_s0 + $0x28] sm:$0xff] }
0x313d   :  { %6369 = vmatprep.subr.bf16.mxu1 %v7126_v1 }
0x3202   :  { %v2981_v47 = vpop.f32.mrb[72].mxu1 }
0x3203   :  { %7006 = vtanh.f32 %v2981_v47  ;;  %v6347_v48 = vpop.f32.mrb[73].mxu1 }
0x3204   :  { %v2984_v49 = vpop.f32.mrb[74].mxu1 }
0x3205   :  { %v6348_v50 = vpop.f32.mrb[75].mxu1 }
0x320d   :  { %v8205_v51 = vpop.eup %7006 }
0x320e   :  { %v2992_v53 = vsel %vm67_vm1, %v8205_v51, %v2990_v52  ;;  %v3295_v41 = vpack.c.bf16 %v8205_v51, %v8205_v51 }
0x320f   :  { %v2993_v54 = vpack.c.bf16 %v2992_v53, %v2992_v53 }
0x3211   :  { %6358 = vmatmul.mubr.msk.bf16.vlgmr.msra.gmra.mrb[76].mxu1 %vm352_vm2, %v2993_v54 }
0x3212   :  { %6370 = vmatpush3.bf16.msra.mxu1 %v8106_v11  ;;  %6385 = vmatprep.mubr.msk.bf16.mxu1 %vm7127_vm0, %v7126_v1 }
0x3213   :  { %6371 = vmatprep.subr.bf16.mxu1 %v7126_v1 }
0x3216   :  { %6372 = vmatpush3.bf16.msra.mxu1 %v8112_v12 }
0x3217   :  { %6373 = vmatprep.subr.bf16.mxu1 %v7126_v1 }
0x321a   :  { %6374 = vmatpush3.bf16.msra.mxu1 %v8119_v0 }
0x321b   :  { %6375 = vmatprep.subr.bf16.mxu1 %v7126_v1 }
0x321e   :  { %6376 = vmatpush3.bf16.msra.mxu1 %v8126_v16 }
0x321f   :  { %6377 = vmatprep.subr.bf16.mxu1 %v7126_v1 }
0x3222   :  { %6378 = vmatpush3.bf16.msra.mxu1 %v8140_v21 }
0x3223   :  { %6379 = vmatprep.subr.bf16.mxu1 %v7126_v1 }
0x3226   :  { %6380 = vmatpush3.bf16.msra.mxu1 %v8148_v10 }
0x3227   :  { %6381 = vmatprep.subr.bf16.mxu1 %v7126_v1 }
0x322a   :  { %6382 = vmatpush3.bf16.msra.mxu1 %v8154_v23 }
0x322b   :  { %6383 = vmatprep.subr.bf16.mxu1 %v7126_v1 }
0x322e   :  { %6384 = vmatpush3.bf16.msra.mxu1 %v8161_v24 }
0x322f   :  { %6417 = vmatprep.subr.bf16.mxu1 %v7126_v1 }
0x32e4   :  { %v3070_v56 = vpop.f32.mrb[76].mxu1 }
0x32e5   :  { %v3071_v57 = vadd.f32 %v8231_v55, %v3070_v56  ;;  %v6359_v58 = vpop.f32.mrb[77].mxu1 }
0x32e6   :  { %v3073_v59 = vpop.f32.mrb[78].mxu1 }
0x32e7   :  { %7008 = vtanh.f32 %v3071_v57  ;;  %v6360_v60 = vpop.f32.mrb[79].mxu1 }
0x32f1   :  { %v7009_v61 = vpop.eup %7008 }
0x32f2   :  { %3081 = vrot.lane.b32.xlu1 %v7009_v61, %s7128_s20  ;;  %v3077_v62 = vmul.f32 0.5, %v7009_v61 }
0x32f4   :  { %v3078_v63 = vadd.f32 0.5, %v3077_v62  ;;  %v6842_v62 = vld [vmem:[%s8931_s6] sm:$0xff]  }
0x32f6   :  { %v3079_v7 = vmul.f32 %v3078_v63, %v8024_v13 }
0x3364   :  { %v3082_v3 = vpop.permute.xlu1 %3081 }
0x3365   :  { %v3084_v4 = vmul.f32 %v3082_v3, %v3078_v63 }
0x3367   :  { %3086 = vrot.lane.b32.xlu0 %v3084_v4, %s7129_s23 }
0x33d9   :  { %v3087_v5 = vpop.permute.xlu0 %3086 }
0x33da   :  { %v8237_v6 = vadd.f32 %v3087_v5, %v3079_v7 }
0x33dc   :  { %7010 = vtanh.f32 %v8237_v6 }
0x33e6   :  { %v7011_v13 = vpop.eup %7010 }
0x33e7   :  { %3092 = vrot.lane.b32.xlu1 %v7011_v13, %s7128_s20  ;;  %v8335_v13 = vld [vmem:[%s8928_s3 + $0x10] sm:$0xff]  }
0x3459   :  { %v3093_v11 = vpop.permute.xlu1 %3092 }
0x345a   :  { %v3095_v12 = vmul.f32 %v3093_v11, %v3078_v63  ;;  %v6843_v63 = vld [vmem:[%s8931_s6 + $0x8] sm:$0xff]   ;;  %v8342_v11 = vld [vmem:[%s8928_s3 + $0x18] sm:$0xff]  }
0x345c   :  { %v3096_v0 = vpack.c.bf16 %v3095_v12, %v3095_v12 }
0x345e   :  { %3102 = vrot.lane.b32.xlu0 %v3096_v0, %s7129_s23 }
0x34d0   :  { %v3103_v16 = vpop.permute.xlu0 %3102 }
0x34d1   :  { %6366 = vmatmul.mubr.msk.bf16.vlgmr.msra.gmra.mrb[68].mxu0 %vm67_vm1, %v3103_v16 }
0x34d2   :  { %6397 = vmatprep.mubr.msk.bf16.mxu0 %vm7127_vm0, %v7126_v1  ;;  %6390 = vmatpush3.bf16.msra.mxu0 %v6836_v27 }
0x34d3   :  { %6391 = vmatprep.subr.bf16.mxu0 %v7126_v1 }
0x34d6   :  { %6392 = vmatpush3.bf16.msra.mxu0 %v6837_v17  ;;  %v6852_v17 = vld [vmem:[%s8932_s7] sm:$0xff]  }
0x34d7   :  { %6393 = vmatprep.subr.bf16.mxu0 %v7126_v1 }
0x34da   :  { %6394 = vmatpush3.bf16.msra.mxu0 %v6838_v28  ;;  %v6853_v28 = vld [vmem:[%s8932_s7 + $0x8] sm:$0xff]  }
0x34db   :  { %6395 = vmatprep.subr.bf16.mxu0 %v7126_v1 }
0x34de   :  { %6396 = vmatpush3.bf16.msra.mxu0 %v6839_v29  ;;  %v6854_v29 = vld [vmem:[%s8932_s7 + $0x10] sm:$0xff]  }
0x34df   :  { %6401 = vmatprep.subr.bf16.mxu0 %v7126_v1 }
0x35a4   :  { %v3153_v14 = vpop.f32.mrb[68].mxu0 }
0x35a5   :  { %v3154_v18 = vadd.f32 %v3153_v14, %v8134_v15  ;;  %v6367_v19 = vpop.f32.mrb[69].mxu0 }
0x35a6   :  { %v3156_v22 = vpop.f32.mrb[70].mxu0  ;;  %v8351_v19 = vld [vmem:[%s8928_s3 + $0x20] sm:$0xff]  }
0x35a7   :  { %3159 = vmax.xlane.f32.xlu1 %v3154_v18  ;;  %v6368_v20 = vpop.f32.mrb[71].mxu0  ;;  %v8358_v22 = vld [vmem:[%s8928_s3 + $0x28] sm:$0xff]  }
0x35a8   :  { %v8364_v20 = vld [vmem:[%s8928_s3 + $0x30] sm:$0xff]  }
0x3634   :  { %v3160_v21 = vpop.xlane.xlu1 %3159 }
0x3635   :  { %v3161_v10 = vsub.f32 %v3154_v18, %v3160_v21  ;;  %v8372_v21 = vld [vmem:[%s8928_s3 + $0x38] sm:$0xff]  }
0x3637   :  { %v3162_v23 = vmul.f32 1.442695, %v3161_v10 }
0x3639   :  { %7012 = vpow2.f32 %v3162_v23 }
0x3643   :  { %v7013_v24 = vpop.eup %7012 }
0x3644   :  { %3205 = vadd.xlane.f32.xlu0 %v7013_v24  ;;  %v3164_v26 = vpack.c.bf16 %v7013_v24, %v7013_v24 }
0x3646   :  { %6386 = vmatmul.mubr.bf16.vlgmr.msra.gmra.mrb[80].mxu1 %v3164_v26 }
0x3647   :  { %6433 = vmatprep.mubr.msk.bf16.mxu1 %vm7127_vm0, %v7126_v1  ;;  %6418 = vmatpush3.bf16.msra.mxu1 %v8322_v8 }
0x3648   :  { %6419 = vmatprep.subr.bf16.mxu1 %v7126_v1 }
0x364b   :  { %6420 = vmatpush3.bf16.msra.mxu1 %v8328_v9 }
0x364c   :  { %6421 = vmatprep.subr.bf16.mxu1 %v7126_v1 }
0x364f   :  { %6422 = vmatpush3.bf16.msra.mxu1 %v8335_v13 }
0x3650   :  { %6423 = vmatprep.subr.bf16.mxu1 %v7126_v1 }
0x3653   :  { %6424 = vmatpush3.bf16.msra.mxu1 %v8342_v11 }
0x3654   :  { %6425 = vmatprep.subr.bf16.mxu1 %v7126_v1 }
0x3657   :  { %6426 = vmatpush3.bf16.msra.mxu1 %v8351_v19 }
0x3658   :  { %6427 = vmatprep.subr.bf16.mxu1 %v7126_v1 }
0x365a   :  { %3210 = vrot.lane.b32.xlu0 %v3095_v12, %s7128_s20 }
0x365b   :  { %6428 = vmatpush3.bf16.msra.mxu1 %v8358_v22 }
0x365c   :  { %6429 = vmatprep.subr.bf16.mxu1 %v7126_v1 }
0x365f   :  { %6430 = vmatpush3.bf16.msra.mxu1 %v8364_v20 }
0x3660   :  { %6431 = vmatprep.subr.bf16.mxu1 %v7126_v1 }
0x3663   :  { %6432 = vmatpush3.bf16.msra.mxu1 %v8372_v21 }
0x3664   :  { %6461 = vmatprep.subr.bf16.mxu1 %v7126_v1 }
0x36d1   :  { %v3206_v25 = vpop.xlane.xlu0 %3205 }
0x36d2   :  { %7014 = vrcp.f32 %v3206_v25  ;;  %v6855_v25 = vld [vmem:[%s8932_s7 + $0x18] sm:$0xff]  }
0x36d5   :  { %v3211_v35 = vpop.permute.xlu0 %3210 }
0x36dc   :  { %v7015_v30 = vpop.eup %7014 }
0x3719   :  { %v3199_v31 = vpop.f32.mrb[80].mxu1 }
0x371a   :  { %v3208_v33 = vmul.f32 %v7015_v30, %v3199_v31  ;;  %v6387_v34 = vpop.f32.mrb[81].mxu1 }
0x371b   :  { %v3202_v36 = vpop.f32.mrb[82].mxu1 }
0x371c   :  { %v3213_v37 = vsel %vm67_vm1, %v3208_v33, %v3211_v35  ;;  %v6388_v38 = vpop.f32.mrb[83].mxu1 }
0x371d   :  { %v3214_v39 = vpack.c.bf16 %v3213_v37, %v3213_v37 }
0x371f   :  { %6398 = vmatmul.mubr.msk.bf16.vlgmr.msra.gmra.mrb[72].mxu0 %vm352_vm2, %v3214_v39 }
0x3720   :  { %6402 = vmatpush3.bf16.msra.mxu0 %v6840_v32  ;;  %6405 = vmatprep.mubr.msk.bf16.mxu0 %vm7127_vm0, %v7126_v1 }
0x3721   :  { %6403 = vmatprep.subr.bf16.mxu0 %v7126_v1 }
0x3724   :  { %6404 = vmatpush3.bf16.msra.mxu0 %v6841_v40  ;;  %v6856_v40 = vld [vmem:[%s8933_s8] sm:$0xff]  }
0x3725   :  { %6409 = vmatprep.subr.bf16.mxu0 %v7126_v1 }
0x3727   :  { %6406 = vmatmul.mubr.msk.bf16.vlgmr.msra.gmra.mrb[76].mxu0 %vm67_vm1, %v3295_v41  ;;  %v6857_v41 = vld [vmem:[%s8933_s8 + $0x8] sm:$0xff]  }
0x3728   :  { %6413 = vmatprep.mubr.msk.bf16.mxu0 %vm7127_vm0, %v7126_v1  ;;  %6410 = vmatpush3.bf16.msra.mxu0 %v6842_v62 }
0x3729   :  { %6411 = vmatprep.subr.bf16.mxu0 %v7126_v1 }
0x372c   :  { %6412 = vmatpush3.bf16.msra.mxu0 %v6843_v63 }
0x372d   :  { %6437 = vmatprep.subr.bf16.mxu0 %v7126_v1 }
0x37f2   :  { %v3284_v42 = vpop.f32.mrb[72].mxu0 }
0x37f3   :  { %7016 = vtanh.f32 %v3284_v42  ;;  %v6399_v43 = vpop.f32.mrb[73].mxu0  ;;  %v6858_v42 = vld [vmem:[%s8933_s8 + $0x10] sm:$0xff]  }
0x37f4   :  { %v3287_v44 = vpop.f32.mrb[74].mxu0  ;;  %v6859_v43 = vld [vmem:[%s8933_s8 + $0x18] sm:$0xff]  }
0x37f5   :  { %v6400_v45 = vpop.f32.mrb[75].mxu0 }
0x37fa   :  { %v3349_v47 = vpop.f32.mrb[76].mxu0 }
0x37fb   :  { %v3355_v48 = vadd.f32 %v5460_v46, %v3349_v47  ;;  %v6407_v49 = vpop.f32.mrb[77].mxu0 }
0x37fc   :  { %v3352_v50 = vpop.f32.mrb[78].mxu0 }
0x37fd   :  { %v8293_v51 = vpop.eup %7016  ;;  %7018 = vtanh.f32 %v3355_v48  ;;  %v6408_v52 = vpop.f32.mrb[79].mxu0 }
0x37fe   :  { %5459 = vst.msk [vmem:[%s8937_s12 + $0x20] sm:$0xff] %vm67_vm1, %v8293_v51 }
0x3807   :  { %v7019_v53 = vpop.eup %7018 }
0x3808   :  { %3361 = vrot.lane.b32.xlu1 %v7019_v53, %s7128_s20  ;;  %v3357_v54 = vmul.f32 0.5, %v7019_v53 }
0x380a   :  { %v3358_v56 = vadd.f32 0.5, %v3357_v54 }
0x380c   :  { %v3359_v59 = vmul.f32 %v3358_v56, %v8087_v2 }
0x387a   :  { %v3362_v57 = vpop.permute.xlu1 %3361 }
0x387b   :  { %v3364_v58 = vmul.f32 %v3362_v57, %v3358_v56 }
0x387d   :  { %3366 = vrot.lane.b32.xlu1 %v3364_v58, %s7129_s23 }
0x38ef   :  { %v3367_v60 = vpop.permute.xlu1 %3366 }
0x38f0   :  { %v8303_v61 = vadd.f32 %v3367_v60, %v3359_v59 }
0x38f2   :  { %7020 = vtanh.f32 %v8303_v61 }
0x38fc   :  { %v7021_v2 = vpop.eup %7020 }
0x38fd   :  { %3372 = vrot.lane.b32.xlu0 %v7021_v2, %s7128_s20 }
0x396f   :  { %v3373_v3 = vpop.permute.xlu0 %3372 }
0x3970   :  { %v3375_v4 = vmul.f32 %v3373_v3, %v3358_v56 }
0x3972   :  { %v3376_v7 = vpack.c.bf16 %v3375_v4, %v3375_v4 }
0x3974   :  { %3383 = vrot.lane.b32.xlu1 %v3376_v7, %s7129_s23  ;;  %v6861_v7 = vld [vmem:[%s8935_s10 + $0x8] sm:$0xff]  }
0x39e6   :  { %v3384_v5 = vpop.permute.xlu1 %3383 }
0x39e7   :  { %6414 = vmatmul.mubr.msk.bf16.vlgmr.msra.gmra.mrb[80].mxu0 %vm67_vm1, %v3384_v5 }
0x39e8   :  { %6445 = vmatprep.mubr.msk.bf16.mxu0 %vm7127_vm0, %v7126_v1  ;;  %6438 = vmatpush3.bf16.msra.mxu0 %v6852_v17 }
0x39e9   :  { %6439 = vmatprep.subr.bf16.mxu0 %v7126_v1 }
0x39ec   :  { %6440 = vmatpush3.bf16.msra.mxu0 %v6853_v28 }
0x39ed   :  { %6441 = vmatprep.subr.bf16.mxu0 %v7126_v1 }
0x39f0   :  { %6442 = vmatpush3.bf16.msra.mxu0 %v6854_v29 }
0x39f1   :  { %6443 = vmatprep.subr.bf16.mxu0 %v7126_v1 }
0x39f4   :  { %6444 = vmatpush3.bf16.msra.mxu0 %v6855_v25 }
0x39f5   :  { %6449 = vmatprep.subr.bf16.mxu0 %v7126_v1 }
0x3aba   :  { %v3434_v12 = vpop.f32.mrb[80].mxu0 }
0x3abb   :  { %v3435_v0 = vadd.f32 %v3434_v12, %v8134_v15  ;;  %v6415_v16 = vpop.f32.mrb[81].mxu0 }
0x3abc   :  { %v3437_v14 = vpop.f32.mrb[82].mxu0 }
0x3abd   :  { %3440 = vmax.xlane.f32.xlu0 %v3435_v0  ;;  %v6416_v18 = vpop.f32.mrb[83].mxu0 }
0x3ad3   :  { %3555 = vrot.lane.b32.xlu0 %v3375_v4, %s7128_s20 }
0x3b4a   :  { %v3441_v10 = vpop.xlane.xlu0 %3440 }
0x3b4b   :  { %v3442_v23 = vsub.f32 %v3435_v0, %v3441_v10  ;;  %v6863_v10 = vld [vmem:[%s8936_s11 + $0x8] sm:$0xff]  }
0x3b4d   :  { %v3443_v24 = vmul.f32 1.442695, %v3442_v23  ;;  %v6864_v23 = vld [vmem:[%s8936_s11 + $0x10] sm:$0xff]  }
0x3b4e   :  { %v3556_v36 = vpop.permute.xlu0 %3555 }
0x3b4f   :  { %7022 = vpow2.f32 %v3443_v24  ;;  %v6865_v24 = vld [vmem:[%s8936_s11 + $0x18] sm:$0xff]  }
0x3b59   :  { %v7023_v26 = vpop.eup %7022 }
0x3b5a   :  { %3550 = vadd.xlane.f32.xlu1 %v7023_v26  ;;  %v3445_v27 = vpack.c.bf16 %v7023_v26, %v7023_v26 }
0x3b5c   :  { %6434 = vmatmul.mubr.bf16.vlgmr.msra.gmra.mrb[84].mxu1 %v3445_v27 }
0x3b5d   :  { %6465 = vmatprep.mubr.msk.bf16.mxu1 %vm7127_vm0, %v7126_v1 }
0x3b6b   :  { %3637 = vrot.lane.b32.xlu1 %v8293_v51, %s7129_s23 }
0x3be7   :  { %v3551_v30 = vpop.xlane.xlu1 %3550 }
0x3be8   :  { %7024 = vrcp.f32 %v3551_v30 }
0x3beb   :  { %v3638_v49 = vpop.permute.xlu1 %3637 }
0x3bf2   :  { %v7025_v31 = vpop.eup %7024 }
0x3c2f   :  { %v3544_v33 = vpop.f32.mrb[84].mxu1 }
0x3c30   :  { %v3553_v34 = vmul.f32 %v7025_v31, %v3544_v33  ;;  %v6435_v35 = vpop.f32.mrb[85].mxu1 }
0x3c31   :  { %v3547_v37 = vpop.f32.mrb[86].mxu1 }
0x3c32   :  { %v3558_v38 = vsel %vm67_vm1, %v3553_v34, %v3556_v36  ;;  %v6436_v32 = vpop.f32.mrb[87].mxu1  ;;  %v6866_v34 = vld [vmem:[%s8930_s5] sm:$0xff]   ;;  %v6867_v36 = vld [vmem:[%s8930_s5 + $0x8] sm:$0xff]  }
0x3c33   :  { %v3559_v39 = vpack.c.bf16 %v3558_v38, %v3558_v38 }
0x3c35   :  { %6446 = vmatmul.mubr.msk.bf16.vlgmr.msra.gmra.mrb[84].mxu0 %vm352_vm2, %v3559_v39 }
0x3c36   :  { %6457 = vmatprep.mubr.msk.bf16.mxu0 %vm7127_vm0, %v7126_v1  ;;  %6450 = vmatpush3.bf16.msra.mxu0 %v6856_v40 }
0x3c37   :  { %6451 = vmatprep.subr.bf16.mxu0 %v7126_v1 }
0x3c3a   :  { %6452 = vmatpush3.bf16.msra.mxu0 %v6857_v41  ;;  %v5495_v41 = vld [vmem:[%s8925_s0 + $0x30] sm:$0xff] }
0x3c3b   :  { %6453 = vmatprep.subr.bf16.mxu0 %v7126_v1 }
0x3c3e   :  { %6454 = vmatpush3.bf16.msra.mxu0 %v6858_v42 }
0x3c3f   :  { %6455 = vmatprep.subr.bf16.mxu0 %v7126_v1 }
0x3c42   :  { %6456 = vmatpush3.bf16.msra.mxu0 %v6859_v43 }
0x3c43   :  { %6469 = vmatprep.subr.bf16.mxu0 %v7126_v1 }
0x3d08   :  { %v3629_v44 = vpop.f32.mrb[84].mxu0 }
0x3d09   :  { %7026 = vtanh.f32 %v3629_v44  ;;  %v6447_v45 = vpop.f32.mrb[85].mxu0 }
0x3d0a   :  { %v3632_v46 = vpop.f32.mrb[86].mxu0 }
0x3d0b   :  { %v6448_v47 = vpop.f32.mrb[87].mxu0 }
0x3d13   :  { %v8417_v48 = vpop.eup %7026 }
0x3d14   :  { %v3640_v50 = vsel %vm67_vm1, %v8417_v48, %v3638_v49  ;;  %v3943_v37 = vpack.c.bf16 %v8417_v48, %v8417_v48 }
0x3d15   :  { %v3641_v51 = vpack.c.bf16 %v3640_v50, %v3640_v50 }
0x3d17   :  { %6458 = vmatmul.mubr.msk.bf16.vlgmr.msra.gmra.mrb[88].mxu0 %vm352_vm2, %v3641_v51 }
0x3d18   :  { %6470 = vmatpush3.bf16.msra.mxu0 %v8322_v8  ;;  %6485 = vmatprep.mubr.msk.bf16.mxu0 %vm7127_vm0, %v7126_v1 }
0x3d19   :  { %6471 = vmatprep.subr.bf16.mxu0 %v7126_v1 }
0x3d1c   :  { %6472 = vmatpush3.bf16.msra.mxu0 %v8328_v9 }
0x3d1d   :  { %6473 = vmatprep.subr.bf16.mxu0 %v7126_v1 }
0x3d20   :  { %6474 = vmatpush3.bf16.msra.mxu0 %v8335_v13 }
0x3d21   :  { %6475 = vmatprep.subr.bf16.mxu0 %v7126_v1 }
0x3d24   :  { %6476 = vmatpush3.bf16.msra.mxu0 %v8342_v11 }
0x3d25   :  { %6477 = vmatprep.subr.bf16.mxu0 %v7126_v1 }
0x3d28   :  { %6478 = vmatpush3.bf16.msra.mxu0 %v8351_v19 }
0x3d29   :  { %6479 = vmatprep.subr.bf16.mxu0 %v7126_v1 }
0x3d2c   :  { %6480 = vmatpush3.bf16.msra.mxu0 %v8358_v22 }
0x3d2d   :  { %6481 = vmatprep.subr.bf16.mxu0 %v7126_v1 }
0x3d30   :  { %6482 = vmatpush3.bf16.msra.mxu0 %v8364_v20 }
0x3d31   :  { %6483 = vmatprep.subr.bf16.mxu0 %v7126_v1 }
0x3d34   :  { %6484 = vmatpush3.bf16.msra.mxu0 %v8372_v21 }
0x3d35   :  { %6517 = vmatprep.subr.bf16.mxu0 %v7126_v1 }
0x3dea   :  { %v3718_v52 = vpop.f32.mrb[88].mxu0 }
0x3deb   :  { %v3719_v53 = vadd.f32 %v8231_v55, %v3718_v52  ;;  %v6459_v54 = vpop.f32.mrb[89].mxu0  ;;  %v6860_v55 = vld [vmem:[%s8935_s10] sm:$0xff]  }
0x3dec   :  { %v3721_v56 = vpop.f32.mrb[90].mxu0  ;;  %6462 = vmatpush3.bf16.msra.mxu1 %v6860_v55  ;;  %v8539_v55 = vld [vmem:[%s8928_s3 + $0x10] sm:$0xff]  }
0x3ded   :  { %7028 = vtanh.f32 %v3719_v53  ;;  %v6460_v57 = vpop.f32.mrb[91].mxu0  ;;  %6463 = vmatprep.subr.bf16.mxu1 %v7126_v1 }
0x3dee   :  { %v6868_v57 = vld [vmem:[%s8931_s6] sm:$0xff]  }
0x3df0   :  { %6464 = vmatpush3.bf16.msra.mxu1 %v6861_v7  ;;  %v8546_v7 = vld [vmem:[%s8928_s3 + $0x18] sm:$0xff]  }
0x3df1   :  { %6489 = vmatprep.subr.bf16.mxu1 %v7126_v1 }
0x3df7   :  { %v7029_v58 = vpop.eup %7028 }
0x3df8   :  { %3729 = vrot.lane.b32.xlu0 %v7029_v58, %s7128_s20  ;;  %v3725_v59 = vmul.f32 0.5, %v7029_v58  ;;  %v6869_v58 = vld [vmem:[%s8931_s6 + $0x8] sm:$0xff]  }
0x3dfa   :  { %v3726_v60 = vadd.f32 0.5, %v3725_v59 }
0x3dfc   :  { %v3727_v2 = vmul.f32 %v3726_v60, %v8237_v6 }
0x3e6a   :  { %v3730_v62 = vpop.permute.xlu0 %3729 }
0x3e6b   :  { %v3732_v63 = vmul.f32 %v3730_v62, %v3726_v60 }
0x3e6d   :  { %3734 = vrot.lane.b32.xlu1 %v3732_v63, %s7129_s23 }
0x3edf   :  { %v3735_v3 = vpop.permute.xlu1 %3734 }
0x3ee0   :  { %v8444_v4 = vadd.f32 %v3735_v3, %v3727_v2  ;;  %v8526_v2 = vld [vmem:[%s8928_s3] sm:$0xff]   ;;  %v8532_v3 = vld [vmem:[%s8928_s3 + $0x8] sm:$0xff]  }
0x3ee2   :  { %7030 = vtanh.f32 %v8444_v4 }
0x3eec   :  { %v7031_v6 = vpop.eup %7030 }
0x3eed   :  { %3740 = vrot.lane.b32.xlu0 %v7031_v6, %s7128_s20  ;;  %v8554_v6 = vld [vmem:[%s8929_s4] sm:$0xff] }
0x3f5f   :  { %v3741_v5 = vpop.permute.xlu0 %3740 }
0x3f60   :  { %v3743_v8 = vmul.f32 %v3741_v5, %v3726_v60 }
0x3f62   :  { %v3744_v9 = vpack.c.bf16 %v3743_v8, %v3743_v8 }
0x3f64   :  { %3750 = vrot.lane.b32.xlu1 %v3744_v9, %s7129_s23 }
0x3fd6   :  { %v3751_v13 = vpop.permute.xlu1 %3750 }
0x3fd7   :  { %6466 = vmatmul.mubr.msk.bf16.vlgmr.msra.gmra.mrb[88].mxu1 %vm67_vm1, %v3751_v13 }
0x3fd8   :  { %6497 = vmatprep.mubr.msk.bf16.mxu1 %vm7127_vm0, %v7126_v1 }
0x40aa   :  { %v3801_v11 = vpop.f32.mrb[88].mxu1 }
0x40ab   :  { %v3802_v12 = vadd.f32 %v3801_v11, %v8134_v15  ;;  %v6467_v0 = vpop.f32.mrb[89].mxu1  ;;  %v6862_v15 = vld [vmem:[%s8936_s11] sm:$0xff]  }
0x40ac   :  { %v3804_v16 = vpop.f32.mrb[90].mxu1  ;;  %6490 = vmatpush3.bf16.msra.mxu1 %v6862_v15  ;;  %v8568_v0 = vld [vmem:[%s8928_s3 + $0x28] sm:$0xff]   ;;  %v6878_v15 = vld [vmem:[%s8932_s7] sm:$0xff]  }
0x40ad   :  { %3807 = vmax.xlane.f32.xlu0 %v3802_v12  ;;  %v6468_v14 = vpop.f32.mrb[91].mxu1  ;;  %6491 = vmatprep.subr.bf16.mxu1 %v7126_v1  ;;  %v8574_v16 = vld [vmem:[%s8928_s3 + $0x30] sm:$0xff]  }
0x40ae   :  { %v8581_v14 = vld [vmem:[%s8928_s3 + $0x38] sm:$0xff]  }
0x40b0   :  { %6492 = vmatpush3.bf16.msra.mxu1 %v6863_v10  ;;  %v6879_v10 = vld [vmem:[%s8932_s7 + $0x8] sm:$0xff]  }
0x40b1   :  { %6493 = vmatprep.subr.bf16.mxu1 %v7126_v1 }
0x40b4   :  { %6494 = vmatpush3.bf16.msra.mxu1 %v6864_v23  ;;  %v6880_v23 = vld [vmem:[%s8932_s7 + $0x10] sm:$0xff]  }
0x40b5   :  { %6495 = vmatprep.subr.bf16.mxu1 %v7126_v1 }
0x40b8   :  { %6496 = vmatpush3.bf16.msra.mxu1 %v6865_v24  ;;  %v6881_v24 = vld [vmem:[%s8932_s7 + $0x18] sm:$0xff]  }
0x40b9   :  { %6501 = vmatprep.subr.bf16.mxu1 %v7126_v1 }
0x40c3   :  { %3858 = vrot.lane.b32.xlu0 %v3743_v8, %s7128_s20 }
0x413a   :  { %v3808_v18 = vpop.xlane.xlu0 %3807 }
0x413b   :  { %v3809_v19 = vsub.f32 %v3802_v12, %v3808_v18  ;;  %v8560_v12 = vld [vmem:[%s8928_s3 + $0x20] sm:$0xff]  }
0x413d   :  { %v3810_v22 = vmul.f32 1.442695, %v3809_v19 }
0x413e   :  { %v3859_v25 = vpop.permute.xlu0 %3858 }
0x413f   :  { %7032 = vpow2.f32 %v3810_v22 }
0x4149   :  { %v7033_v20 = vpop.eup %7032 }
0x414a   :  { %3853 = vadd.xlane.f32.xlu1 %v7033_v20  ;;  %v3812_v21 = vpack.c.bf16 %v7033_v20, %v7033_v20 }
0x414c   :  { %6486 = vmatmul.mubr.bf16.vlgmr.msra.gmra.mrb[92].mxu0 %v3812_v21 }
0x414d   :  { %6533 = vmatprep.mubr.msk.bf16.mxu0 %vm7127_vm0, %v7126_v1  ;;  %6518 = vmatpush3.bf16.msra.mxu0 %v8526_v2 }
0x414e   :  { %6519 = vmatprep.subr.bf16.mxu0 %v7126_v1 }
0x4151   :  { %6520 = vmatpush3.bf16.msra.mxu0 %v8532_v3 }
0x4152   :  { %6521 = vmatprep.subr.bf16.mxu0 %v7126_v1 }
0x4155   :  { %6522 = vmatpush3.bf16.msra.mxu0 %v8539_v55 }
0x4156   :  { %6523 = vmatprep.subr.bf16.mxu0 %v7126_v1 }
0x4159   :  { %6524 = vmatpush3.bf16.msra.mxu0 %v8546_v7 }
0x415a   :  { %6525 = vmatprep.subr.bf16.mxu0 %v7126_v1 }
0x415d   :  { %6526 = vmatpush3.bf16.msra.mxu0 %v8560_v12 }
0x415e   :  { %6527 = vmatprep.subr.bf16.mxu0 %v7126_v1 }
0x4161   :  { %6528 = vmatpush3.bf16.msra.mxu0 %v8568_v0 }
0x4162   :  { %6529 = vmatprep.subr.bf16.mxu0 %v7126_v1 }
0x4165   :  { %6530 = vmatpush3.bf16.msra.mxu0 %v8574_v16 }
0x4166   :  { %6531 = vmatprep.subr.bf16.mxu0 %v7126_v1 }
0x4169   :  { %6532 = vmatpush3.bf16.msra.mxu0 %v8581_v14 }
0x416a   :  { %6561 = vmatprep.subr.bf16.mxu0 %v7126_v1 }
0x41d7   :  { %v3854_v26 = vpop.xlane.xlu1 %3853 }
0x41d8   :  { %7034 = vrcp.f32 %v3854_v26 }
0x41e2   :  { %v7035_v27 = vpop.eup %7034 }
0x421f   :  { %v3847_v17 = vpop.f32.mrb[92].mxu0 }
0x4220   :  { %v3856_v28 = vmul.f32 %v7035_v27, %v3847_v17  ;;  %v6487_v29 = vpop.f32.mrb[93].mxu0 }
0x4221   :  { %v3850_v30 = vpop.f32.mrb[94].mxu0 }
0x4222   :  { %v3861_v31 = vsel %vm67_vm1, %v3856_v28, %v3859_v25  ;;  %v6488_v33 = vpop.f32.mrb[95].mxu0 }
0x4223   :  { %v3862_v35 = vpack.c.bf16 %v3861_v31, %v3861_v31 }
0x4225   :  { %6498 = vmatmul.mubr.msk.bf16.vlgmr.msra.gmra.mrb[92].mxu1 %vm352_vm2, %v3862_v35  ;;  %v6882_v35 = vld [vmem:[%s8933_s8] sm:$0xff]  }
0x4226   :  { %6502 = vmatpush3.bf16.msra.mxu1 %v6866_v34  ;;  %6505 = vmatprep.mubr.msk.bf16.mxu1 %vm7127_vm0, %v7126_v1 }
0x4227   :  { %6503 = vmatprep.subr.bf16.mxu1 %v7126_v1 }
0x422a   :  { %6504 = vmatpush3.bf16.msra.mxu1 %v6867_v36  ;;  %v6883_v36 = vld [vmem:[%s8933_s8 + $0x8] sm:$0xff]  }
0x422b   :  { %6509 = vmatprep.subr.bf16.mxu1 %v7126_v1 }
0x422d   :  { %6506 = vmatmul.mubr.msk.bf16.vlgmr.msra.gmra.mrb[96].mxu1 %vm67_vm1, %v3943_v37  ;;  %v6884_v37 = vld [vmem:[%s8933_s8 + $0x10] sm:$0xff]  }
0x422e   :  { %6513 = vmatprep.mubr.msk.bf16.mxu1 %vm7127_vm0, %v7126_v1  ;;  %6510 = vmatpush3.bf16.msra.mxu1 %v6868_v57 }
0x422f   :  { %6511 = vmatprep.subr.bf16.mxu1 %v7126_v1 }
0x4232   :  { %6512 = vmatpush3.bf16.msra.mxu1 %v6869_v58 }
0x4233   :  { %6537 = vmatprep.subr.bf16.mxu1 %v7126_v1 }
0x42f8   :  { %v3932_v38 = vpop.f32.mrb[92].mxu1 }
0x42f9   :  { %7036 = vtanh.f32 %v3932_v38  ;;  %v6499_v32 = vpop.f32.mrb[93].mxu1  ;;  %v6885_v38 = vld [vmem:[%s8933_s8 + $0x18] sm:$0xff]  }
0x42fa   :  { %v3935_v39 = vpop.f32.mrb[94].mxu1 }
0x42fb   :  { %v6500_v40 = vpop.f32.mrb[95].mxu1 }
0x4300   :  { %v3997_v42 = vpop.f32.mrb[96].mxu1 }
0x4301   :  { %v4003_v43 = vadd.f32 %v5495_v41, %v3997_v42  ;;  %v6507_v44 = vpop.f32.mrb[97].mxu1 }
0x4302   :  { %v4000_v45 = vpop.f32.mrb[98].mxu1 }
0x4303   :  { %v7037_v46 = vpop.eup %7036  ;;  %7038 = vtanh.f32 %v4003_v43  ;;  %v6508_v47 = vpop.f32.mrb[99].mxu1 }
0x4304   :  { %5494 = vst.msk [vmem:[%s8937_s12 + $0x28] sm:$0xff] %vm67_vm1, %v7037_v46 }
0x430d   :  { %v7039_v48 = vpop.eup %7038 }
0x430e   :  { %4009 = vrot.lane.b32.xlu1 %v7039_v48, %s7128_s20  ;;  %v4005_v49 = vmul.f32 0.5, %v7039_v48 }
0x4310   :  { %v4006_v50 = vadd.f32 0.5, %v4005_v49 }
0x4312   :  { %v4007_v53 = vmul.f32 %v4006_v50, %v8303_v61 }
0x4380   :  { %v4010_v51 = vpop.permute.xlu1 %4009 }
0x4381   :  { %v4012_v52 = vmul.f32 %v4010_v51, %v4006_v50 }
0x4383   :  { %4014 = vrot.lane.b32.xlu0 %v4012_v52, %s7129_s23 }
0x43f5   :  { %v4015_v54 = vpop.permute.xlu0 %4014 }
0x43f6   :  { %v8507_v56 = vadd.f32 %v4015_v54, %v4007_v53 }
0x43f8   :  { %7040 = vtanh.f32 %v8507_v56 }
0x4402   :  { %v7041_v61 = vpop.eup %7040 }
0x4403   :  { %4020 = vrot.lane.b32.xlu1 %v7041_v61, %s7128_s20 }
0x4475   :  { %v4021_v59 = vpop.permute.xlu1 %4020 }
0x4476   :  { %v4023_v60 = vmul.f32 %v4021_v59, %v4006_v50 }
0x4478   :  { %v4024_v62 = vpack.c.bf16 %v4023_v60, %v4023_v60 }
0x447a   :  { %4031 = vrot.lane.b32.xlu0 %v4024_v62, %s7129_s23  ;;  %v6886_v62 = vld [vmem:[%s8935_s10] sm:$0xff]  }
0x44ec   :  { %v4032_v63 = vpop.permute.xlu0 %4031 }
0x44ed   :  { %6514 = vmatmul.mubr.msk.bf16.vlgmr.msra.gmra.mrb[100].mxu1 %vm67_vm1, %v4032_v63  ;;  %v6887_v63 = vld [vmem:[%s8935_s10 + $0x8] sm:$0xff]  }
0x44ee   :  { %6545 = vmatprep.mubr.msk.bf16.mxu1 %vm7127_vm0, %v7126_v1  ;;  %6538 = vmatpush3.bf16.msra.mxu1 %v6878_v15 }
0x44ef   :  { %6539 = vmatprep.subr.bf16.mxu1 %v7126_v1 }
0x44f2   :  { %6540 = vmatpush3.bf16.msra.mxu1 %v6879_v10 }
0x44f3   :  { %6541 = vmatprep.subr.bf16.mxu1 %v7126_v1 }
0x44f6   :  { %6542 = vmatpush3.bf16.msra.mxu1 %v6880_v23 }
0x44f7   :  { %6543 = vmatprep.subr.bf16.mxu1 %v7126_v1 }
0x44fa   :  { %6544 = vmatpush3.bf16.msra.mxu1 %v6881_v24 }
0x44fb   :  { %6549 = vmatprep.subr.bf16.mxu1 %v7126_v1 }
0x45c0   :  { %v4082_v5 = vpop.f32.mrb[100].mxu1 }
0x45c1   :  { %v4083_v8 = vadd.f32 %v4082_v5, %v8554_v6  ;;  %v6515_v9 = vpop.f32.mrb[101].mxu1 }
0x45c2   :  { %v4085_v13 = vpop.f32.mrb[102].mxu1 }
0x45c3   :  { %4088 = vmax.xlane.f32.xlu1 %v4083_v8  ;;  %v6516_v11 = vpop.f32.mrb[103].mxu1 }
0x45d4   :  { %4285 = vrot.lane.b32.xlu1 %v7037_v46, %s7129_s23  ;;  %v8651_v46 = vld [vmem:[%s8934_s9] ss:$0 sm:$0xff] }
0x4650   :  { %v4089_v18 = vpop.xlane.xlu1 %4088 }
0x4651   :  { %v4090_v19 = vsub.f32 %v4083_v8, %v4089_v18 }
0x4653   :  { %v4091_v22 = vmul.f32 1.442695, %v4090_v19  ;;  %v6888_v19 = vld [vmem:[%s8936_s11] sm:$0xff]  }
0x4654   :  { %v4286_v43 = vpop.permute.xlu1 %4285 }
0x4655   :  { %7042 = vpow2.f32 %v4091_v22  ;;  %v6889_v22 = vld [vmem:[%s8936_s11 + $0x8] sm:$0xff]  }
0x465f   :  { %v7043_v20 = vpop.eup %7042 }
0x4660   :  { %4198 = vadd.xlane.f32.xlu0 %v7043_v20  ;;  %v4093_v21 = vpack.c.bf16 %v7043_v20, %v7043_v20  ;;  %v6890_v20 = vld [vmem:[%s8936_s11 + $0x10] sm:$0xff]  }
0x4662   :  { %6534 = vmatmul.mubr.bf16.vlgmr.msra.gmra.mrb[96].mxu0 %v4093_v21  ;;  %v6891_v21 = vld [vmem:[%s8936_s11 + $0x18] sm:$0xff]  }
0x4663   :  { %6565 = vmatprep.mubr.msk.bf16.mxu0 %vm7127_vm0, %v7126_v1  ;;  %6562 = vmatpush3.bf16.msra.mxu0 %v6886_v62  ;;  %v8742_v62 = vld [vmem:[%s8928_s3] sm:$0xff]  }
0x4664   :  { %6563 = vmatprep.subr.bf16.mxu0 %v7126_v1 }
0x4667   :  { %6564 = vmatpush3.bf16.msra.mxu0 %v6887_v63  ;;  %v8748_v63 = vld [vmem:[%s8928_s3 + $0x8] sm:$0xff]  }
0x4668   :  { %6589 = vmatprep.subr.bf16.mxu0 %v7126_v1 }
0x4676   :  { %4203 = vrot.lane.b32.xlu0 %v4023_v60, %s7128_s20 }
0x46ed   :  { %v4199_v26 = vpop.xlane.xlu0 %4198 }
0x46ee   :  { %7044 = vrcp.f32 %v4199_v26 }
0x46f1   :  { %v4204_v25 = vpop.permute.xlu0 %4203 }
0x46f8   :  { %v7045_v27 = vpop.eup %7044 }
0x4735   :  { %v4192_v17 = vpop.f32.mrb[96].mxu0 }
0x4736   :  { %v4201_v28 = vmul.f32 %v7045_v27, %v4192_v17  ;;  %v6535_v29 = vpop.f32.mrb[97].mxu0 }
0x4737   :  { %v4195_v30 = vpop.f32.mrb[98].mxu0 }
0x4738   :  { %v4206_v31 = vsel %vm67_vm1, %v4201_v28, %v4204_v25  ;;  %v6536_v33 = vpop.f32.mrb[99].mxu0  ;;  %v6892_v25 = vld [vmem:[%s8930_s5] sm:$0xff]  }
0x4739   :  { %v4207_v34 = vpack.c.bf16 %v4206_v31, %v4206_v31  ;;  %v6893_v31 = vld [vmem:[%s8930_s5 + $0x8] sm:$0xff]  }
0x473b   :  { %6546 = vmatmul.mubr.msk.bf16.vlgmr.msra.gmra.mrb[104].mxu1 %vm352_vm2, %v4207_v34 }
0x473c   :  { %6557 = vmatprep.mubr.msk.bf16.mxu1 %vm7127_vm0, %v7126_v1  ;;  %6550 = vmatpush3.bf16.msra.mxu1 %v6882_v35 }
0x473d   :  { %6551 = vmatprep.subr.bf16.mxu1 %v7126_v1 }
0x4740   :  { %6552 = vmatpush3.bf16.msra.mxu1 %v6883_v36 }
0x4741   :  { %6553 = vmatprep.subr.bf16.mxu1 %v7126_v1 }
0x4744   :  { %6554 = vmatpush3.bf16.msra.mxu1 %v6884_v37 }
0x4745   :  { %6555 = vmatprep.subr.bf16.mxu1 %v7126_v1 }
0x4748   :  { %6556 = vmatpush3.bf16.msra.mxu1 %v6885_v38  ;;  %v5530_v38 = vld [vmem:[%s8925_s0 + $0x38] sm:$0xff]  ;;  %s7131_s0 = smov [#allocation4]  }
0x4749   :  { %6569 = vmatprep.subr.bf16.mxu1 %v7126_v1  ;;  %s5270_s25 = sshll.u32 %s7131_s0, 4  ;;  %s5271_s25 = int_to_ptr.vmem [resolvable:$true] %s5270_s25 }
0x474a   :  { %p7083_p1 = scmp.lt.s32.totalorder %s5271_s25, %s5271_s25 }
0x480e   :  { %v4277_v32 = vpop.f32.mrb[104].mxu1 }
0x480f   :  { %7046 = vtanh.f32 %v4277_v32  ;;  %v6547_v39 = vpop.f32.mrb[105].mxu1 }
0x4810   :  { %v4280_v40 = vpop.f32.mrb[106].mxu1 }
0x4811   :  { %v6548_v41 = vpop.f32.mrb[107].mxu1 }
0x4819   :  { %v8625_v42 = vpop.eup %7046 }
0x481a   :  { %v4288_v44 = vsel %vm67_vm1, %v8625_v42, %v4286_v43  ;;  %v4591_v33 = vpack.c.bf16 %v8625_v42, %v8625_v42 }
0x481b   :  { %v4289_v45 = vpack.c.bf16 %v4288_v44, %v4288_v44 }
0x481d   :  { %6558 = vmatmul.mubr.msk.bf16.vlgmr.msra.gmra.mrb[108].mxu1 %vm352_vm2, %v4289_v45 }
0x481e   :  { %6570 = vmatpush3.bf16.msra.mxu1 %v8526_v2  ;;  %6585 = vmatprep.mubr.msk.bf16.mxu1 %vm7127_vm0, %v7126_v1 }
0x481f   :  { %6571 = vmatprep.subr.bf16.mxu1 %v7126_v1 }
0x4822   :  { %6572 = vmatpush3.bf16.msra.mxu1 %v8532_v3 }
0x4823   :  { %6573 = vmatprep.subr.bf16.mxu1 %v7126_v1 }
0x4826   :  { %6574 = vmatpush3.bf16.msra.mxu1 %v8539_v55 }
0x4827   :  { %6575 = vmatprep.subr.bf16.mxu1 %v7126_v1 }
0x482a   :  { %6576 = vmatpush3.bf16.msra.mxu1 %v8546_v7 }
0x482b   :  { %6577 = vmatprep.subr.bf16.mxu1 %v7126_v1 }
0x482e   :  { %6578 = vmatpush3.bf16.msra.mxu1 %v8560_v12 }
0x482f   :  { %6579 = vmatprep.subr.bf16.mxu1 %v7126_v1 }
0x4832   :  { %6580 = vmatpush3.bf16.msra.mxu1 %v8568_v0 }
0x4833   :  { %6581 = vmatprep.subr.bf16.mxu1 %v7126_v1 }
0x4836   :  { %6582 = vmatpush3.bf16.msra.mxu1 %v8574_v16 }
0x4837   :  { %6583 = vmatprep.subr.bf16.mxu1 %v7126_v1 }
0x483a   :  { %6584 = vmatpush3.bf16.msra.mxu1 %v8581_v14 }
0x483b   :  { %6617 = vmatprep.subr.bf16.mxu1 %v7126_v1 }
0x48f0   :  { %v4366_v47 = vpop.f32.mrb[108].mxu1 }
0x48f1   :  { %v4367_v48 = vadd.f32 %v8651_v46, %v4366_v47  ;;  %v6559_v49 = vpop.f32.mrb[109].mxu1 }
0x48f2   :  { %v4369_v50 = vpop.f32.mrb[110].mxu1 }
0x48f3   :  { %7048 = vtanh.f32 %v4367_v48  ;;  %v6560_v51 = vpop.f32.mrb[111].mxu1 }
0x48fd   :  { %v7049_v52 = vpop.eup %7048 }
0x48fe   :  { %4377 = vrot.lane.b32.xlu1 %v7049_v52, %s7128_s20  ;;  %v4373_v53 = vmul.f32 0.5, %v7049_v52 }
0x4900   :  { %v4374_v54 = vadd.f32 0.5, %v4373_v53  ;;  %v6894_v53 = vld [vmem:[%s8931_s6] sm:$0xff]  }
0x4902   :  { %v4375_v61 = vmul.f32 %v4374_v54, %v8444_v4 }
0x4970   :  { %v4378_v57 = vpop.permute.xlu1 %4377 }
0x4971   :  { %v4380_v58 = vmul.f32 %v4378_v57, %v4374_v54 }
0x4973   :  { %4382 = vrot.lane.b32.xlu0 %v4380_v58, %s7129_s23 }
0x49e5   :  { %v4383_v59 = vpop.permute.xlu0 %4382 }
0x49e6   :  { %v8657_v60 = vadd.f32 %v4383_v59, %v4375_v61 }
0x49e8   :  { %7050 = vtanh.f32 %v8657_v60 }
0x49f2   :  { %v7051_v4 = vpop.eup %7050 }
0x49f3   :  { %4388 = vrot.lane.b32.xlu1 %v7051_v4, %s7128_s20  ;;  %v8755_v4 = vld [vmem:[%s8928_s3 + $0x10] sm:$0xff]  }
0x4a65   :  { %v4389_v2 = vpop.permute.xlu1 %4388 }
0x4a66   :  { %v4391_v3 = vmul.f32 %v4389_v2, %v4374_v54  ;;  %v6895_v54 = vld [vmem:[%s8931_s6 + $0x8] sm:$0xff]   ;;  %v8762_v2 = vld [vmem:[%s8928_s3 + $0x18] sm:$0xff]  }
0x4a68   :  { %v4392_v55 = vpack.c.bf16 %v4391_v3, %v4391_v3 }
0x4a6a   :  { %4398 = vrot.lane.b32.xlu0 %v4392_v55, %s7129_s23 }
0x4adc   :  { %v4399_v7 = vpop.permute.xlu0 %4398 }
0x4add   :  { %6566 = vmatmul.mubr.msk.bf16.vlgmr.msra.gmra.mrb[100].mxu0 %vm67_vm1, %v4399_v7 }
0x4ade   :  { %6597 = vmatprep.mubr.msk.bf16.mxu0 %vm7127_vm0, %v7126_v1  ;;  %6590 = vmatpush3.bf16.msra.mxu0 %v6888_v19 }
0x4adf   :  { %6591 = vmatprep.subr.bf16.mxu0 %v7126_v1 }
0x4ae2   :  { %6592 = vmatpush3.bf16.msra.mxu0 %v6889_v22  ;;  %v6904_v22 = vld [vmem:[%s8932_s7] sm:$0xff]  }
0x4ae3   :  { %6593 = vmatprep.subr.bf16.mxu0 %v7126_v1 }
0x4ae6   :  { %6594 = vmatpush3.bf16.msra.mxu0 %v6890_v20  ;;  %v6905_v20 = vld [vmem:[%s8932_s7 + $0x8] sm:$0xff]  }
0x4ae7   :  { %6595 = vmatprep.subr.bf16.mxu0 %v7126_v1 }
0x4aea   :  { %6596 = vmatpush3.bf16.msra.mxu0 %v6891_v21  ;;  %v6906_v21 = vld [vmem:[%s8932_s7 + $0x10] sm:$0xff]  }
0x4aeb   :  { %6601 = vmatprep.subr.bf16.mxu0 %v7126_v1 }
0x4bb0   :  { %v4449_v5 = vpop.f32.mrb[100].mxu0 }
0x4bb1   :  { %v4450_v8 = vadd.f32 %v4449_v5, %v8554_v6  ;;  %v6567_v9 = vpop.f32.mrb[101].mxu0 }
0x4bb2   :  { %v4452_v13 = vpop.f32.mrb[102].mxu0  ;;  %v8771_v9 = vld [vmem:[%s8928_s3 + $0x20] sm:$0xff]  }
0x4bb3   :  { %4455 = vmax.xlane.f32.xlu1 %v4450_v8  ;;  %v6568_v11 = vpop.f32.mrb[103].mxu0  ;;  %v8778_v13 = vld [vmem:[%s8928_s3 + $0x28] sm:$0xff]  }
0x4bb4   :  { %v8784_v11 = vld [vmem:[%s8928_s3 + $0x30] sm:$0xff]  }
0x4c40   :  { %v4456_v12 = vpop.xlane.xlu1 %4455 }
0x4c41   :  { %v4457_v0 = vsub.f32 %v4450_v8, %v4456_v12  ;;  %v8792_v12 = vld [vmem:[%s8928_s3 + $0x38] sm:$0xff]  }
0x4c43   :  { %v4458_v16 = vmul.f32 1.442695, %v4457_v0 }
0x4c45   :  { %7052 = vpow2.f32 %v4458_v16 }
0x4c4f   :  { %v7053_v14 = vpop.eup %7052 }
0x4c50   :  { %4501 = vadd.xlane.f32.xlu0 %v7053_v14  ;;  %v4460_v18 = vpack.c.bf16 %v7053_v14, %v7053_v14 }
0x4c52   :  { %6586 = vmatmul.mubr.bf16.vlgmr.msra.gmra.mrb[112].mxu1 %v4460_v18 }
0x4c53   :  { %6633 = vmatprep.mubr.msk.bf16.mxu1 %vm7127_vm0, %v7126_v1  ;;  %6618 = vmatpush3.bf16.msra.mxu1 %v8742_v62 }
0x4c54   :  { %6619 = vmatprep.subr.bf16.mxu1 %v7126_v1 }
0x4c57   :  { %6620 = vmatpush3.bf16.msra.mxu1 %v8748_v63 }
0x4c58   :  { %6621 = vmatprep.subr.bf16.mxu1 %v7126_v1 }
0x4c5b   :  { %6622 = vmatpush3.bf16.msra.mxu1 %v8755_v4 }
0x4c5c   :  { %6623 = vmatprep.subr.bf16.mxu1 %v7126_v1 }
0x4c5f   :  { %6624 = vmatpush3.bf16.msra.mxu1 %v8762_v2 }
0x4c60   :  { %6625 = vmatprep.subr.bf16.mxu1 %v7126_v1 }
0x4c63   :  { %6626 = vmatpush3.bf16.msra.mxu1 %v8771_v9 }
0x4c64   :  { %6627 = vmatprep.subr.bf16.mxu1 %v7126_v1 }
0x4c66   :  { %4506 = vrot.lane.b32.xlu0 %v4391_v3, %s7128_s20 }
0x4c67   :  { %6628 = vmatpush3.bf16.msra.mxu1 %v8778_v13 }
0x4c68   :  { %6629 = vmatprep.subr.bf16.mxu1 %v7126_v1 }
0x4c6b   :  { %6630 = vmatpush3.bf16.msra.mxu1 %v8784_v11 }
0x4c6c   :  { %6631 = vmatprep.subr.bf16.mxu1 %v7126_v1 }
0x4c6f   :  { %6632 = vmatpush3.bf16.msra.mxu1 %v8792_v12 }
0x4c70   :  { %6661 = vmatprep.subr.bf16.mxu1 %v7126_v1 }
0x4cdd   :  { %v4502_v15 = vpop.xlane.xlu0 %4501 }
0x4cde   :  { %7054 = vrcp.f32 %v4502_v15  ;;  %v6907_v15 = vld [vmem:[%s8932_s7 + $0x18] sm:$0xff]  }
0x4ce1   :  { %v4507_v27 = vpop.permute.xlu0 %4506 }
0x4ce8   :  { %v7055_v10 = vpop.eup %7054 }
0x4d25   :  { %v4495_v23 = vpop.f32.mrb[112].mxu1 }
0x4d26   :  { %v4504_v24 = vmul.f32 %v7055_v10, %v4495_v23  ;;  %v6587_v26 = vpop.f32.mrb[113].mxu1 }
0x4d27   :  { %v4498_v17 = vpop.f32.mrb[114].mxu1 }
0x4d28   :  { %v4509_v28 = vsel %vm67_vm1, %v4504_v24, %v4507_v27  ;;  %v6588_v29 = vpop.f32.mrb[115].mxu1 }
0x4d29   :  { %v4510_v30 = vpack.c.bf16 %v4509_v28, %v4509_v28 }
0x4d2b   :  { %6598 = vmatmul.mubr.msk.bf16.vlgmr.msra.gmra.mrb[104].mxu0 %vm352_vm2, %v4510_v30 }
0x4d2c   :  { %6602 = vmatpush3.bf16.msra.mxu0 %v6892_v25  ;;  %6605 = vmatprep.mubr.msk.bf16.mxu0 %vm7127_vm0, %v7126_v1 }
0x4d2d   :  { %6603 = vmatprep.subr.bf16.mxu0 %v7126_v1 }
0x4d30   :  { %6604 = vmatpush3.bf16.msra.mxu0 %v6893_v31  ;;  %v6908_v31 = vld [vmem:[%s8933_s8] sm:$0xff]  }
0x4d31   :  { %6609 = vmatprep.subr.bf16.mxu0 %v7126_v1 }
0x4d33   :  { %6606 = vmatmul.mubr.msk.bf16.vlgmr.msra.gmra.mrb[108].mxu0 %vm67_vm1, %v4591_v33  ;;  %v6909_v33 = vld [vmem:[%s8933_s8 + $0x8] sm:$0xff]  }
0x4d34   :  { %6613 = vmatprep.mubr.msk.bf16.mxu0 %vm7127_vm0, %v7126_v1  ;;  %6610 = vmatpush3.bf16.msra.mxu0 %v6894_v53 }
0x4d35   :  { %6611 = vmatprep.subr.bf16.mxu0 %v7126_v1 }
0x4d38   :  { %6612 = vmatpush3.bf16.msra.mxu0 %v6895_v54 }
0x4d39   :  { %6637 = vmatprep.subr.bf16.mxu0 %v7126_v1 }
0x4dfe   :  { %v4580_v34 = vpop.f32.mrb[104].mxu0 }
0x4dff   :  { %7056 = vtanh.f32 %v4580_v34  ;;  %v6599_v35 = vpop.f32.mrb[105].mxu0  ;;  %v6910_v34 = vld [vmem:[%s8933_s8 + $0x10] sm:$0xff]  }
0x4e00   :  { %v4583_v36 = vpop.f32.mrb[106].mxu0  ;;  %v6911_v35 = vld [vmem:[%s8933_s8 + $0x18] sm:$0xff]  }
0x4e01   :  { %v6600_v37 = vpop.f32.mrb[107].mxu0 }
0x4e06   :  { %v4645_v32 = vpop.f32.mrb[108].mxu0 }
0x4e07   :  { %v4651_v39 = vadd.f32 %v5530_v38, %v4645_v32  ;;  %v6607_v40 = vpop.f32.mrb[109].mxu0 }
0x4e08   :  { %v4648_v41 = vpop.f32.mrb[110].mxu0 }
0x4e09   :  { %v8713_v42 = vpop.eup %7056  ;;  %7058 = vtanh.f32 %v4651_v39  ;;  %v6608_v43 = vpop.f32.mrb[111].mxu0 }
0x4e0a   :  { %5529 = vst.msk [vmem:[%s8937_s12 + $0x30] sm:$0xff] %vm67_vm1, %v8713_v42 }
0x4e13   :  { %v7059_v44 = vpop.eup %7058 }
0x4e14   :  { %4657 = vrot.lane.b32.xlu1 %v7059_v44, %s7128_s20  ;;  %v4653_v45 = vmul.f32 0.5, %v7059_v44 }
0x4e16   :  { %v4654_v47 = vadd.f32 0.5, %v4653_v45 }
0x4e18   :  { %v4655_v50 = vmul.f32 %v4654_v47, %v8507_v56 }
0x4e86   :  { %v4658_v48 = vpop.permute.xlu1 %4657 }
0x4e87   :  { %v4660_v49 = vmul.f32 %v4658_v48, %v4654_v47 }
0x4e89   :  { %4662 = vrot.lane.b32.xlu1 %v4660_v49, %s7129_s23 }
0x4efb   :  { %v4663_v51 = vpop.permute.xlu1 %4662 }
0x4efc   :  { %v8723_v52 = vadd.f32 %v4663_v51, %v4655_v50 }
0x4efe   :  { %7060 = vtanh.f32 %v8723_v52 }
0x4f08   :  { %v7061_v56 = vpop.eup %7060 }
0x4f09   :  { %4668 = vrot.lane.b32.xlu0 %v7061_v56, %s7128_s20 }
0x4f7b   :  { %v4669_v57 = vpop.permute.xlu0 %4668 }
0x4f7c   :  { %v4671_v58 = vmul.f32 %v4669_v57, %v4654_v47 }
0x4f7e   :  { %v4672_v61 = vpack.c.bf16 %v4671_v58, %v4671_v58 }
0x4f80   :  { %4679 = vrot.lane.b32.xlu1 %v4672_v61, %s7129_s23  ;;  %v6913_v61 = vld [vmem:[%s8935_s10 + $0x8] sm:$0xff]  }
0x4ff2   :  { %v4680_v59 = vpop.permute.xlu1 %4679 }
0x4ff3   :  { %6614 = vmatmul.mubr.msk.bf16.vlgmr.msra.gmra.mrb[112].mxu0 %vm67_vm1, %v4680_v59 }
0x4ff4   :  { %6645 = vmatprep.mubr.msk.bf16.mxu0 %vm7127_vm0, %v7126_v1  ;;  %6638 = vmatpush3.bf16.msra.mxu0 %v6904_v22 }
0x4ff5   :  { %6639 = vmatprep.subr.bf16.mxu0 %v7126_v1 }
0x4ff8   :  { %6640 = vmatpush3.bf16.msra.mxu0 %v6905_v20 }
0x4ff9   :  { %6641 = vmatprep.subr.bf16.mxu0 %v7126_v1 }
0x4ffc   :  { %6642 = vmatpush3.bf16.msra.mxu0 %v6906_v21 }
0x4ffd   :  { %6643 = vmatprep.subr.bf16.mxu0 %v7126_v1 }
0x5000   :  { %6644 = vmatpush3.bf16.msra.mxu0 %v6907_v15 }
0x5001   :  { %6649 = vmatprep.subr.bf16.mxu0 %v7126_v1 }
0x50c6   :  { %v4730_v3 = vpop.f32.mrb[112].mxu0 }
0x50c7   :  { %v4731_v55 = vadd.f32 %v4730_v3, %v8554_v6  ;;  %v6615_v7 = vpop.f32.mrb[113].mxu0 }
0x50c8   :  { %v4733_v5 = vpop.f32.mrb[114].mxu0 }
0x50c9   :  { %4736 = vmax.xlane.f32.xlu0 %v4731_v55  ;;  %v6616_v8 = vpop.f32.mrb[115].mxu0 }
0x50df   :  { %4851 = vrot.lane.b32.xlu0 %v4671_v58, %s7128_s20 }
0x5156   :  { %v4737_v0 = vpop.xlane.xlu0 %4736 }
0x5157   :  { %v4738_v16 = vsub.f32 %v4731_v55, %v4737_v0 }
0x5159   :  { %v4739_v14 = vmul.f32 1.442695, %v4738_v16 }
0x515a   :  { %v4852_v17 = vpop.permute.xlu0 %4851 }
0x515b   :  { %7062 = vpow2.f32 %v4739_v14  ;;  %v6915_v14 = vld [vmem:[%s8936_s11 + $0x8] sm:$0xff]  }
0x5165   :  { %v7063_v18 = vpop.eup %7062 }
0x5166   :  { %4846 = vadd.xlane.f32.xlu1 %v7063_v18  ;;  %v4741_v19 = vpack.c.bf16 %v7063_v18, %v7063_v18  ;;  %v6916_v18 = vld [vmem:[%s8936_s11 + $0x10] sm:$0xff]  }
0x5168   :  { %6634 = vmatmul.mubr.bf16.vlgmr.msra.gmra.mrb[116].mxu1 %v4741_v19 }
0x5169   :  { %6665 = vmatprep.mubr.msk.bf16.mxu1 %vm7127_vm0, %v7126_v1 }
0x5177   :  { %4933 = vrot.lane.b32.xlu1 %v8713_v42, %s7129_s23 }
0x51f3   :  { %v4847_v10 = vpop.xlane.xlu1 %4846 }
0x51f4   :  { %7064 = vrcp.f32 %v4847_v10 }
0x51f7   :  { %v4934_v40 = vpop.permute.xlu1 %4933 }
0x51fe   :  { %v7065_v23 = vpop.eup %7064 }
0x523b   :  { %v4840_v24 = vpop.f32.mrb[116].mxu1 }
0x523c   :  { %v4849_v26 = vmul.f32 %v7065_v23, %v4840_v24  ;;  %v6635_v27 = vpop.f32.mrb[117].mxu1 }
0x523d   :  { %v4843_v28 = vpop.f32.mrb[118].mxu1 }
0x523e   :  { %v4854_v29 = vsel %vm67_vm1, %v4849_v26, %v4852_v17  ;;  %v6636_v25 = vpop.f32.mrb[119].mxu1 }
0x523f   :  { %v4855_v30 = vpack.c.bf16 %v4854_v29, %v4854_v29 }
0x5241   :  { %6646 = vmatmul.mubr.msk.bf16.vlgmr.msra.gmra.mrb[116].mxu0 %vm352_vm2, %v4855_v30 }
0x5242   :  { %6657 = vmatprep.mubr.msk.bf16.mxu0 %vm7127_vm0, %v7126_v1  ;;  %6650 = vmatpush3.bf16.msra.mxu0 %v6908_v31 }
0x5243   :  { %6651 = vmatprep.subr.bf16.mxu0 %v7126_v1 }
0x5246   :  { %6652 = vmatpush3.bf16.msra.mxu0 %v6909_v33 }
0x5247   :  { %6653 = vmatprep.subr.bf16.mxu0 %v7126_v1 }
0x524a   :  { %6654 = vmatpush3.bf16.msra.mxu0 %v6910_v34 }
0x524b   :  { %6655 = vmatprep.subr.bf16.mxu0 %v7126_v1 }
0x524e   :  { %6656 = vmatpush3.bf16.msra.mxu0 %v6911_v35 }
0x524f   :  { %6669 = vmatprep.subr.bf16.mxu0 %v7126_v1 }
0x5314   :  { %v4925_v36 = vpop.f32.mrb[116].mxu0 }
0x5315   :  { %7066 = vtanh.f32 %v4925_v36  ;;  %v6647_v37 = vpop.f32.mrb[117].mxu0 }
0x5316   :  { %v4928_v38 = vpop.f32.mrb[118].mxu0 }
0x5317   :  { %v6648_v32 = vpop.f32.mrb[119].mxu0 }
0x531f   :  { %v7067_v39 = vpop.eup %7066 }
0x5320   :  { %5237 = vst.msk [vmem:[#allocation2] sm:$0xff] %vm67_vm1, %v7067_v39  ;;  %v4936_v41 = vsel %vm67_vm1, %v7067_v39, %v4934_v40 }
0x5321   :  { %v4937_v42 = vpack.c.bf16 %v4936_v41, %v4936_v41 }
0x5323   :  { %6658 = vmatmul.mubr.msk.bf16.vlgmr.msra.gmra.mrb[120].mxu0 %vm352_vm2, %v4937_v42 }
0x5324   :  { %6670 = vmatpush3.bf16.msra.mxu0 %v8742_v62  ;;  %6685 = vmatprep.mubr.msk.bf16.mxu0 %vm7127_vm0, %v7126_v1 }
0x5325   :  { %6671 = vmatprep.subr.bf16.mxu0 %v7126_v1 }
0x5328   :  { %6672 = vmatpush3.bf16.msra.mxu0 %v8748_v63 }
0x5329   :  { %6673 = vmatprep.subr.bf16.mxu0 %v7126_v1 }
0x532c   :  { %6674 = vmatpush3.bf16.msra.mxu0 %v8755_v4 }
0x532d   :  { %6675 = vmatprep.subr.bf16.mxu0 %v7126_v1 }
0x5330   :  { %6676 = vmatpush3.bf16.msra.mxu0 %v8762_v2 }
0x5331   :  { %6677 = vmatprep.subr.bf16.mxu0 %v7126_v1 }
0x5334   :  { %6678 = vmatpush3.bf16.msra.mxu0 %v8771_v9 }
0x5335   :  { %6679 = vmatprep.subr.bf16.mxu0 %v7126_v1 }
0x5338   :  { %6680 = vmatpush3.bf16.msra.mxu0 %v8778_v13 }
0x5339   :  { %6681 = vmatprep.subr.bf16.mxu0 %v7126_v1 }
0x533c   :  { %6682 = vmatpush3.bf16.msra.mxu0 %v8784_v11 }
0x533d   :  { %6683 = vmatprep.subr.bf16.mxu0 %v7126_v1 }
0x5340   :  { %6684 = vmatpush3.bf16.msra.mxu0 %v8792_v12 }
0x53f6   :  { %v5014_v43 = vpop.f32.mrb[120].mxu0 }
0x53f7   :  { %v5015_v44 = vadd.f32 %v8651_v46, %v5014_v43  ;;  %v6659_v45 = vpop.f32.mrb[121].mxu0  ;;  %v6912_v46 = vld [vmem:[%s8935_s10] sm:$0xff]   ;;  %s7130_s10 = smov 96  }
0x53f8   :  { %v5017_v47 = vpop.f32.mrb[122].mxu0  ;;  %6662 = vmatpush3.bf16.msra.mxu1 %v6912_v46 }
0x53f9   :  { %7068 = vtanh.f32 %v5015_v44  ;;  %v6660_v48 = vpop.f32.mrb[123].mxu0  ;;  %6663 = vmatprep.subr.bf16.mxu1 %v7126_v1 }
0x53fc   :  { %6664 = vmatpush3.bf16.msra.mxu1 %v6913_v61 }
0x53fd   :  { %6689 = vmatprep.subr.bf16.mxu1 %v7126_v1 }
0x5403   :  { %v7069_v49 = vpop.eup %7068 }
0x5404   :  { %5025 = vrot.lane.b32.xlu0 %v7069_v49, %s7128_s20  ;;  %v5021_v50 = vmul.f32 0.5, %v7069_v49 }
0x5406   :  { %v5022_v51 = vadd.f32 0.5, %v5021_v50 }
0x5408   :  { %v5023_v56 = vmul.f32 %v5022_v51, %v8657_v60 }
0x5476   :  { %v5026_v53 = vpop.permute.xlu0 %5025 }
0x5477   :  { %v5028_v54 = vmul.f32 %v5026_v53, %v5022_v51 }
0x5479   :  { %5030 = vrot.lane.b32.xlu1 %v5028_v54, %s7129_s23 }
0x54eb   :  { %v5031_v57 = vpop.permute.xlu1 %5030 }
0x54ec   :  { %v5033_v58 = vadd.f32 %v5031_v57, %v5023_v56 }
0x54ee   :  { %7070 = vtanh.f32 %v5033_v58 }
0x54f8   :  { %v7071_v59 = vpop.eup %7070 }
0x54f9   :  { %5036 = vrot.lane.b32.xlu0 %v7071_v59, %s7128_s20 }
0x556b   :  { %v5037_v60 = vpop.permute.xlu0 %5036 }
0x556c   :  { %v5039_v62 = vmul.f32 %v5037_v60, %v5022_v51 }
0x556e   :  { %v5040_v63 = vpack.c.bf16 %v5039_v62, %v5039_v62 }
0x5570   :  { %5046 = vrot.lane.b32.xlu1 %v5040_v63, %s7129_s23 }
0x55e2   :  { %v5047_v4 = vpop.permute.xlu1 %5046 }
0x55e3   :  { %6666 = vmatmul.mubr.msk.bf16.vlgmr.msra.gmra.mrb[120].mxu1 %vm67_vm1, %v5047_v4 }
0x55e4   :  { %6697 = vmatprep.mubr.msk.bf16.mxu1 %vm7127_vm0, %v7126_v1 }
0x56b6   :  { %v5097_v2 = vpop.f32.mrb[120].mxu1 }
0x56b7   :  { %v5098_v3 = vadd.f32 %v5097_v2, %v8554_v6  ;;  %v6667_v55 = vpop.f32.mrb[121].mxu1  ;;  %v6914_v6 = vld [vmem:[%s8936_s11] sm:$0xff]  }
0x56b8   :  { %v5100_v7 = vpop.f32.mrb[122].mxu1  ;;  %6690 = vmatpush3.bf16.msra.mxu1 %v6914_v6 }
0x56b9   :  { %5103 = vmax.xlane.f32.xlu0 %v5098_v3  ;;  %v6668_v5 = vpop.f32.mrb[123].mxu1  ;;  %6691 = vmatprep.subr.bf16.mxu1 %v7126_v1 }
0x56bc   :  { %6692 = vmatpush3.bf16.msra.mxu1 %v6915_v14 }
0x56bd   :  { %6693 = vmatprep.subr.bf16.mxu1 %v7126_v1 }
0x56c0   :  { %6694 = vmatpush3.bf16.msra.mxu1 %v6916_v18 }
0x56c1   :  { %6695 = vmatprep.subr.bf16.mxu1 %v7126_v1 }
0x56cf   :  { %5154 = vrot.lane.b32.xlu0 %v5039_v62, %s7128_s20 }
0x56d3   :  { %5246 = vrot.lane.b32.xlu0 %v5033_v58, %s7130_s10 }
0x5746   :  { %v5104_v8 = vpop.xlane.xlu0 %5103 }
0x5747   :  { %v5105_v9 = vsub.f32 %v5098_v3, %v5104_v8 }
0x5749   :  { %v5106_v13 = vmul.f32 1.442695, %v5105_v9 }
0x574a   :  { %v5155_v11 = vpop.permute.xlu0 %5154 }
0x574b   :  { %7072 = vpow2.f32 %v5106_v13 }
0x574e   :  { %v5247_v12 = vpop.permute.xlu0 %5246 }
0x574f   :  { %5250 = vst.msk [vmem:[#allocation4 + $0x8] sm:$0xff] %vm67_vm1, %v5247_v12 }
0x5755   :  { %v7073_v0 = vpop.eup %7072 }
0x5756   :  { %5149 = vadd.xlane.f32.xlu1 %v7073_v0  ;;  %v5108_v16 = vpack.c.bf16 %v7073_v0, %v7073_v0 }
0x5758   :  { %6686 = vmatmul.mubr.bf16.vlgmr.msra.gmra.mrb[124].mxu0 %v5108_v16 }
0x5767   :  { %5239 = vrot.lane.b32.xlu1 %v8723_v52, %s7130_s10  ;;  %v6917_v52 = vld [vmem:[%s8936_s11 + $0x18] sm:$0xff]   ;;  %s7078_s11 = scalar_lea.vmem %s5271_s25, 256 }
0x5768   :  { %6696 = vmatpush3.bf16.msra.mxu1 %v6917_v52  ;;  %p7079_p0 = scmp.ne.s32.totalorder %s5271_s25, %s7078_s11  ;;  %p7084_p2 = scmp.lt.s32.totalorder %s7078_s11, %s7078_s11 }
0x576a   :  { %p7085_p3 = por %p7084_p2, %p7083_p1 }
0x576c   :  { %p7086_p4 = pnand %p7085_p3, %p7079_p0 }
0x57e3   :  { %v5150_v19 = vpop.xlane.xlu1 %5149 }
0x57e4   :  { %7074 = vrcp.f32 %v5150_v19 }
0x57e7   :  { %v5240_v22 = vpop.permute.xlu1 %5239 }
0x57e8   :  { %5242 = vst.msk [vmem:[#allocation4] sm:$0xff] %vm67_vm1, %v5240_v22 }
0x57ee   :  { %v7075_v20 = vpop.eup %7074 }
0x582b   :  { %v5143_v21 = vpop.f32.mrb[124].mxu0 }
0x582c   :  { %v5152_v15 = vmul.f32 %v7075_v20, %v5143_v21  ;;  %v6687_v10 = vpop.f32.mrb[125].mxu0 }
0x582d   :  { %v5146_v23 = vpop.f32.mrb[126].mxu0 }
0x582e   :  { %v5157_v24 = vsel %vm67_vm1, %v5152_v15, %v5155_v11  ;;  %v6688_v26 = vpop.f32.mrb[127].mxu0 }
0x582f   :  { %v5158_v27 = vpack.c.bf16 %v5157_v24, %v5157_v24 }
0x5831   :  { %6698 = vmatmul.mubr.msk.bf16.vlgmr.msra.gmra.mrb[124].mxu1 %vm352_vm2, %v5158_v27 }
0x5832   :  { %7089 = shalt.err (!%p7086_p4)
}
0x5833   :  { %s7090_s6 = scalar_lea.hbm %s8939_s14, 256 }
0x5834   :  { %p7091_p5 = scmp.ne.s32.totalorder %s8939_s14, %s7090_s6  ;;  %p7094_p6 = scmp.lt.u32.totalorder %s7090_s6, %s8939_s14 }
0x5836   :  { %p7096_p7 = pnand %p7094_p6, %p7091_p5 }
0x5838   :  { %7099 = shalt.err (!%p7096_p7)
}
0x5839   :  { %s7132_s15 = smov 128   ;;  %s7133_s16 = smov 8  }
0x583a   :  { %5276 = dma.vmem_to_hbm [thread:$0]  %s5271_s25, 256, %s8939_s14, [#allocation5], %s7132_s15, %s7132_s15, %s7133_s16  }
0x583b   :  { %s7134_s4 = smov [#allocation2]  }
0x583c   :  { %s5258_s8 = sshll.u32 %s7134_s4, 4  ;;  %s5259_s8 = int_to_ptr.vmem [resolvable:$true] %s5258_s8 }
0x583d   :  { %s7100_s21 = scalar_lea.vmem %s5259_s8, 256  ;;  %p7105_p9 = scmp.lt.s32.totalorder %s5259_s8, %s5259_s8 }
0x583e   :  { %p7101_p8 = scmp.ne.s32.totalorder %s5259_s8, %s7100_s21  ;;  %p7106_p10 = scmp.lt.s32.totalorder %s7100_s21, %s7100_s21 }
0x5840   :  { %p7107_p11 = por %p7106_p10, %p7105_p9 }
0x5842   :  { %p7108_p12 = pnand %p7107_p11, %p7101_p8 }
0x5904   :  { %v5228_v1 = vpop.f32.mrb[124].mxu1 }
0x5905   :  { %7076 = vtanh.f32 %v5228_v1  ;;  %v6699_v17 = vpop.f32.mrb[125].mxu1 }
0x5906   :  { %v5231_v28 = vpop.f32.mrb[126].mxu1 }
0x5907   :  { %v6700_v29 = vpop.f32.mrb[127].mxu1 }
0x590f   :  { %v7077_v25 = vpop.eup %7076 }
0x5910   :  { %5564 = vst.msk [vmem:[%s8937_s12 + $0x38] sm:$0xff] %vm67_vm1, %v7077_v25  ;;  %5244 = vst.msk [vmem:[#allocation2 + $0x8] sm:$0xff] %vm67_vm1, %v7077_v25 }
0x5911   :  { %7111 = shalt.err (!%p7108_p12)
}
0x5912   :  { %s7112_s23 = scalar_lea.hbm %s8938_s13, 256 }
0x5913   :  { %p7113_p13 = scmp.ne.s32.totalorder %s8938_s13, %s7112_s23  ;;  %p7116_p0 = scmp.lt.u32.totalorder %s7112_s23, %s8938_s13 }
0x5915   :  { %p7118_p1 = pnand %p7116_p0, %p7113_p13 }
0x5917   :  { %7121 = shalt.err (!%p7118_p1)
}
0x5918   :  { %5264 = dma.vmem_to_hbm [thread:$0]  %s5259_s8, 256, %s8938_s13, [#allocation3], %s7132_s15, %s7132_s15, %s7133_s16  }
0x5919   :  { %7122 = dma.done.wait [#allocation3], 256  }
0x591a   :  { %7123 = vsyncadd [#allocation3], 4294967040 }
0x591b   :  { %7124 = dma.done.wait [#allocation5], 256  }
0x591c   :  { %7125 = vsyncadd [#allocation5], 4294967040 }
0x591d   :  { %5285 = vsyncpa [#allocation3], 1 }
0x591e   :  { %5286 = vsyncpa [#allocation5], 1 }

</bundles_post_ra>
